<compile_context>
chip_gen: v6e
topology: v6e:2x2x1
jax: 0.10.0
libtpu: 0.0.40
codegen_flags: <defaults>
</compile_context>

<pallas_src>
import functools

import jax
import jax.numpy as jnp
from jax.experimental import pallas as pl
from jax.experimental.pallas import tpu as pltpu

LN_EPS = 1e-5  # PyTorch nn.LayerNorm default


def mha_block_kernel(num_heads,
                     x_ref, maskb_ref,
                     ln_w, ln_b, wqkv, bqkv, wo, bo,
                     out_ref):
    M, D = x_ref.shape                     # M = Bt * S (batch folded into matmul M)
    Bt, _, S = maskb_ref.shape
    H = num_heads
    hd = D // H
    scale = 1.0 / (hd ** 0.5)

    x = x_ref[...]                         # (M, D) f32

    # --- Pre-LN.  var = E[x^2] - mu^2 -> the two XLU reductions are independent.
    mu = jnp.mean(x, axis=-1, keepdims=True)
    msq = jnp.mean(x * x, axis=-1, keepdims=True)
    xn = (x - mu) * jax.lax.rsqrt(msq - mu * mu + LN_EPS) * ln_w[...] + ln_b[...]

    # --- Fused QKV projection: one (M, D) x (D, 3D) MXU matmul, xn cast once.
    xn_b = xn.astype(jnp.bfloat16)
    qkv = jnp.dot(xn_b, wqkv[...], preferred_element_type=jnp.float32) + bqkv[...]
    q, k, v = qkv[:, :D], qkv[:, D:2 * D], qkv[:, 2 * D:]

    def to_heads(t):                       # (M, D) -> (Bt*H, S, hd): one transpose
        return jnp.transpose(t.reshape(Bt, S, H, hd), (0, 2, 1, 3)).reshape(Bt * H, S, hd)

    qh = to_heads(q).astype(jnp.bfloat16)
    kh = to_heads(k).astype(jnp.bfloat16)
    vh = to_heads(v).astype(jnp.bfloat16)

    # --- One batched score matmul over (Bt*H), one mask add, one softmax.
    s = jnp.einsum('bqd,bkd->bqk', qh, kh,
                   preferred_element_type=jnp.float32) * scale      # (Bt*H, S, S) f32
    s = s.reshape(Bt, H, S, S) + maskb_ref[...][:, None, :, :]      # key-padding bias
    s = s - jnp.max(s, axis=-1, keepdims=True)
    e = jnp.exp(s)                                                   # f32 elementwise
    p = e * pl.reciprocal(jnp.sum(e, axis=-1, keepdims=True), approx=True)

    # --- One batched PV contraction, one transpose back to (M, D).
    o = jnp.einsum('bqk,bkd->bqd',
                   p.reshape(Bt * H, S, S).astype(jnp.bfloat16), vh,
                   preferred_element_type=jnp.float32)               # (Bt*H, S, hd)
    attn = jnp.transpose(o.reshape(Bt, H, S, hd), (0, 2, 1, 3)).reshape(M, D)

    # --- Output projection (attn_output).  Dropout(p=0) is identity.
    out = jnp.dot(attn.astype(jnp.bfloat16), wo[...],
                  preferred_element_type=jnp.float32) + bo[...]
    out_ref[...] = out.astype(out_ref.dtype)


def mha_block_pallas(x, key_padding_mask, params, num_heads, block_b=None):
    """x: (B, S, D) f32; key_padding_mask: (B, S) bool (True = ignore key)."""
    B, S, D = x.shape
    assert D % num_heads == 0
    # Default: whole batch in one grid step (per-step overhead rivals compute at
    # these shapes).  On v7x (2 TensorCores) pass block_b = B // 2 so both cores
    # receive a "parallel" grid step.
    block_b = B if block_b is None else block_b
    assert B % block_b == 0
    grid = (B // block_b,)

    # Boolean key-padding mask -> additive bias (PyTorch semantics: True = masked).
    mask_bias = jnp.where(key_padding_mask, jnp.float32(-1e30),
                          jnp.float32(0.0))[:, None, :]              # (B, 1, S)

    # Wrapper-side flatten: kernel sees a lane-dense 2-D slab (B*S, D).
    x2 = x.reshape(B * S, D)

    # bf16 operands for the MXU matmuls; LN params and biases stay f32.
    weights = [
        params['ln_w'].astype(jnp.float32), params['ln_b'].astype(jnp.float32),
        params['wqkv'].astype(jnp.bfloat16), params['bqkv'].astype(jnp.float32),
        params['wo'].astype(jnp.bfloat16), params['bo'].astype(jnp.float32),
    ]
    # Constant-index weight blocks.  (If D / heads are ever scaled up, add
    # pipeline_mode=pl.Buffered(1) here and/or raise vmem_limit_bytes.)
    w_specs = [pl.BlockSpec(w.shape, lambda i: (0, 0)) for w in weights]

    kernel = functools.partial(mha_block_kernel, num_heads)
    out = pl.pallas_call(
        kernel,
        out_shape=jax.ShapeDtypeStruct((B * S, D), jnp.float32),
        grid=grid,
        in_specs=[pl.BlockSpec((block_b * S, D), lambda i: (i, 0)),
                  pl.BlockSpec((block_b, 1, S), lambda i: (i, 0, 0))] + w_specs,
        out_specs=pl.BlockSpec((block_b * S, D), lambda i: (i, 0)),
        compiler_params=pltpu.CompilerParams(
            dimension_semantics=("parallel",)),
    )(x2, mask_bias, *weights)
    return out.reshape(B, S, D)


# ----------------------- pure-JAX reference (for checking) -----------------------
def mha_block_ref(x, key_padding_mask, p, num_heads):
    B, S, D = x.shape
    hd = D // num_heads
    mu = jnp.mean(x, axis=-1, keepdims=True)
    var = jnp.mean((x - mu) ** 2, axis=-1, keepdims=True)
    xn = (x - mu) / jnp.sqrt(var + LN_EPS) * p['ln_w'] + p['ln_b']
    qkv = xn @ p['wqkv'] + p['bqkv']
    q, k, v = qkv[..., :D], qkv[..., D:2 * D], qkv[..., 2 * D:]
    q = q.reshape(B, S, num_heads, hd).transpose(0, 2, 1, 3)
    k = k.reshape(B, S, num_heads, hd).transpose(0, 2, 1, 3)
    v = v.reshape(B, S, num_heads, hd).transpose(0, 2, 1, 3)
    bias = jnp.where(key_padding_mask, -1e30, 0.0)[:, None, None, :]
    s = jnp.einsum('bhqd,bhkd->bhqk', q, k) / (hd ** 0.5) + bias
    a = jax.nn.softmax(s, axis=-1)
    o = jnp.einsum('bhqk,bhkd->bhqd', a, v).transpose(0, 2, 1, 3).reshape(B, S, D)
    return o @ p['wo'] + p['bo']


if __name__ == "__main__":
    # Small shapes consistent with the module: embedding_dim divisible by
    # num_heads; D = 128 keeps every slab lane-dense.
    B, S, D, H = 2, 16, 128, 8

    key = jax.random.PRNGKey(0)
    k1, k2, k3, k4, k5, k6, k7 = jax.random.split(key, 7)

    def w(k, shape, s=0.02):
        return (s * jax.random.normal(k, shape)).astype(jnp.float32)

    params = dict(
        ln_w=(1.0 + 0.1 * jax.random.normal(k5, (1, D))).astype(jnp.float32),
        ln_b=(0.1 * jax.random.normal(k6, (1, D))).astype(jnp.float32),
        wqkv=w(k1, (D, 3 * D)),          # fused in_proj, pre-transposed (D, 3D)
        bqkv=w(k2, (1, 3 * D)),
        wo=w(k3, (D, D)),                # out_proj, pre-transposed
        bo=w(k7, (1, D)),
    )

    x = jax.random.normal(k4, (B, S, D), jnp.float32)
    lengths = jnp.array([S, S - 4])
    # key_padding_mask: True => key position ignored (PyTorch semantics).
    key_padding_mask = jnp.arange(S)[None, :] >= lengths[:, None]

    out = mha_block_pallas(x, key_padding_mask, params, num_heads=H)
    out = jax.block_until_ready(out)

    ref = mha_block_ref(x, key_padding_mask, params, num_heads=H)
    err = float(jnp.max(jnp.abs(out - ref)))
    assert out.shape == (B, S, D), out.shape
    # Tolerance accounts for bf16 matmul operands (f32 accumulation) and the
    # approximate (EUP) softmax reciprocal.
    assert err < 1e-2, f"mismatch vs reference: max abs err = {err}"
    print("KERNEL_OK")
</pallas_src>

<mosaic_0001>
module attributes {stable_mosaic.version = 11 : i64} {
  func.func @mha_block_kernel(%arg0: i32, %arg1: memref<32x128xf32, #tpu.memory_space<vmem>>, %arg2: memref<2x1x16xf32, #tpu.memory_space<vmem>>, %arg3: memref<1x128xf32, #tpu.memory_space<vmem>>, %arg4: memref<1x128xf32, #tpu.memory_space<vmem>>, %arg5: memref<128x384xbf16, #tpu.memory_space<vmem>>, %arg6: memref<1x384xf32, #tpu.memory_space<vmem>>, %arg7: memref<128x128xbf16, #tpu.memory_space<vmem>>, %arg8: memref<1x128xf32, #tpu.memory_space<vmem>>, %arg9: memref<32x128xf32, #tpu.memory_space<vmem>>) attributes {dimension_semantics = [#tpu.dimension_semantics<parallel>], iteration_bounds = array<i64: 1>, scalar_prefetch = 0 : i64, scratch_operands = 0 : i64, tpu.core_type = #tpu.core_type<tc>, window_params = [{transform_indices = @transform_0, window_bounds = array<i64: 32, 128>}, {transform_indices = @transform_1, window_bounds = array<i64: 2, 1, 16>}, {pipeline_mode = #tpu.pipeline_mode<synchronous>, transform_indices = @transform_2, window_bounds = array<i64: 1, 128>}, {pipeline_mode = #tpu.pipeline_mode<synchronous>, transform_indices = @transform_3, window_bounds = array<i64: 1, 128>}, {pipeline_mode = #tpu.pipeline_mode<synchronous>, transform_indices = @transform_4, window_bounds = array<i64: 128, 384>}, {pipeline_mode = #tpu.pipeline_mode<synchronous>, transform_indices = @transform_5, window_bounds = array<i64: 1, 384>}, {pipeline_mode = #tpu.pipeline_mode<synchronous>, transform_indices = @transform_6, window_bounds = array<i64: 128, 128>}, {pipeline_mode = #tpu.pipeline_mode<synchronous>, transform_indices = @transform_7, window_bounds = array<i64: 1, 128>}, {transform_indices = @transform_8, window_bounds = array<i64: 32, 128>}]} {
    %c0 = arith.constant 0 : index
    %c0_0 = arith.constant 0 : index
    %0 = vector.load %arg1[%c0, %c0_0] : memref<32x128xf32, #tpu.memory_space<vmem>>, vector<32x128xf32>
    %cst = arith.constant dense<0.000000e+00> : vector<32xf32>
    %1 = vector.multi_reduction <add>, %0, %cst [1] : vector<32x128xf32> to vector<32xf32>
    %2 = vector.shape_cast %1 : vector<32xf32> to vector<32x1xf32>
    %cst_1 = arith.constant 1.280000e+02 : f32
    %3 = vector.broadcast %cst_1 : f32 to vector<32x1xf32>
    %4 = arith.divf %2, %3 : vector<32x1xf32>
    %5 = arith.mulf %0, %0 : vector<32x128xf32>
    %cst_2 = arith.constant dense<0.000000e+00> : vector<32xf32>
    %6 = vector.multi_reduction <add>, %5, %cst_2 [1] : vector<32x128xf32> to vector<32xf32>
    %7 = vector.shape_cast %6 : vector<32xf32> to vector<32x1xf32>
    %cst_3 = arith.constant 1.280000e+02 : f32
    %8 = vector.broadcast %cst_3 : f32 to vector<32x1xf32>
    %9 = arith.divf %7, %8 : vector<32x1xf32>
    %10 = vector.broadcast %4 : vector<32x1xf32> to vector<32x128xf32>
    %11 = arith.subf %0, %10 : vector<32x128xf32>
    %12 = arith.mulf %4, %4 : vector<32x1xf32>
    %13 = arith.subf %9, %12 : vector<32x1xf32>
    %cst_4 = arith.constant 9.99999974E-6 : f32
    %14 = vector.broadcast %cst_4 : f32 to vector<32x1xf32>
    %15 = arith.addf %13, %14 : vector<32x1xf32>
    %16 = math.rsqrt %15 : vector<32x1xf32>
    %17 = vector.broadcast %16 : vector<32x1xf32> to vector<32x128xf32>
    %18 = arith.mulf %11, %17 : vector<32x128xf32>
    %c0_5 = arith.constant 0 : index
    %c0_6 = arith.constant 0 : index
    %19 = vector.load %arg3[%c0_5, %c0_6] : memref<1x128xf32, #tpu.memory_space<vmem>>, vector<1x128xf32>
    %20 = vector.broadcast %19 : vector<1x128xf32> to vector<32x128xf32>
    %21 = arith.mulf %18, %20 : vector<32x128xf32>
    %c0_7 = arith.constant 0 : index
    %c0_8 = arith.constant 0 : index
    %22 = vector.load %arg4[%c0_7, %c0_8] : memref<1x128xf32, #tpu.memory_space<vmem>>, vector<1x128xf32>
    %23 = vector.broadcast %22 : vector<1x128xf32> to vector<32x128xf32>
    %24 = arith.addf %21, %23 : vector<32x128xf32>
    %25 = arith.truncf %24 : vector<32x128xf32> to vector<32x128xbf16>
    %c0_9 = arith.constant 0 : index
    %c0_10 = arith.constant 0 : index
    %26 = vector.load %arg5[%c0_9, %c0_10] : memref<128x384xbf16, #tpu.memory_space<vmem>>, vector<128x384xbf16>
    %cst_11 = arith.constant dense<0.000000e+00> : vector<32x384xf32>
    %27 = tpu.matmul %25, %26, %cst_11 {dimension_numbers = #tpu.dot_dimension_numbers<[1], [0], [0], [1], [0, 0, 1, 1], [], []>} : vector<32x128xbf16>, vector<128x384xbf16>, vector<32x384xf32> -> vector<32x384xf32>
    %c0_12 = arith.constant 0 : index
    %c0_13 = arith.constant 0 : index
    %28 = vector.load %arg6[%c0_12, %c0_13] : memref<1x384xf32, #tpu.memory_space<vmem>>, vector<1x384xf32>
    %29 = vector.broadcast %28 : vector<1x384xf32> to vector<32x384xf32>
    %30 = arith.addf %27, %29 : vector<32x384xf32>
    %31 = vector.extract_strided_slice %30 {offsets = [0, 0], sizes = [32, 128], strides = [1, 1]} : vector<32x384xf32> to vector<32x128xf32>
    %32 = vector.extract_strided_slice %30 {offsets = [0, 128], sizes = [32, 128], strides = [1, 1]} : vector<32x384xf32> to vector<32x128xf32>
    %33 = vector.extract_strided_slice %30 {offsets = [0, 256], sizes = [32, 128], strides = [1, 1]} : vector<32x384xf32> to vector<32x128xf32>
    %34 = vector.shape_cast %31 : vector<32x128xf32> to vector<2x16x8x16xf32>
    %35 = tpu.transpose %34, [0, 2, 1, 3] : vector<2x16x8x16xf32> -> vector<2x8x16x16xf32>
    %36 = vector.shape_cast %35 : vector<2x8x16x16xf32> to vector<16x16x16xf32>
    %37 = arith.truncf %36 : vector<16x16x16xf32> to vector<16x16x16xbf16>
    %38 = vector.shape_cast %32 : vector<32x128xf32> to vector<2x16x8x16xf32>
    %39 = tpu.transpose %38, [0, 2, 1, 3] : vector<2x16x8x16xf32> -> vector<2x8x16x16xf32>
    %40 = vector.shape_cast %39 : vector<2x8x16x16xf32> to vector<16x16x16xf32>
    %41 = arith.truncf %40 : vector<16x16x16xf32> to vector<16x16x16xbf16>
    %42 = vector.shape_cast %33 : vector<32x128xf32> to vector<2x16x8x16xf32>
    %43 = tpu.transpose %42, [0, 2, 1, 3] : vector<2x16x8x16xf32> -> vector<2x8x16x16xf32>
    %44 = vector.shape_cast %43 : vector<2x8x16x16xf32> to vector<16x16x16xf32>
    %45 = arith.truncf %44 : vector<16x16x16xf32> to vector<16x16x16xbf16>
    "tpu.trace_start"() <{level = 10 : i32, message = "bqd,bkd->bqk"}> : () -> ()
    %cst_14 = arith.constant dense<0.000000e+00> : vector<16x16x16xf32>
    %46 = tpu.matmul %37, %41, %cst_14 {dimension_numbers = #tpu.dot_dimension_numbers<[2], [2], [1], [1], [0, 0, 0, 1, 1, 1], [0], [0]>} : vector<16x16x16xbf16>, vector<16x16x16xbf16>, vector<16x16x16xf32> -> vector<16x16x16xf32>
    "tpu.trace_stop"() : () -> ()
    %cst_15 = arith.constant 2.500000e-01 : f32
    %47 = vector.broadcast %cst_15 : f32 to vector<16x16x16xf32>
    %48 = arith.mulf %46, %47 : vector<16x16x16xf32>
    %49 = vector.shape_cast %48 : vector<16x16x16xf32> to vector<2x8x16x16xf32>
    %c0_16 = arith.constant 0 : index
    %c0_17 = arith.constant 0 : index
    %c0_18 = arith.constant 0 : index
    %50 = vector.load %arg2[%c0_16, %c0_17, %c0_18] : memref<2x1x16xf32, #tpu.memory_space<vmem>>, vector<2x1x16xf32>
    %51 = vector.shape_cast %50 : vector<2x1x16xf32> to vector<2x1x1x16xf32>
    %52 = vector.broadcast %51 : vector<2x1x1x16xf32> to vector<2x8x16x16xf32>
    %53 = arith.addf %49, %52 : vector<2x8x16x16xf32>
    %cst_19 = arith.constant dense<0xFF800000> : vector<2x8x16xf32>
    %54 = vector.multi_reduction <maximumf>, %53, %cst_19 [3] : vector<2x8x16x16xf32> to vector<2x8x16xf32>
    %55 = vector.shape_cast %54 : vector<2x8x16xf32> to vector<2x8x16x1xf32>
    %56 = vector.broadcast %55 : vector<2x8x16x1xf32> to vector<2x8x16x16xf32>
    %57 = arith.subf %53, %56 : vector<2x8x16x16xf32>
    %58 = math.exp %57 : vector<2x8x16x16xf32>
    %cst_20 = arith.constant dense<0.000000e+00> : vector<2x8x16xf32>
    %59 = vector.multi_reduction <add>, %58, %cst_20 [3] : vector<2x8x16x16xf32> to vector<2x8x16xf32>
    %60 = vector.shape_cast %59 : vector<2x8x16xf32> to vector<2x8x16x1xf32>
    %61 = tpu.reciprocal %60 {approx = true} : vector<2x8x16x1xf32> -> vector<2x8x16x1xf32>
    %62 = vector.broadcast %61 : vector<2x8x16x1xf32> to vector<2x8x16x16xf32>
    %63 = arith.mulf %58, %62 : vector<2x8x16x16xf32>
    %64 = vector.shape_cast %63 : vector<2x8x16x16xf32> to vector<16x16x16xf32>
    %65 = arith.truncf %64 : vector<16x16x16xf32> to vector<16x16x16xbf16>
    "tpu.trace_start"() <{level = 10 : i32, message = "bqk,bkd->bqd"}> : () -> ()
    %cst_21 = arith.constant dense<0.000000e+00> : vector<16x16x16xf32>
    %66 = tpu.matmul %65, %45, %cst_21 {dimension_numbers = #tpu.dot_dimension_numbers<[2], [1], [1], [2], [0, 0, 0, 1, 1, 2], [0], [0]>} : vector<16x16x16xbf16>, vector<16x16x16xbf16>, vector<16x16x16xf32> -> vector<16x16x16xf32>
    "tpu.trace_stop"() : () -> ()
    %67 = vector.shape_cast %66 : vector<16x16x16xf32> to vector<2x8x16x16xf32>
    %68 = tpu.transpose %67, [0, 2, 1, 3] : vector<2x8x16x16xf32> -> vector<2x16x8x16xf32>
    %69 = vector.shape_cast %68 : vector<2x16x8x16xf32> to vector<32x128xf32>
    %70 = arith.truncf %69 : vector<32x128xf32> to vector<32x128xbf16>
    %c0_22 = arith.constant 0 : index
    %c0_23 = arith.constant 0 : index
    %71 = vector.load %arg7[%c0_22, %c0_23] : memref<128x128xbf16, #tpu.memory_space<vmem>>, vector<128x128xbf16>
    %cst_24 = arith.constant dense<0.000000e+00> : vector<32x128xf32>
    %72 = tpu.matmul %70, %71, %cst_24 {dimension_numbers = #tpu.dot_dimension_numbers<[1], [0], [0], [1], [0, 0, 1, 1], [], []>} : vector<32x128xbf16>, vector<128x128xbf16>, vector<32x128xf32> -> vector<32x128xf32>
    %c0_25 = arith.constant 0 : index
    %c0_26 = arith.constant 0 : index
    %73 = vector.load %arg8[%c0_25, %c0_26] : memref<1x128xf32, #tpu.memory_space<vmem>>, vector<1x128xf32>
    %74 = vector.broadcast %73 : vector<1x128xf32> to vector<32x128xf32>
    %75 = arith.addf %72, %74 : vector<32x128xf32>
    %c0_27 = arith.constant 0 : index
    %c0_28 = arith.constant 0 : index
    %76 = vector.load %arg9[%c0_27, %c0_28] : memref<32x128xf32, #tpu.memory_space<vmem>>, vector<32x128xf32>
    tpu.vector_store %arg9[%c0_27, %c0_28], %75 {strides = array<i32>} : memref<32x128xf32, #tpu.memory_space<vmem>>, vector<32x128xf32>,
    return
  }
  func.func @transform_0(%arg0: i32) -> (i32, i32) {
    %c0_i32 = arith.constant 0 : i32
    %c0_i32_0 = arith.constant 0 : i32
    return %arg0, %c0_i32 : i32, i32
  }
  func.func @transform_1(%arg0: i32) -> (i32, i32, i32) {
    %c0_i32 = arith.constant 0 : i32
    %c0_i32_0 = arith.constant 0 : i32
    %c0_i32_1 = arith.constant 0 : i32
    return %arg0, %c0_i32, %c0_i32_0 : i32, i32, i32
  }
  func.func @transform_2(%arg0: i32) -> (i32, i32) {
    %c0_i32 = arith.constant 0 : i32
    %c0_i32_0 = arith.constant 0 : i32
    %c0_i32_1 = arith.constant 0 : i32
    return %c0_i32, %c0_i32_0 : i32, i32
  }
  func.func @transform_3(%arg0: i32) -> (i32, i32) {
    %c0_i32 = arith.constant 0 : i32
    %c0_i32_0 = arith.constant 0 : i32
    %c0_i32_1 = arith.constant 0 : i32
    return %c0_i32, %c0_i32_0 : i32, i32
  }
  func.func @transform_4(%arg0: i32) -> (i32, i32) {
    %c0_i32 = arith.constant 0 : i32
    %c0_i32_0 = arith.constant 0 : i32
    %c0_i32_1 = arith.constant 0 : i32
    return %c0_i32, %c0_i32_0 : i32, i32
  }
  func.func @transform_5(%arg0: i32) -> (i32, i32) {
    %c0_i32 = arith.constant 0 : i32
    %c0_i32_0 = arith.constant 0 : i32
    %c0_i32_1 = arith.constant 0 : i32
    return %c0_i32, %c0_i32_0 : i32, i32
  }
  func.func @transform_6(%arg0: i32) -> (i32, i32) {
    %c0_i32 = arith.constant 0 : i32
    %c0_i32_0 = arith.constant 0 : i32
    %c0_i32_1 = arith.constant 0 : i32
    return %c0_i32, %c0_i32_0 : i32, i32
  }
  func.func @transform_7(%arg0: i32) -> (i32, i32) {
    %c0_i32 = arith.constant 0 : i32
    %c0_i32_0 = arith.constant 0 : i32
    %c0_i32_1 = arith.constant 0 : i32
    return %c0_i32, %c0_i32_0 : i32, i32
  }
  func.func @transform_8(%arg0: i32) -> (i32, i32) {
    %c0_i32 = arith.constant 0 : i32
    %c0_i32_0 = arith.constant 0 : i32
    return %arg0, %c0_i32 : i32, i32
  }
}

</mosaic_0001>

<bundles_post_ra>
// kernel: tpu_custom_call.1
= control target key start
LH: loop header
LB: loop body
LE: loop exit
PB: predicated region body
PF: predicated region fallthrough
CT: control target
= control target key end

     0   :  { %13 = vsyncpa [#allocation3], 0  ;;  %s10648_s0 = inlined_call_operand.hbm [shape: f32[32,128], index: 0, kind: input, shape index: {}]   ;;  %s10649_s1 = inlined_call_operand.hbm [shape: f32[2,1,16], index: 1, kind: input, shape index: {}]   ;;  %s10650_s2 = inlined_call_operand.vmem [shape: f32[1,128], index: 2, kind: input, shape index: {}]   ;;  %s10651_s3 = inlined_call_operand.vmem [shape: f32[1,128], index: 3, kind: input, shape index: {}]   ;;  %s10652_s4 = inlined_call_operand.hbm [shape: bf16[128,384], index: 4, kind: input, shape index: {}]   ;;  %s10653_s5 = inlined_call_operand.vmem [shape: f32[1,384], index: 5, kind: input, shape index: {}]   ;;  %s10654_s6 = inlined_call_operand.hbm [shape: bf16[128,128], index: 6, kind: input, shape index: {}]   ;;  %s10655_s7 = inlined_call_operand.vmem [shape: f32[1,128], index: 7, kind: input, shape index: {}]   ;;  %s10656_s8 = inlined_call_operand.hbm [shape: f32[32,128], index: 8, kind: output, shape index: {}]  }
   0x1   :  { %14 = vsyncpa [#allocation6], 0 }
   0x2   :  { %15 = vsyncpa [#allocation9], 0 }
   0x3   :  { %16 = vsyncpa [#allocation4], 0  ;;  %s8194_s27 = smov [#allocation5]  }
   0x4   :  { %s34_s28 = sshll.u32 %s8194_s27, 4  ;;  %s35_s28 = int_to_ptr.vmem [resolvable:$true] %s34_s28 }
   0x5   :  { %s8094_s29 = scalar_lea.vmem %s35_s28, 32  ;;  %p8099_p1 = scmp.lt.s32.totalorder %s35_s28, %s35_s28 }
   0x6   :  { %p8095_p0 = scmp.ne.s32.totalorder %s35_s28, %s8094_s29  ;;  %p8100_p2 = scmp.lt.s32.totalorder %s8094_s29, %s8094_s29 }
   0x8   :  { %p8101_p3 = por %p8100_p2, %p8099_p1 }
   0xa   :  { %p8102_p4 = pnand %p8101_p3, %p8095_p0 }
   0xc   :  { %8105 = shalt.err (!%p8102_p4)
}
   0xd   :  { %s8195_s30 = smov 16   ;;  %s8196_s9 = smov 1  }
   0xe   :  { %40 = dma.hbm_to_vmem [thread:$0]  %s10649_s1, 32, %s35_s28, [#allocation6], %s8195_s30, %s8195_s30, %s8196_s9  }
   0xf   :  { %s8197_s12 = smov [#allocation2]  }
  0x10   :  { %s22_s13 = sshll.u32 %s8197_s12, 4  ;;  %s23_s13 = int_to_ptr.vmem [resolvable:$true] %s22_s13 }
  0x11   :  { %s8114_s14 = scalar_lea.vmem %s23_s13, 512  ;;  %p8119_p6 = scmp.lt.s32.totalorder %s23_s13, %s23_s13 }
  0x12   :  { %p8115_p5 = scmp.ne.s32.totalorder %s23_s13, %s8114_s14  ;;  %p8120_p7 = scmp.lt.s32.totalorder %s8114_s14, %s8114_s14 }
  0x14   :  { %p8121_p8 = por %p8120_p7, %p8119_p6 }
  0x16   :  { %p8122_p9 = pnand %p8121_p8, %p8115_p5 }
  0x18   :  { %8125 = shalt.err (!%p8122_p9)
}
  0x19   :  { %s8198_s15 = smov 128   ;;  %s8199_s16 = smov 8  }
  0x1a   :  { %28 = dma.hbm_to_vmem [thread:$0]  %s10648_s0, 512, %s23_s13, [#allocation3], %s8198_s15, %s8198_s15, %s8199_s16  }
  0x1b   :  { %s8200_s1 = smov [#allocation7]  }
  0x1c   :  { %s50_s19 = sshll.u32 %s8200_s1, 4  ;;  %s51_s19 = int_to_ptr.vmem [resolvable:$true] %s50_s19 }
  0x1d   :  { %s8134_s20 = scalar_lea.vmem %s51_s19, 3072  ;;  %p8139_p11 = scmp.lt.s32.totalorder %s51_s19, %s51_s19 }
  0x1e   :  { %p8135_p10 = scmp.ne.s32.totalorder %s51_s19, %s8134_s20  ;;  %p8140_p12 = scmp.lt.s32.totalorder %s8134_s20, %s8134_s20 }
  0x20   :  { %p8141_p13 = por %p8140_p12, %p8139_p11 }
  0x22   :  { %p8142_p0 = pnand %p8141_p13, %p8135_p10 }
  0x24   :  { %8145 = shalt.err (!%p8142_p0)
}
  0x25   :  { %s8201_s21 = smov 192   ;;  %s8202_s22 = smov 12  }
  0x26   :  { %56 = dma.hbm_to_vmem [thread:$0]  %s10652_s4, 3072, %s51_s19, [#allocation6], %s8201_s21, %s8201_s21, %s8202_s22  }
  0x27   :  { %s8203_s25 = smov [#allocation8]  }
  0x28   :  { %s64_s26 = sshll.u32 %s8203_s25, 4  ;;  %s65_s26 = int_to_ptr.vmem [resolvable:$true] %s64_s26 }
  0x29   :  { %s8154_s0 = scalar_lea.vmem %s65_s26, 1024  ;;  %p8159_p2 = scmp.lt.s32.totalorder %s65_s26, %s65_s26 }
  0x2a   :  { %p8155_p1 = scmp.ne.s32.totalorder %s65_s26, %s8154_s0  ;;  %p8160_p3 = scmp.lt.s32.totalorder %s8154_s0, %s8154_s0 }
  0x2c   :  { %p8161_p4 = por %p8160_p3, %p8159_p2 }
  0x2e   :  { %p8162_p5 = pnand %p8161_p4, %p8155_p1 }
  0x30   :  { %8165 = shalt.err (!%p8162_p5)
}
  0x31   :  { %s8204_s27 = smov 64   ;;  %s8205_s28 = smov 4  }
  0x32   :  { %70 = dma.hbm_to_vmem [thread:$0]  %s10654_s6, 1024, %s65_s26, [#allocation9], %s8204_s27, %s8204_s27, %s8205_s28  }
  0x33   :  { %8186 = dma.done.wait [#allocation3], 512  }
  0x34   :  { %8187 = vsyncadd [#allocation3], 4294966784 }
  0x35   :  { %8188 = dma.done.wait [#allocation6], 3104  }
  0x36   :  { %8189 = vsyncadd [#allocation6], 4294964192 }
  0x37   :  { %8190 = dma.done.wait [#allocation9], 1024  }
  0x38   :  { %8191 = vsyncadd [#allocation9], 4294966272  ;;  %v8281_v0 = vld [vmem:[#allocation2] sm:$0xff]  ;;  %v8283_v1 = vld [vmem:[#allocation2 + $0x8] sm:$0xff]  ;;  %v8206_v19 = vmov 0   ;;  %s8207_s12 = smov 112  }
  0x39   :  { %90 = vadd.xlane.f32.xlu0 %v8281_v0  ;;  %v103_v2 = vmul.f32 %v8281_v0, %v8281_v0  ;;  %v104_v3 = vmul.f32 %v8283_v1, %v8283_v1  ;;  %v8290_v4 = vld [vmem:[#allocation2 + $0x10] sm:$0xff]  ;;  %v8293_v5 = vld [vmem:[#allocation2 + $0x18] sm:$0xff]  ;;  %376 = vmatprep.mubr.bf16.mxu0 %v8206_v19  ;;  %s8209_s13 = smov 80   ;;  %s8210_s14 = smov 48   ;;  %vm8213_vm0 = vmmov 0   ;;  %vm4022_vm1 = vcmask 130048  }
  0x3a   :  { %v105_v6 = vmul.f32 %v8290_v4, %v8290_v4  ;;  %v106_v7 = vmul.f32 %v8293_v5, %v8293_v5  ;;  %v7910_v8 = vld [vmem:[#allocation7 + $0xac] ss:$12 sps:$4 sm:$0xff]   ;;  %v7912_v9 = vld [vmem:[#allocation7 + $0xa8] ss:$12 sps:$4 sm:$0xff]   ;;  %v7915_v11 = vld [vmem:[#allocation7 + $0x90] ss:$12 sps:$4 sm:$0xff]  }
  0x3b   :  { %107 = vadd.xlane.f32.xlu1 %v103_v2  ;;  %344 = vmatprep.subr.bf16.mxu0 %v7910_v8  ;;  %v7913_v10 = vld [vmem:[#allocation7 + $0x94] ss:$12 sps:$4 sm:$0xff]   ;;  %v7916_v12 = vld [vmem:[#allocation7 + $0x7c] ss:$12 sps:$4 sm:$0xff]   ;;  %v7918_v13 = vld [vmem:[#allocation7 + $0x78] ss:$12 sps:$4 sm:$0xff]  }
  0x3c   :  { %345 = vmatpush1.bf16.msra.mxu0 %v7912_v9  ;;  %v7919_v14 = vld [vmem:[#allocation7 + $0x64] ss:$12 sps:$4 sm:$0xff]   ;;  %v7921_v15 = vld [vmem:[#allocation7 + $0x60] ss:$12 sps:$4 sm:$0xff]   ;;  %v7924_v17 = vld [vmem:[#allocation7 + $0x48] ss:$12 sps:$4 sm:$0xff]  }
  0x3d   :  { %92 = vadd.xlane.f32.xlu0 %v8283_v1  ;;  %346 = vmatprep.subr.bf16.mxu0 %v7913_v10  ;;  %v7922_v16 = vld [vmem:[#allocation7 + $0x4c] ss:$12 sps:$4 sm:$0xff]   ;;  %v7925_v18 = vld [vmem:[#allocation7 + $0x34] ss:$12 sps:$4 sm:$0xff]   ;;  %v7927_v20 = vld [vmem:[#allocation7 + $0x30] ss:$12 sps:$4 sm:$0xff]  }
  0x3e   :  { %v7928_v21 = vld [vmem:[#allocation7 + $0x1c] ss:$12 sps:$4 sm:$0xff]   ;;  %v7930_v22 = vld [vmem:[#allocation7 + $0x18] ss:$12 sps:$4 sm:$0xff]   ;;  %v7933_v24 = vld [vmem:[#allocation7] ss:$12 sps:$4 sm:$0xff]  }
  0x3f   :  { %109 = vadd.xlane.f32.xlu1 %v104_v3  ;;  %v7931_v23 = vld [vmem:[#allocation7 + $0x4] ss:$12 sps:$4 sm:$0xff]   ;;  %v7936_v27 = vld [vmem:[#allocation7 + $0x80] ss:$12 sps:$4 sm:$0xff]   ;;  %v7937_v28 = vld [vmem:[#allocation7 + $0x68] ss:$12 sps:$4 sm:$0xff]  }
  0x40   :  { %347 = vmatpush1.bf16.msra.mxu0 %v7915_v11  ;;  %v7934_v25 = vld [vmem:[#allocation7 + $0xb0] ss:$12 sps:$4 sm:$0xff]   ;;  %v7935_v26 = vld [vmem:[#allocation7 + $0x98] ss:$12 sps:$4 sm:$0xff]   ;;  %v7940_v31 = vld [vmem:[#allocation7 + $0x20] ss:$12 sps:$4 sm:$0xff]  }
  0x41   :  { %94 = vadd.xlane.f32.xlu0 %v8290_v4  ;;  %348 = vmatprep.subr.bf16.mxu0 %v7916_v12  ;;  %v7938_v29 = vld [vmem:[#allocation7 + $0x50] ss:$12 sps:$4 sm:$0xff]   ;;  %v7939_v30 = vld [vmem:[#allocation7 + $0x38] ss:$12 sps:$4 sm:$0xff]   ;;  %v7941_v32 = vld [vmem:[#allocation7 + $0x8] ss:$12 sps:$4 sm:$0xff]  }
  0x42   :  { %7585 = vmatprep.subr.bf16.mxu1 %v7934_v25  ;;  %v7304_v2 = vld [vmem:[%s10650_s2] ss:$0 sm:$0xff]  ;;  %s8211_s17 = smov 32   ;;  %vm7129_vm2 = vcmask 261120   ;;  %vm7134_vm3 = vcmask 392192   ;;  %vm7139_vm4 = vcmask 523264  }
  0x43   :  { %96 = vadd.xlane.f32.xlu1 %v8293_v5  ;;  %7586 = vmatpush3.bf16.msra.mxu1 %v7934_v25  ;;  %v7305_v9 = vld [vmem:[%s10651_s3] ss:$0 sm:$0xff]  ;;  %vm7144_vm5 = vcmask 654336   ;;  %vm7149_vm6 = vcmask 785408   ;;  %vm7154_vm7 = vcmask 916480   ;;  %s8216_s1 = smov [#allocation10]  }
  0x44   :  { %349 = vmatpush1.bf16.msra.mxu0 %v7918_v13  ;;  %7587 = vmatprep.subr.bf16.mxu1 %v7935_v26  ;;  %v8319_v25 = vld [vmem:[%s10653_s5] sm:$0x7]  ;;  %s8208_s5 = smov 96   ;;  %s7290_s19 = sshll.u32 %s8216_s1, 4  ;;  %s7291_s19 = int_to_ptr.vmem [resolvable:$true] %s7290_s19 }
  0x45   :  { %111 = vadd.xlane.f32.xlu0 %v105_v6  ;;  %350 = vmatprep.subr.bf16.mxu0 %v7919_v14  ;;  %s8166_s20 = scalar_lea.vmem %s7291_s19, 512  ;;  %p8171_p7 = scmp.lt.s32.totalorder %s7291_s19, %s7291_s19 }
  0x46   :  { %p8167_p6 = scmp.ne.s32.totalorder %s7291_s19, %s8166_s20  ;;  %p8172_p8 = scmp.lt.s32.totalorder %s8166_s20, %s8166_s20 }
  0x47   :  { %113 = vadd.xlane.f32.xlu1 %v106_v7  ;;  %7588 = vmatpush3.bf16.msra.mxu1 %v7935_v26 }
  0x48   :  { %351 = vmatpush1.bf16.msra.mxu0 %v7921_v15  ;;  %7589 = vmatprep.subr.bf16.mxu1 %v7936_v27  ;;  %p8173_p9 = por %p8172_p8, %p8171_p7 }
  0x49   :  { %352 = vmatprep.subr.bf16.mxu0 %v7922_v16 }
  0x4a   :  { %p8174_p10 = pnand %p8173_p9, %p8167_p6 }
  0x4b   :  { %7590 = vmatpush3.bf16.msra.mxu1 %v7936_v27 }
  0x4c   :  { %353 = vmatpush1.bf16.msra.mxu0 %v7924_v17  ;;  %7591 = vmatprep.subr.bf16.mxu1 %v7937_v28 }
  0x4d   :  { %354 = vmatprep.subr.bf16.mxu0 %v7925_v18 }
  0x4f   :  { %7592 = vmatpush3.bf16.msra.mxu1 %v7937_v28 }
  0x50   :  { %355 = vmatpush1.bf16.msra.mxu0 %v7927_v20  ;;  %7593 = vmatprep.subr.bf16.mxu1 %v7938_v29 }
  0x51   :  { %356 = vmatprep.subr.bf16.mxu0 %v7928_v21 }
  0x53   :  { %7594 = vmatpush3.bf16.msra.mxu1 %v7938_v29 }
  0x54   :  { %357 = vmatpush1.bf16.msra.mxu0 %v7930_v22  ;;  %7595 = vmatprep.subr.bf16.mxu1 %v7939_v30 }
  0x55   :  { %358 = vmatprep.subr.bf16.mxu0 %v7931_v23 }
  0x57   :  { %7596 = vmatpush3.bf16.msra.mxu1 %v7939_v30 }
  0x58   :  { %359 = vmatpush1.bf16.msra.mxu0 %v7933_v24  ;;  %7597 = vmatprep.subr.bf16.mxu1 %v7940_v31 }
  0x5b   :  { %7598 = vmatpush3.bf16.msra.mxu1 %v7940_v31 }
  0x5c   :  { %7599 = vmatprep.subr.bf16.mxu1 %v7941_v32 }
  0x5f   :  { %7600 = vmatpush3.bf16.msra.mxu1 %v7941_v32 }
  0xc2   :  { %v91_v33 = vpop.xlane.xlu0 %90 }
  0xc3   :  { %v99_v34 = vmul.f32 0.0078125, %v91_v33 }
  0xc4   :  { %v108_v35 = vpop.xlane.xlu1 %107 }
  0xc5   :  { %v123_v36 = vmul.f32 %v99_v34, %v99_v34  ;;  %v115_v37 = vmul.f32 0.0078125, %v108_v35  ;;  %v119_v61 = vsub.f32 %v8281_v0, %v99_v34 }
  0xc6   :  { %v93_v38 = vpop.xlane.xlu0 %92 }
  0xc7   :  { %v127_v39 = vsub.f32 %v115_v37, %v123_v36  ;;  %v100_v40 = vmul.f32 0.0078125, %v93_v38  ;;  %v10657_v38 = vmov 0.0  }
  0xc8   :  { %v110_v41 = vpop.xlane.xlu1 %109  ;;  %7605 = vmatprep.subr.bf16.mxu0 %v10657_v38  ;;  %7617 = vmatprep.subr.bf16.mxu1 %v10657_v38 }
  0xc9   :  { %v131_v42 = vadd.f32 1e-05, %v127_v39  ;;  %v124_v43 = vmul.f32 %v100_v40, %v100_v40  ;;  %v116_v44 = vmul.f32 0.0078125, %v110_v41  ;;  %v120_v3 = vsub.f32 %v8283_v1, %v100_v40 }
  0xca   :  { %v95_v45 = vpop.xlane.xlu0 %94 }
  0xcb   :  { %7950 = vrsqrt.f32 %v131_v42  ;;  %v128_v46 = vsub.f32 %v116_v44, %v124_v43  ;;  %v101_v47 = vmul.f32 0.0078125, %v95_v45 }
  0xcc   :  { %v97_v48 = vpop.xlane.xlu1 %96 }
  0xcd   :  { %v132_v49 = vadd.f32 1e-05, %v128_v46  ;;  %v125_v50 = vmul.f32 %v101_v47, %v101_v47  ;;  %v102_v51 = vmul.f32 0.0078125, %v97_v48  ;;  %v121_v10 = vsub.f32 %v8290_v4, %v101_v47 }
  0xce   :  { %v112_v52 = vpop.xlane.xlu0 %111  ;;  %v201_v4 = vlaneseq }
  0xcf   :  { %7952 = vrsqrt.f32 %v132_v49  ;;  %v126_v53 = vmul.f32 %v102_v51, %v102_v51  ;;  %v117_v54 = vmul.f32 0.0078125, %v112_v52  ;;  %v122_v0 = vsub.f32 %v8293_v5, %v102_v51 }
  0xd0   :  { %v114_v55 = vpop.xlane.xlu1 %113  ;;  %v8313_v5 = vshrl.u32 %v201_v4, 7 }
  0xd1   :  { %v129_v56 = vsub.f32 %v117_v54, %v125_v50  ;;  %v118_v57 = vmul.f32 0.0078125, %v114_v55  ;;  %v8215_v55 = vmov 1934713408  }
  0xd2   :  { %v203_v24 = vsub.s32 0, %v8313_v5  ;;  %v207_v26 = vsub.s32 1, %v8313_v5  ;;  %v211_v45 = vsub.s32 2, %v8313_v5 }
  0xd3   :  { %v133_v58 = vadd.f32 1e-05, %v129_v56  ;;  %v130_v59 = vsub.f32 %v118_v57, %v126_v53  ;;  %v8214_v53 = vmov 1983009808   ;;  %v601_v56 = vunpack.c.l.s4 %v8215_v55 }
  0xd4   :  { %v8324_v27 = vrot.slane %v8319_v25, %v207_v26  ;;  %v8456_v47 = vrot.slane %v8319_v25, %v211_v45  ;;  %v537_v54 = vunpack.c.l.s4 %v8214_v53 }
  0xd5   :  { %7954 = vrsqrt.f32 %v133_v58  ;;  %v134_v60 = vadd.f32 1e-05, %v130_v59 }
  0xd7   :  { %7956 = vrsqrt.f32 %v134_v60  ;;  %v538_v60 = vunpack.c.0.s8 %v537_v54 }
  0xd8   :  { %v7951_v62 = vpop.eup %7950 }
  0xd9   :  { %v139_v63 = vmul.f32 %v7951_v62, %v119_v61  ;;  %v602_v61 = vunpack.c.0.s8 %v601_v56 }
  0xdb   :  { %v150_v8 = vmul.f32 %v7304_v2, %v139_v63 }
  0xdc   :  { %v7953_v6 = vpop.eup %7952 }
  0xdd   :  { %v140_v7 = vmul.f32 %v7953_v6, %v120_v3  ;;  %v161_v12 = vadd.f32 %v7305_v9, %v150_v8  ;;  %v8493_v6 = vsub.s32 %v538_v60, %v8313_v5 }
  0xdf   :  { %v151_v11 = vmul.f32 %v7304_v2, %v140_v7 }
  0xe1   :  { %v162_v13 = vadd.f32 %v7305_v9, %v151_v11 }
  0xe2   :  { %v7955_v14 = vpop.eup %7954 }
  0xe3   :  { %v165_v15 = vpack.c.bf16 %v162_v13, %v161_v12  ;;  %v141_v16 = vmul.f32 %v7955_v14, %v121_v10 }
  0xe4   :  { %v7957_v17 = vpop.eup %7956 }
  0xe5   :  { %377 = vmatmul.mubr.bf16.vlgmr.msra.gmra.mxu0 %v165_v15  ;;  %7601 = vmatprep.mubr.bf16.mxu1 %v165_v15  ;;  %v142_v1 = vmul.f32 %v7957_v17, %v122_v0  ;;  %v152_v18 = vmul.f32 %v7304_v2, %v141_v16 }
  0xe6   :  { %386 = vmatprep.mubr.bf16.mxu0 %v8206_v19  ;;  %v204_v19 = vrot.slane %v8319_v25, %v203_v24 }
  0xe7   :  { %v153_v20 = vmul.f32 %v7304_v2, %v142_v1  ;;  %v163_v21 = vadd.f32 %v7305_v9, %v152_v18 }
  0xe9   :  { %v164_v22 = vadd.f32 %v7305_v9, %v153_v20  ;;  %v8496_v9 = vsub.s32 %v602_v61, %v8313_v5 }
  0xeb   :  { %v166_v23 = vpack.c.bf16 %v164_v22, %v163_v21 }
  0xed   :  { %387 = vmatmul.mubr.bf16.gmra.mxu0 %v166_v23  ;;  %7602 = vmatmul.mubr.bf16.vlgmr.msra.gmra.mxu1 %v166_v23 }
  0xee   :  { %7607 = vmatprep.mubr.msk.bf16.mxu0 %vm8213_vm0, %v10657_v38  ;;  %7619 = vmatprep.mubr.msk.bf16.mxu1 %vm8213_vm0, %v10657_v38 }
 0x1a5   :  { %v378_v28 = vpop.f32.mrf.mxu0 }
 0x1a6   :  { %v8326_v29 = vadd.f32 %v378_v28, %v204_v19 }
 0x1a7   :  { %v380_v30 = vpop.f32.mrf.mxu0 }
 0x1a8   :  { %v8329_v31 = vadd.f32 %v380_v30, %v8324_v27  ;;  %450 = vrot.lane.b32.xlu0 %v8326_v29, %s8207_s12 }
 0x1a9   :  { %v382_v32 = vpop.f32.mrf.mxu0 }
 0x1aa   :  { %1654 = vrot.lane.b32.xlu1 %v8329_v31, %s8208_s5  ;;  %v8335_v33 = vadd.f32 %v382_v32, %v204_v19 }
 0x1ab   :  { %v384_v34 = vpop.f32.mrf.mxu0 }
 0x1ac   :  { %462 = vrot.lane.b32.xlu0 %v8326_v29, %s8208_s5  ;;  %v8366_v35 = vadd.f32 %v384_v34, %v8324_v27 }
 0x1ad   :  { %v388_v36 = vpop.f32.mrf.mxu0  ;;  %v7603_v46 = vpop.f32.mrf.mxu1 }
 0x1ae   :  { %452 = vrot.lane.b32.xlu1 %v8335_v33, %s8207_s12  ;;  %v8386_v37 = vadd.f32 %v388_v36, %v204_v19  ;;  %v8505_v14 = vadd.f32 %v7603_v46, %v8456_v47 }
 0x1af   :  { %v390_v39 = vpop.f32.mrf.mxu0  ;;  %v431_v48 = vpop.f32.mrf.mxu1 }
 0x1b0   :  { %474 = vrot.lane.b32.xlu0 %v8326_v29, %s8209_s13  ;;  %v8417_v42 = vadd.f32 %v390_v39, %v8324_v27  ;;  %v8463_v49 = vadd.f32 %v431_v48, %v8456_v47  ;;  %10671 = vst [vmem:[#allocation17_spill] sm:$0xff] %v8505_v14 }
 0x1b1   :  { %v392_v40 = vpop.f32.mrf.mxu0  ;;  %v8469_v50 = vpop.f32.mrf.mxu1 }
 0x1b2   :  { %464 = vrot.lane.b32.xlu1 %v8335_v33, %s8208_s5  ;;  %v8400_v41 = vadd.f32 %v392_v40, %v204_v19  ;;  %10669 = vst [vmem:[#allocation15_spill] sm:$0xff] %v8463_v49 }
 0x1b3   :  { %v394_v43 = vpop.f32.mrf.mxu0  ;;  %v434_v51 = vpop.f32.mrf.mxu1 }
 0x1b4   :  { %486 = vrot.lane.b32.xlu0 %v8326_v29, %s8204_s27  ;;  %v8430_v44 = vadd.f32 %v394_v43, %v8324_v27  ;;  %v8478_v57 = vadd.f32 %v434_v51, %v8456_v47 }
 0x1b6   :  { %476 = vrot.lane.b32.xlu1 %v8335_v33, %s8209_s13  ;;  %10670 = vst [vmem:[#allocation16_spill] sm:$0xff] %v8478_v57 }
 0x1b8   :  { %498 = vrot.lane.b32.xlu0 %v8326_v29, %s8210_s14 }
 0x1ba   :  { %488 = vrot.lane.b32.xlu1 %v8335_v33, %s8204_s27 }
 0x1bc   :  { %510 = vrot.lane.b32.xlu0 %v8326_v29, %s8211_s17 }
 0x1be   :  { %500 = vrot.lane.b32.xlu1 %v8335_v33, %s8210_s14 }
 0x1c0   :  { %522 = vrot.lane.b32.xlu0 %v8326_v29, %s8195_s30 }
 0x1c2   :  { %512 = vrot.lane.b32.xlu1 %v8335_v33, %s8211_s17 }
 0x1c4   :  { %1642 = vrot.lane.b32.xlu0 %v8329_v31, %s8207_s12 }
 0x1c6   :  { %524 = vrot.lane.b32.xlu1 %v8335_v33, %s8195_s30 }
 0x1c8   :  { %1666 = vrot.lane.b32.xlu0 %v8329_v31, %s8209_s13 }
 0x1ca   :  { %1644 = vrot.lane.b32.xlu1 %v8366_v35, %s8207_s12 }
 0x1cc   :  { %1678 = vrot.lane.b32.xlu0 %v8329_v31, %s8204_s27 }
 0x1ce   :  { %1656 = vrot.lane.b32.xlu1 %v8366_v35, %s8208_s5 }
 0x1d0   :  { %1690 = vrot.lane.b32.xlu0 %v8329_v31, %s8210_s14 }
 0x1d2   :  { %1668 = vrot.lane.b32.xlu1 %v8366_v35, %s8209_s13 }
 0x1d4   :  { %1702 = vrot.lane.b32.xlu0 %v8329_v31, %s8211_s17 }
 0x1d6   :  { %1680 = vrot.lane.b32.xlu1 %v8366_v35, %s8204_s27 }
 0x1d8   :  { %1714 = vrot.lane.b32.xlu0 %v8329_v31, %s8195_s30 }
 0x1da   :  { %1692 = vrot.lane.b32.xlu1 %v8366_v35, %s8210_s14 }
 0x1dc   :  { %454 = vrot.lane.b32.xlu0 %v8386_v37, %s8207_s12 }
 0x1de   :  { %1704 = vrot.lane.b32.xlu1 %v8366_v35, %s8211_s17 }
 0x1e0   :  { %466 = vrot.lane.b32.xlu0 %v8386_v37, %s8208_s5 }
 0x1e2   :  { %1716 = vrot.lane.b32.xlu1 %v8366_v35, %s8195_s30 }
 0x1e4   :  { %478 = vrot.lane.b32.xlu0 %v8386_v37, %s8209_s13 }
 0x1e6   :  { %456 = vrot.lane.b32.xlu1 %v8400_v41, %s8207_s12 }
 0x1e8   :  { %490 = vrot.lane.b32.xlu0 %v8386_v37, %s8204_s27 }
 0x1ea   :  { %468 = vrot.lane.b32.xlu1 %v8400_v41, %s8208_s5 }
 0x1ec   :  { %502 = vrot.lane.b32.xlu0 %v8386_v37, %s8210_s14 }
 0x1ee   :  { %480 = vrot.lane.b32.xlu1 %v8400_v41, %s8209_s13 }
 0x1f0   :  { %1646 = vrot.lane.b32.xlu0 %v8417_v42, %s8207_s12 }
 0x1f2   :  { %492 = vrot.lane.b32.xlu1 %v8400_v41, %s8204_s27 }
 0x1f4   :  { %1658 = vrot.lane.b32.xlu0 %v8417_v42, %s8208_s5 }
 0x1f6   :  { %504 = vrot.lane.b32.xlu1 %v8400_v41, %s8210_s14 }
 0x1f8   :  { %1670 = vrot.lane.b32.xlu0 %v8417_v42, %s8209_s13 }
 0x1fa   :  { %1648 = vrot.lane.b32.xlu1 %v8430_v44, %s8207_s12 }
 0x1fc   :  { %1682 = vrot.lane.b32.xlu0 %v8417_v42, %s8204_s27 }
 0x1fe   :  { %1660 = vrot.lane.b32.xlu1 %v8430_v44, %s8208_s5 }
 0x200   :  { %1694 = vrot.lane.b32.xlu0 %v8417_v42, %s8210_s14 }
 0x202   :  { %1672 = vrot.lane.b32.xlu1 %v8430_v44, %s8209_s13 }
 0x204   :  { %1706 = vrot.lane.b32.xlu0 %v8417_v42, %s8211_s17 }
 0x206   :  { %1684 = vrot.lane.b32.xlu1 %v8430_v44, %s8204_s27 }
 0x208   :  { %1718 = vrot.lane.b32.xlu0 %v8417_v42, %s8195_s30 }
 0x20a   :  { %1696 = vrot.lane.b32.xlu1 %v8430_v44, %s8210_s14 }
 0x20c   :  { %514 = vrot.lane.b32.xlu0 %v8386_v37, %s8211_s17 }
 0x20e   :  { %1708 = vrot.lane.b32.xlu1 %v8430_v44, %s8211_s17 }
 0x210   :  { %526 = vrot.lane.b32.xlu0 %v8386_v37, %s8195_s30 }
 0x212   :  { %1720 = vrot.lane.b32.xlu1 %v8430_v44, %s8195_s30 }
 0x214   :  { %2834 = vrot.lane.b32.xlu0 %v8463_v49, %s8207_s12 }
 0x216   :  { %516 = vrot.lane.b32.xlu1 %v8400_v41, %s8211_s17 }
 0x218   :  { %2858 = vrot.lane.b32.xlu0 %v8463_v49, %s8209_s13 }
 0x21a   :  { %v451_v52 = vpop.permute.xlu0 %450  ;;  %528 = vrot.lane.b32.xlu1 %v8400_v41, %s8195_s30 }
 0x21c   :  { %2870 = vrot.lane.b32.xlu0 %v8463_v49, %s8204_s27  ;;  %v8482_v58 = vpop.permute.xlu1 %1654 }
 0x21d   :  { %v1726_v40 = vcombine.low %v8329_v31, %v8482_v58  ;;  %v1727_v43 = vcombine.high %v8329_v31, %v8482_v58 }
 0x21e   :  { %v463_v59 = vpop.permute.xlu0 %462  ;;  %2836 = vrot.lane.b32.xlu1 %v8478_v57, %s8207_s12 }
 0x21f   :  { %v534_v63 = vcombine.low %v8326_v29, %v463_v59  ;;  %v535_v2 = vcombine.high %v8326_v29, %v463_v59 }
 0x220   :  { %2894 = vrot.lane.b32.xlu0 %v8463_v49, %s8211_s17  ;;  %v453_v62 = vpop.permute.xlu1 %452 }
 0x221   :  { %v542_v11 = vrot.slane %v534_v63, %v8493_v6  ;;  %v549_v0 = vrot.slane %v535_v2, %v8493_v6 }
 0x222   :  { %v475_v3 = vpop.permute.xlu0 %474  ;;  %2846 = vrot.lane.b32.xlu1 %v8463_v49, %s8208_s5 }
 0x223   :  { %v550_v7 = vcombine.low %v451_v52, %v475_v3  ;;  %v551_v8 = vcombine.high %v451_v52, %v475_v3 }
 0x224   :  { %2906 = vrot.lane.b32.xlu0 %v8463_v49, %s8195_s30  ;;  %v465_v10 = vpop.permute.xlu1 %464 }
 0x225   :  { %v558_v12 = vrot.slane %v550_v7, %v8493_v6  ;;  %v565_v13 = vrot.slane %v551_v8, %v8493_v6  ;;  %v670_v20 = vcombine.low %v8335_v33, %v465_v10  ;;  %v671_v21 = vcombine.high %v8335_v33, %v465_v10 }
 0x226   :  { %v8507_v15 = vpop.permute.xlu0 %486  ;;  %2848 = vrot.lane.b32.xlu1 %v8478_v57, %s8208_s5 }
 0x227   :  { %v598_v16 = vcombine.low %v542_v11, %v558_v12  ;;  %v599_v17 = vcombine.high %v542_v11, %v558_v12  ;;  %v614_v1 = vcombine.low %v549_v0, %v565_v13  ;;  %v615_v18 = vcombine.high %v549_v0, %v565_v13 }
 0x228   :  { %2838 = vrot.lane.b32.xlu0 %v8505_v14, %s8207_s12  ;;  %v477_v22 = vpop.permute.xlu1 %476  ;;  %v678_v32 = vrot.slane %v670_v20, %v8493_v6  ;;  %v685_v33 = vrot.slane %v671_v21, %v8493_v6  ;;  %v8559_v11 = vadd.f32 %v8469_v50, %v8456_v47  ;;  %v8562_v0 = vrot.slane %v1726_v40, %v8493_v6 }
 0x229   :  { %v606_v23 = vrot.slane %v598_v16, %v8496_v9  ;;  %v613_v4 = vrot.slane %v599_v17, %v8496_v9  ;;  %v622_v5 = vrot.slane %v614_v1, %v8496_v9  ;;  %v629_v24 = vrot.slane %v615_v18, %v8496_v9 }
 0x22a   :  { %v686_v25 = vcombine.low %v453_v62, %v477_v22  ;;  %v687_v26 = vcombine.high %v453_v62, %v477_v22  ;;  %v499_v19 = vpop.permute.xlu0 %498  ;;  %2860 = vrot.lane.b32.xlu1 %v8478_v57, %s8209_s13  ;;  %10672 = vst [vmem:[#allocation18_spill] sm:$0xff] %v8559_v11  ;;  %v8565_v16 = vrot.slane %v1727_v43, %v8493_v6 }
 0x22b   :  { %v7330_v27 = vcombine.low %v606_v23, %v613_v4  ;;  %v7332_v28 = vcombine.high %v606_v23, %v613_v4  ;;  %v7334_v29 = vcombine.low %v622_v5, %v629_v24  ;;  %v7336_v30 = vcombine.high %v622_v5, %v629_v24 }
 0x22c   :  { %v694_v34 = vrot.slane %v686_v25, %v8493_v6  ;;  %v701_v36 = vrot.slane %v687_v26, %v8493_v6  ;;  %2862 = vrot.lane.b32.xlu0 %v8505_v14, %s8209_s13  ;;  %v8527_v39 = vpop.permute.xlu1 %488 }
 0x22d   :  { %v8536_v53 = vrot.slane %v7330_v27, %v8493_v6  ;;  %v8539_v54 = vrot.slane %v7332_v28, %v8493_v6  ;;  %v8542_v55 = vrot.slane %v7334_v29, %v8493_v6  ;;  %v8545_v56 = vrot.slane %v7336_v30, %v8493_v6 }
 0x22e   :  { %v734_v45 = vcombine.low %v678_v32, %v694_v34  ;;  %v735_v46 = vcombine.high %v678_v32, %v694_v34  ;;  %v750_v48 = vcombine.low %v685_v33, %v701_v36  ;;  %v751_v51 = vcombine.high %v685_v33, %v701_v36  ;;  %v511_v52 = vpop.permute.xlu0 %510  ;;  %2872 = vrot.lane.b32.xlu1 %v8478_v57, %s8204_s27 }
 0x22f   :  { %v566_v62 = vcombine.low %v8507_v15, %v511_v52  ;;  %v567_v63 = vcombine.high %v8507_v15, %v511_v52  ;;  %v1142_v15 = vcombine.low %v8536_v53, %v8539_v54  ;;  %v1174_v1 = vcombine.low %v8542_v55, %v8545_v56 }
 0x230   :  { %v742_v31 = vrot.slane %v734_v45, %v8496_v9  ;;  %v749_v58 = vrot.slane %v735_v46, %v8496_v9  ;;  %v758_v59 = vrot.slane %v750_v48, %v8496_v9  ;;  %v765_v60 = vrot.slane %v751_v51, %v8496_v9  ;;  %2874 = vrot.lane.b32.xlu0 %v8505_v14, %s8204_s27  ;;  %v501_v61 = vpop.permute.xlu1 %500 }
 0x231   :  { %v574_v50 = vrot.slane %v566_v62, %v8493_v6  ;;  %v581_v18 = vrot.slane %v567_v63, %v8493_v6  ;;  %v8594_v28 = vrot.slane %v1142_v15, %v8496_v9  ;;  %v8605_v45 = vrot.slane %v1174_v1, %v8496_v9 }
 0x232   :  { %v7338_v2 = vcombine.low %v742_v31, %v749_v58  ;;  %v7340_v3 = vcombine.high %v742_v31, %v749_v58  ;;  %v7342_v7 = vcombine.low %v758_v59, %v765_v60  ;;  %v7344_v8 = vcombine.high %v758_v59, %v765_v60  ;;  %v523_v10 = vpop.permute.xlu0 %522  ;;  %2882 = vrot.lane.b32.xlu1 %v8463_v49, %s8210_s14 }
 0x233   :  { %v582_v12 = vcombine.low %v499_v19, %v523_v10  ;;  %v583_v13 = vcombine.high %v499_v19, %v523_v10 }
 0x234   :  { %2898 = vrot.lane.b32.xlu0 %v8505_v14, %s8211_s17  ;;  %v513_v47 = vpop.permute.xlu1 %512  ;;  %v8580_v22 = vrot.slane %v7338_v2, %v8493_v6  ;;  %v8583_v23 = vrot.slane %v7340_v3, %v8493_v6  ;;  %v8586_v4 = vrot.slane %v7342_v7, %v8493_v6  ;;  %v8589_v5 = vrot.slane %v7344_v8, %v8493_v6 }
 0x235   :  { %v590_v20 = vrot.slane %v582_v12, %v8493_v6  ;;  %v597_v21 = vrot.slane %v583_v13, %v8493_v6  ;;  %v702_v30 = vcombine.low %v8527_v39, %v513_v47  ;;  %v703_v32 = vcombine.high %v8527_v39, %v513_v47 }
 0x236   :  { %v1643_v24 = vpop.permute.xlu0 %1642  ;;  %2884 = vrot.lane.b32.xlu1 %v8478_v57, %s8210_s14  ;;  %v1278_v46 = vcombine.low %v8580_v22, %v8583_v23  ;;  %v1310_v31 = vcombine.low %v8586_v4, %v8589_v5 }
 0x237   :  { %v630_v25 = vcombine.low %v574_v50, %v590_v20  ;;  %v631_v26 = vcombine.high %v574_v50, %v590_v20  ;;  %v646_v19 = vcombine.low %v581_v18, %v597_v21  ;;  %v647_v27 = vcombine.high %v581_v18, %v597_v21 }
 0x238   :  { %v525_v33 = vpop.permute.xlu1 %524  ;;  %v710_v60 = vrot.slane %v702_v30, %v8493_v6  ;;  %v717_v62 = vrot.slane %v703_v32, %v8493_v6  ;;  %v8626_v50 = vrot.slane %v1278_v46, %v8496_v9  ;;  %v8629_v18 = vrot.slane %v1310_v31, %v8496_v9 }
 0x239   :  { %v638_v34 = vrot.slane %v630_v25, %v8496_v9  ;;  %v645_v36 = vrot.slane %v631_v26, %v8496_v9  ;;  %v654_v40 = vrot.slane %v646_v19, %v8496_v9  ;;  %v661_v43 = vrot.slane %v647_v27, %v8496_v9 }
 0x23a   :  { %v718_v48 = vcombine.low %v501_v61, %v525_v33  ;;  %v719_v51 = vcombine.high %v501_v61, %v525_v33  ;;  %v1667_v52 = vpop.permute.xlu0 %1666  ;;  %2896 = vrot.lane.b32.xlu1 %v8478_v57, %s8211_s17 }
 0x23b   :  { %v7331_v58 = vcombine.low %v638_v34, %v645_v36  ;;  %v7333_v59 = vcombine.high %v638_v34, %v645_v36  ;;  %v7335_v3 = vcombine.low %v654_v40, %v661_v43  ;;  %v7337_v7 = vcombine.high %v654_v40, %v661_v43 }
 0x23c   :  { %v726_v63 = vrot.slane %v718_v48, %v8493_v6  ;;  %v733_v61 = vrot.slane %v719_v51, %v8493_v6  ;;  %v8619_v2 = vpop.permute.xlu1 %1644  ;;  %v1742_v8 = vcombine.low %v1643_v24, %v1667_v52  ;;  %v1743_v10 = vcombine.high %v1643_v24, %v1667_v52 }
 0x23d   :  { %v8632_v20 = vrot.slane %v7331_v58, %v8493_v6  ;;  %v8635_v21 = vrot.slane %v7333_v59, %v8493_v6  ;;  %v8648_v36 = vrot.slane %v7335_v3, %v8493_v6  ;;  %v8651_v40 = vrot.slane %v7337_v7, %v8493_v6 }
 0x23e   :  { %v766_v12 = vcombine.low %v710_v60, %v726_v63  ;;  %v767_v13 = vcombine.high %v710_v60, %v726_v63  ;;  %v782_v15 = vcombine.low %v717_v62, %v733_v61  ;;  %v783_v1 = vcombine.high %v717_v62, %v733_v61  ;;  %v8621_v47 = vpop.permute.xlu0 %1678  ;;  %2908 = vrot.lane.b32.xlu1 %v8478_v57, %s8195_s30 }
 0x23f   :  { %v1750_v32 = vrot.slane %v1742_v8, %v8493_v6  ;;  %v1757_v33 = vrot.slane %v1743_v10, %v8493_v6 }
 0x240   :  { %v774_v24 = vrot.slane %v766_v12, %v8496_v9  ;;  %v781_v25 = vrot.slane %v767_v13, %v8496_v9  ;;  %v790_v26 = vrot.slane %v782_v15, %v8496_v9  ;;  %v797_v19 = vrot.slane %v783_v1, %v8496_v9  ;;  %v1657_v27 = vpop.permute.xlu1 %1656 }
 0x241   :  { %v1790_v51 = vcombine.low %v8562_v0, %v1750_v32  ;;  %v1791_v52 = vcombine.high %v8562_v0, %v1750_v32  ;;  %v1806_v31 = vcombine.low %v8565_v16, %v1757_v33  ;;  %v1807_v58 = vcombine.high %v8565_v16, %v1757_v33 }
 0x242   :  { %v7339_v43 = vcombine.low %v774_v24, %v781_v25  ;;  %v7341_v46 = vcombine.high %v774_v24, %v781_v25  ;;  %v1691_v48 = vpop.permute.xlu0 %1690  ;;  %2840 = vrot.lane.b32.xlu1 %v8559_v11, %s8207_s12  ;;  %v7343_v60 = vcombine.low %v790_v26, %v797_v19  ;;  %v7345_v62 = vcombine.high %v790_v26, %v797_v19 }
 0x243   :  { %v1798_v3 = vrot.slane %v1790_v51, %v8496_v9  ;;  %v1805_v7 = vrot.slane %v1791_v52, %v8496_v9  ;;  %v1814_v8 = vrot.slane %v1806_v31, %v8496_v9  ;;  %v1821_v0 = vrot.slane %v1807_v58, %v8496_v9 }
 0x244   :  { %v1669_v63 = vpop.permute.xlu1 %1668  ;;  %v1862_v12 = vcombine.low %v8366_v35, %v1657_v27  ;;  %v1863_v13 = vcombine.high %v8366_v35, %v1657_v27  ;;  %v8676_v1 = vrot.slane %v7339_v43, %v8493_v6  ;;  %v8679_v24 = vrot.slane %v7341_v46, %v8493_v6 }
 0x245   :  { %v7362_v25 = vcombine.low %v1798_v3, %v1805_v7  ;;  %v7364_v26 = vcombine.high %v1798_v3, %v1805_v7  ;;  %v8682_v19 = vrot.slane %v7343_v60, %v8493_v6  ;;  %v8685_v32 = vrot.slane %v7345_v62, %v8493_v6 }
 0x246   :  { %v1703_v15 = vpop.permute.xlu0 %1702  ;;  %2850 = vrot.lane.b32.xlu1 %v8505_v14, %s8208_s5  ;;  %v1878_v35 = vcombine.low %v8619_v2, %v1669_v63  ;;  %v1879_v27 = vcombine.high %v8619_v2, %v1669_v63  ;;  %v7366_v51 = vcombine.low %v1814_v8, %v1821_v0  ;;  %v7368_v43 = vcombine.high %v1814_v8, %v1821_v0 }
 0x247   :  { %v1758_v52 = vcombine.low %v8621_v47, %v1703_v15  ;;  %v1759_v46 = vcombine.high %v8621_v47, %v1703_v15  ;;  %v1870_v31 = vrot.slane %v1862_v12, %v8493_v6  ;;  %v1877_v58 = vrot.slane %v1863_v13, %v8493_v6 }
 0x248   :  { %v8689_v33 = vpop.permute.xlu1 %1680  ;;  %v1886_v60 = vrot.slane %v1878_v35, %v8493_v6  ;;  %v1893_v62 = vrot.slane %v1879_v27, %v8493_v6  ;;  %v8700_v7 = vrot.slane %v7362_v25, %v8493_v6  ;;  %v8703_v8 = vrot.slane %v7364_v26, %v8493_v6 }
 0x249   :  { %v1766_v35 = vrot.slane %v1758_v52, %v8493_v6  ;;  %v1773_v27 = vrot.slane %v1759_v46, %v8493_v6  ;;  %v8716_v46 = vrot.slane %v7366_v51, %v8493_v6 }
 0x24a   :  { %v1715_v3 = vpop.permute.xlu0 %1714  ;;  %2852 = vrot.lane.b32.xlu1 %v8559_v11, %s8208_s5  ;;  %v1926_v47 = vcombine.low %v1870_v31, %v1886_v60  ;;  %v1927_v0 = vcombine.high %v1870_v31, %v1886_v60  ;;  %v1942_v12 = vcombine.low %v1877_v58, %v1893_v62  ;;  %v1943_v13 = vcombine.high %v1877_v58, %v1893_v62 }
 0x24b   :  { %v1774_v2 = vcombine.low %v1691_v48, %v1715_v3  ;;  %v1775_v63 = vcombine.high %v1691_v48, %v1715_v3  ;;  %v8719_v60 = vrot.slane %v7368_v43, %v8493_v6 }
 0x24c   :  { %v1693_v15 = vpop.permute.xlu1 %1692  ;;  %v1934_v48 = vrot.slane %v1926_v47, %v8496_v9  ;;  %v1941_v25 = vrot.slane %v1927_v0, %v8496_v9  ;;  %v1950_v26 = vrot.slane %v1942_v12, %v8496_v9  ;;  %v1957_v3 = vrot.slane %v1943_v13, %v8496_v9 }
 0x24d   :  { %v1782_v16 = vrot.slane %v1774_v2, %v8493_v6  ;;  %v1789_v10 = vrot.slane %v1775_v63, %v8493_v6 }
 0x24e   :  { %2864 = vrot.lane.b32.xlu1 %v8559_v11, %s8209_s13  ;;  %v455_v31 = vpop.permute.xlu0 %454  ;;  %v7370_v43 = vcombine.low %v1934_v48, %v1941_v25  ;;  %v7372_v13 = vcombine.high %v1934_v48, %v1941_v25  ;;  %v2366_v48 = vcombine.low %v8716_v46, %v8719_v60 }
 0x24f   :  { %v1822_v58 = vcombine.low %v1766_v35, %v1782_v16  ;;  %v1823_v52 = vcombine.high %v1766_v35, %v1782_v16  ;;  %v1838_v63 = vcombine.low %v1773_v27, %v1789_v10  ;;  %v1839_v47 = vcombine.high %v1773_v27, %v1789_v10 }
 0x250   :  { %v1705_v0 = vpop.permute.xlu1 %1704  ;;  %v7374_v35 = vcombine.low %v1950_v26, %v1957_v3  ;;  %v2334_v10 = vcombine.low %v8700_v7, %v8703_v8  ;;  %v7376_v27 = vcombine.high %v1950_v26, %v1957_v3  ;;  %v8769_v29 = vrot.slane %v2366_v48, %v8496_v9 }
 0x251   :  { %v1894_v62 = vcombine.low %v8689_v33, %v1705_v0  ;;  %v8737_v12 = vrot.slane %v1822_v58, %v8496_v9  ;;  %v8740_v16 = vrot.slane %v1823_v52, %v8496_v9  ;;  %v8745_v25 = vrot.slane %v1838_v63, %v8496_v9 }
 0x252   :  { %2876 = vrot.lane.b32.xlu1 %v8559_v11, %s8204_s27  ;;  %v467_v2 = vpop.permute.xlu0 %466  ;;  %v8748_v51 = vrot.slane %v1839_v47, %v8496_v9  ;;  %v1895_v59 = vcombine.high %v8689_v33, %v1705_v0  ;;  %v2414_v52 = vrot.slane %v7370_v43, %v8493_v6  ;;  %v8758_v47 = vrot.slane %v2334_v10, %v8496_v9 }
 0x253   :  { %v806_v61 = vcombine.low %v8386_v37, %v467_v2  ;;  %v807_v3 = vcombine.high %v8386_v37, %v467_v2  ;;  %v1902_v30 = vrot.slane %v1894_v62, %v8493_v6  ;;  %v2430_v33 = vrot.slane %v7372_v13, %v8493_v6 }
 0x254   :  { %v1717_v26 = vpop.permute.xlu1 %1716  ;;  %v2446_v0 = vrot.slane %v7374_v35, %v8493_v6  ;;  %v1909_v43 = vrot.slane %v1895_v59, %v8493_v6  ;;  %v2462_v10 = vrot.slane %v7376_v27, %v8493_v6 }
 0x255   :  { %v1910_v58 = vcombine.low %v1693_v15, %v1717_v26  ;;  %v1911_v34 = vcombine.high %v1693_v15, %v1717_v26  ;;  %v814_v62 = vrot.slane %v806_v61, %v8493_v6  ;;  %v821_v13 = vrot.slane %v807_v3, %v8493_v6 }
 0x256   :  { %2886 = vrot.lane.b32.xlu1 %v8505_v14, %s8210_s14  ;;  %v479_v63 = vpop.permute.xlu0 %478  ;;  %v2502_v48 = vcombine.low %v2446_v0, %v2462_v10 }
 0x257   :  { %v1918_v39 = vrot.slane %v1910_v58, %v8493_v6  ;;  %v1925_v37 = vrot.slane %v1911_v34, %v8493_v6  ;;  %v822_v15 = vcombine.low %v455_v31, %v479_v63  ;;  %v823_v2 = vcombine.high %v455_v31, %v479_v63 }
 0x258   :  { %v8766_v26 = vpop.permute.xlu1 %456  ;;  %v2470_v58 = vcombine.low %v2414_v52, %v2430_v33 }
 0x259   :  { %v1958_v35 = vcombine.low %v1902_v30, %v1918_v39  ;;  %v1959_v38 = vcombine.high %v1902_v30, %v1918_v39  ;;  %v1974_v17 = vcombine.low %v1909_v43, %v1925_v37  ;;  %v1975_v34 = vcombine.high %v1909_v43, %v1925_v37 }
 0x25a   :  { %v830_v31 = vrot.slane %v822_v15, %v8493_v6  ;;  %v837_v59 = vrot.slane %v823_v2, %v8493_v6  ;;  %2888 = vrot.lane.b32.xlu1 %v8559_v11, %s8210_s14  ;;  %v8777_v61 = vpop.permute.xlu0 %490  ;;  %v2335_v39 = vcombine.high %v8700_v7, %v8703_v8  ;;  %v2367_v30 = vcombine.high %v8716_v46, %v8719_v60 }
 0x25b   :  { %v8788_v14 = vrot.slane %v1958_v35, %v8496_v9  ;;  %v8791_v27 = vrot.slane %v1959_v38, %v8496_v9  ;;  %v8794_v57 = vrot.slane %v2470_v58, %v8496_v9  ;;  %v8797_v7 = vrot.slane %v1974_v17, %v8496_v9 }
 0x25c   :  { %v870_v3 = vcombine.low %v814_v62, %v830_v31  ;;  %v871_v63 = vcombine.high %v814_v62, %v830_v31  ;;  %v886_v37 = vcombine.low %v821_v13, %v837_v59  ;;  %v887_v15 = vcombine.high %v821_v13, %v837_v59  ;;  %v469_v2 = vpop.permute.xlu1 %468 }
 0x25d   :  { %v8800_v8 = vrot.slane %v1975_v34, %v8496_v9  ;;  %v2398_v13 = vcombine.low %v8758_v47, %v8769_v29  ;;  %v2510_v17 = vrot.slane %v2502_v48, %v8496_v9  ;;  %v2471_v35 = vcombine.high %v2414_v52, %v2430_v33 }
 0x25e   :  { %v878_v46 = vrot.slane %v870_v3, %v8496_v9  ;;  %v885_v60 = vrot.slane %v871_v63, %v8496_v9  ;;  %2900 = vrot.lane.b32.xlu1 %v8559_v11, %s8211_s17  ;;  %v8806_v62 = vpop.permute.xlu0 %502  ;;  %v8814_v58 = vrot.slane %v886_v37, %v8496_v9  ;;  %v8817_v34 = vrot.slane %v887_v15, %v8496_v9 }
 0x25f   :  { %v8820_v31 = vrot.slane %v2335_v39, %v8496_v9  ;;  %v8823_v59 = vrot.slane %v2367_v30, %v8496_v9  ;;  %v2534_v38 = vcombine.low %v8794_v57, %v2510_v17  ;;  %v8827_v43 = vrot.slane %v2471_v35, %v8496_v9 }
 0x260   :  { %v481_v3 = vpop.permute.xlu1 %480  ;;  %v7346_v63 = vcombine.low %v878_v46, %v885_v60  ;;  %v2503_v52 = vcombine.high %v2446_v0, %v2462_v10  ;;  %v7377_v15 = vcombine.high %v8797_v7, %v8800_v8  ;;  %v942_v10 = vcombine.low %v8400_v41, %v469_v2 }
 0x261   :  { %v2814_v35 = vpack.c.bf16 %v2534_v38, %v2398_v13  ;;  %v7348_v33 = vcombine.high %v878_v46, %v885_v60  ;;  %v7350_v48 = vcombine.low %v8814_v58, %v8817_v34  ;;  %v7352_v39 = vcombine.high %v8814_v58, %v8817_v34 }
 0x262   :  { %v8837_v37 = vpop.permute.xlu0 %1646  ;;  %v8842_v0 = vrot.slane %v2503_v52, %v8496_v9  ;;  %v943_v30 = vcombine.high %v8400_v41, %v469_v2  ;;  %v8853_v49 = vrot.slane %v7346_v63, %v8493_v6  ;;  %v2400_v13 = vcombine.low %v8820_v31, %v8823_v59 }
 0x263   :  { %v4027_v38 = vsel %vm4022_vm1, %v2814_v35, 0  ;;  %v950_v60 = vrot.slane %v942_v10, %v8493_v6  ;;  %v958_v58 = vcombine.low %v8766_v26, %v481_v3  ;;  %v959_v41 = vcombine.high %v8766_v26, %v481_v3 }
 0x264   :  { %v8850_v11 = vpop.permute.xlu1 %492  ;;  %v2536_v46 = vcombine.low %v8827_v43, %v8842_v0  ;;  %7606 = vmatpush3.bf16.xpose.msra.mxu0 %v4027_v38  ;;  %v10673_v2 = vcombine.high %v8536_v53, %v8539_v54  ;;  %v10674_v35 = vmov 0.0   ;;  %v10675_v38 = vcombine.high %v8542_v55, %v8545_v56 }
 0x265   :  { %7611 = vmatprep.subr.bf16.mxu0 %v10674_v35  ;;  %v10676_v26 = vcombine.high %v8580_v22, %v8583_v23  ;;  %v10677_v53 = vcombine.high %v8586_v4, %v8589_v5  ;;  %v973_v55 = vrot.slane %v959_v41, %v8493_v6  ;;  %v2535_v56 = vcombine.high %v8794_v57, %v2510_v17 }
 0x266   :  { %v8867_v34 = vrot.slane %v10673_v2, %v8496_v9  ;;  %v8869_v63 = vpop.permute.xlu0 %1658  ;;  %v2816_v52 = vpack.c.bf16 %v2536_v46, %v2400_v13  ;;  %v8876_v10 = vrot.slane %v10675_v38, %v8496_v9  ;;  %v957_v13 = vrot.slane %v943_v30, %v8493_v6 }
 0x267   :  { %v8882_v3 = vrot.slane %v10676_v26, %v8496_v9  ;;  %v8888_v54 = vrot.slane %v10677_v53, %v8496_v9  ;;  %v966_v46 = vrot.slane %v958_v58, %v8493_v6  ;;  %v8897_v22 = vrot.slane %v7348_v33, %v8493_v6 }
 0x268   :  { %v8894_v2 = vpop.permute.xlu1 %504  ;;  %v4121_v23 = vsel %vm4022_vm1, %v2816_v52, 0  ;;  %v2399_v5 = vcombine.high %v8758_v47, %v8769_v29  ;;  %v1022_v38 = vcombine.low %v957_v13, %v973_v55  ;;  %v1023_v41 = vcombine.high %v957_v13, %v973_v55 }
 0x269   :  { %v1344_v4 = vcombine.low %v8882_v3, %v8888_v54  ;;  %7618 = vmatpush3.bf16.xpose.msra.mxu1 %v4121_v23  ;;  %v1006_v30 = vcombine.low %v950_v60, %v966_v46  ;;  %v1007_v58 = vcombine.high %v950_v60, %v966_v46  ;;  %v8905_v57 = vrot.slane %v7350_v48, %v8493_v6 }
 0x26a   :  { %v1671_v26 = vpop.permute.xlu0 %1670  ;;  %v10678_v17 = vcombine.low %v8594_v28, %v8605_v45  ;;  %v10679_v33 = vcombine.low %v8626_v50, %v8629_v18  ;;  %v1208_v53 = vcombine.low %v8867_v34, %v8876_v10  ;;  %v2815_v29 = vpack.c.bf16 %v2535_v56, %v2399_v5  ;;  %7629 = vmatprep.subr.bf16.mxu1 %v10674_v35 }
 0x26b   :  { %v1014_v47 = vrot.slane %v1006_v30, %v8496_v9  ;;  %v1021_v60 = vrot.slane %v1007_v58, %v8496_v9  ;;  %v1030_v48 = vrot.slane %v1022_v38, %v8496_v9  ;;  %v1037_v13 = vrot.slane %v1023_v41, %v8496_v9 }
 0x26c   :  { %v1622_v52 = vpack.c.bf16 %v10679_v33, %v10678_v17  ;;  %v8920_v46 = vpop.permute.xlu1 %1648  ;;  %v8923_v55 = vrot.slane %v7352_v39, %v8493_v6  ;;  %v1624_v23 = vpack.c.bf16 %v1344_v4, %v1208_v53  ;;  %v4074_v56 = vsel %vm4022_vm1, %v2815_v29, 0 }
 0x26d   :  { %v1998_v5 = vcombine.low %v8417_v42, %v8869_v63  ;;  %v7354_v30 = vcombine.low %v1014_v47, %v1021_v60  ;;  %v7356_v17 = vcombine.high %v1014_v47, %v1021_v60  ;;  %v7358_v58 = vcombine.low %v1030_v48, %v1037_v13 }
 0x26e   :  { %7608 = vmatmul.mubr.msk.bf16.vlgmr.msra.gmra.mxu0 %vm4022_vm1, %v1622_v52  ;;  %v1343_v38 = vcombine.high %v8626_v50, %v8629_v18  ;;  %v7360_v41 = vcombine.high %v1030_v48, %v1037_v13  ;;  %v2014_v39 = vcombine.low %v8837_v37, %v1671_v26  ;;  %v2015_v4 = vcombine.high %v8837_v37, %v1671_v26  ;;  %v8936_v33 = vpop.permute.xlu0 %1682 }
 0x26f   :  { %7612 = vmatpush3.bf16.xpose.msra.mxu0 %v4074_v56  ;;  %7613 = vmatprep.mubr.msk.bf16.mxu0 %vm8213_vm0, %v10674_v35  ;;  %v1999_v50 = vcombine.high %v8417_v42, %v8869_v63  ;;  %v1207_v18 = vcombine.high %v8594_v28, %v8605_v45  ;;  %v8949_v47 = vrot.slane %v7354_v30, %v8493_v6 }
 0x270   :  { %7623 = vmatprep.subr.bf16.mxu0 %v10674_v35  ;;  %v8946_v29 = vpop.permute.xlu1 %1660  ;;  %v8952_v37 = vrot.slane %v7356_v17, %v8493_v6  ;;  %7620 = vmatmul.mubr.msk.bf16.vlgmr.msra.gmra.mxu1 %vm4022_vm1, %v1624_v23  ;;  %v2022_v26 = vrot.slane %v2014_v39, %v8493_v6  ;;  %v2537_v60 = vcombine.high %v8827_v43, %v8842_v0 }
 0x271   :  { %v2006_v45 = vrot.slane %v1998_v5, %v8493_v6  ;;  %v2401_v63 = vcombine.high %v8820_v31, %v8823_v59  ;;  %7631 = vmatprep.mubr.msk.bf16.mxu1 %vm8213_vm0, %v10674_v35  ;;  %v8968_v48 = vrot.slane %v7358_v58, %v8493_v6  ;;  %v8971_v13 = vrot.slane %v7360_v41, %v8493_v6 }
 0x272   :  { %v1623_v43 = vpack.c.bf16 %v1343_v38, %v1207_v18  ;;  %v2029_v0 = vrot.slane %v2015_v4, %v8493_v6  ;;  %v10680_v56 = vcombine.low %v8737_v12, %v8740_v16  ;;  %v10681_v31 = vcombine.high %v8737_v12, %v8740_v16  ;;  %v8994_v18 = vpop.permute.xlu0 %1694 }
 0x273   :  { %v2817_v23 = vpack.c.bf16 %v2537_v60, %v2401_v63  ;;  %v10682_v30 = vcombine.low %v8745_v25, %v8748_v51  ;;  %v2013_v41 = vrot.slane %v1999_v50, %v8493_v6  ;;  %v2062_v39 = vcombine.low %v2006_v45, %v2022_v26 }
 0x274   :  { %v2285_v5 = vrot.slane %v10680_v56, %v8493_v6  ;;  %v2301_v59 = vrot.slane %v10681_v31, %v8493_v6  ;;  %v8988_v58 = vpop.permute.xlu1 %1672  ;;  %v2063_v4 = vcombine.high %v2006_v45, %v2022_v26  ;;  %v10683_v16 = vcombine.high %v8745_v25, %v8748_v51 }
 0x275   :  { %v8986_v17 = vrot.slane %v10682_v30, %v8493_v6  ;;  %v4168_v12 = vsel %vm4022_vm1, %v2817_v23, 0  ;;  %v10684_v56 = vcombine.low %v8788_v14, %v8791_v27  ;;  %v2078_v45 = vcombine.low %v2013_v41, %v2029_v0 }
 0x276   :  { %7614 = vmatmul.mubr.msk.bf16.vlgmr.msra.gmra.mxu0 %vm4022_vm1, %v1623_v43  ;;  %v2333_v60 = vrot.slane %v10683_v16, %v8493_v6  ;;  %v2350_v63 = vcombine.low %v2285_v5, %v2301_v59  ;;  %v2079_v43 = vcombine.high %v2013_v41, %v2029_v0  ;;  %v10685_v23 = vcombine.high %v8788_v14, %v8791_v27 }
 0x277   :  { %v2421_v31 = vrot.slane %v10684_v56, %v8493_v6  ;;  %7625 = vmatprep.mubr.msk.bf16.mxu0 %vm8213_vm0, %v10674_v35  ;;  %7624 = vmatpush3.bf16.xpose.msra.mxu0 %v4168_v12  ;;  %v10686_v16 = vcombine.low %v8797_v7, %v8800_v8  ;;  %v9026_v0 = vrot.slane %v2062_v39, %v8496_v9  ;;  %v9049_v8 = vpop.permute.xlu0 %1706 }
 0x278   :  { %v2382_v25 = vcombine.low %v8986_v17, %v2333_v60  ;;  %v2437_v30 = vrot.slane %v10685_v23, %v8493_v6  ;;  %7635 = vmatprep.subr.bf16.mxu0 %v10674_v35  ;;  %v9023_v50 = vpop.permute.xlu1 %1684  ;;  %v9029_v41 = vrot.slane %v2063_v4, %v8496_v9  ;;  %v2358_v12 = vrot.slane %v2350_v63, %v8496_v9 }
 0x279   :  { %v2453_v56 = vrot.slane %v10686_v16, %v8493_v6  ;;  %v2469_v14 = vrot.slane %v7377_v15, %v8493_v6  ;;  %v1209_v16 = vcombine.high %v8867_v34, %v8876_v10  ;;  %v1345_v39 = vcombine.high %v8882_v3, %v8888_v54 }
 0x27a   :  { %v2390_v27 = vrot.slane %v2382_v25, %v8496_v9  ;;  %v2486_v23 = vcombine.low %v2421_v31, %v2437_v30  ;;  %v9042_v51 = vrot.slane %v2078_v45, %v8496_v9  ;;  %v9045_v4 = vrot.slane %v2079_v43, %v8496_v9 }
 0x27b   :  { %v2518_v63 = vcombine.low %v2453_v56, %v2469_v14  ;;  %v2134_v7 = vcombine.low %v8430_v44, %v8946_v29  ;;  %v2135_v34 = vcombine.high %v8430_v44, %v8946_v29  ;;  %v1625_v10 = vpack.c.bf16 %v1345_v39, %v1209_v16 }
 0x27c   :  { %v2494_v15 = vrot.slane %v2486_v23, %v8496_v9  ;;  %v10687_v3 = vcombine.low %v8632_v20, %v8635_v21  ;;  %v9058_v45 = vpop.permute.xlu1 %1696  ;;  %v2402_v43 = vcombine.low %v2358_v12, %v2390_v27  ;;  %v10688_v28 = vcombine.low %v8676_v1, %v8679_v24 }
 0x27d   :  { %v2526_v25 = vrot.slane %v2518_v63, %v8496_v9  ;;  %v10689_v44 = vcombine.low %v8682_v19, %v8685_v32  ;;  %v2351_v23 = vcombine.high %v2285_v5, %v2301_v59  ;;  %v2383_v16 = vcombine.high %v8986_v17, %v2333_v60 }
 0x27e   :  { %v1166_v54 = vrot.slane %v10687_v3, %v8496_v9  ;;  %v1302_v53 = vrot.slane %v10688_v28, %v8496_v9  ;;  %7626 = vmatmul.mubr.msk.bf16.vlgmr.msra.gmra.mxu0 %vm4022_vm1, %v1625_v10  ;;  %v2487_v39 = vcombine.high %v2421_v31, %v2437_v30  ;;  %v2519_v3 = vcombine.high %v2453_v56, %v2469_v14 }
 0x27f   :  { %v1334_v29 = vrot.slane %v10689_v44, %v8496_v9  ;;  %v2538_v42 = vcombine.low %v2494_v15, %v2526_v25  ;;  %v2403_v52 = vcombine.high %v2358_v12, %v2390_v27  ;;  %v2539_v63 = vcombine.high %v2494_v15, %v2526_v25  ;;  %7637 = vmatprep.mubr.msk.bf16.mxu0 %vm8213_vm0, %v10674_v35  ;;  %v1719_v12 = vpop.permute.xlu0 %1718 }
 0x280   :  { %v2150_v26 = vcombine.low %v8920_v46, %v8988_v58  ;;  %v10690_v28 = vcombine.low %v8648_v36, %v8651_v40  ;;  %v9080_v5 = vrot.slane %v2351_v23, %v8496_v9  ;;  %v2501_v59 = vrot.slane %v2487_v39, %v8496_v9  ;;  %v9087_v14 = vpop.permute.xlu1 %1708 }
 0x281   :  { %v2533_v17 = vrot.slane %v2519_v3, %v8496_v9  ;;  %v2818_v60 = vpack.c.bf16 %v2538_v42, %v2402_v43  ;;  %v2819_v31 = vpack.c.bf16 %v2539_v63, %v2403_v52  ;;  %v2397_v30 = vrot.slane %v2383_v16, %v8496_v9 }
 0x282   :  { %v1198_v44 = vrot.slane %v10690_v28, %v8496_v9  ;;  %v2151_v56 = vcombine.high %v8920_v46, %v8988_v58  ;;  %v2142_v27 = vrot.slane %v2134_v7, %v8493_v6  ;;  %v2149_v15 = vrot.slane %v2135_v34, %v8493_v6 }
 0x283   :  { %v1346_v10 = vcombine.low %v1302_v53, %v1334_v29  ;;  %v2158_v25 = vrot.slane %v2150_v26, %v8493_v6  ;;  %v4215_v23 = vsel %vm4022_vm1, %v2818_v60, 0  ;;  %v4262_v42 = vsel %vm4022_vm1, %v2819_v31, 0  ;;  %v515_v38 = vpop.permute.xlu0 %514 }
 0x284   :  { %v2540_v52 = vcombine.low %v2501_v59, %v2533_v17  ;;  %v2165_v43 = vrot.slane %v2151_v56, %v8493_v6  ;;  %7630 = vmatpush3.bf16.xpose.msra.mxu1 %v4215_v23  ;;  %v1210_v16 = vcombine.low %v1166_v54, %v1198_v44  ;;  %7636 = vmatpush3.bf16.xpose.msra.mxu0 %v4262_v42  ;;  %v9108_v7 = vpop.permute.xlu1 %1720 }
 0x285   :  { %v2198_v46 = vcombine.low %v2142_v27, %v2158_v25  ;;  %v2030_v58 = vcombine.low %v8936_v33, %v9049_v8  ;;  %7641 = vmatprep.subr.bf16.mxu1 %v10674_v35  ;;  %v2404_v26 = vcombine.low %v9080_v5, %v2397_v30  ;;  %v2199_v34 = vcombine.high %v2142_v27, %v2158_v25 }
 0x286   :  { %v2214_v39 = vcombine.low %v2149_v15, %v2165_v43  ;;  %v7380_v3 = vcombine.high %v9026_v0, %v9029_v41  ;;  %v7384_v28 = vcombine.high %v9042_v51, %v9045_v4  ;;  %v1626_v60 = vpack.c.bf16 %v1346_v10, %v1210_v16  ;;  %7647 = vmatprep.subr.bf16.mxu0 %v10674_v35 }
 0x287   :  { %v2820_v31 = vpack.c.bf16 %v2540_v52, %v2404_v26  ;;  %v2215_v56 = vcombine.high %v2149_v15, %v2165_v43  ;;  %v1211_v23 = vcombine.high %v1166_v54, %v1198_v44  ;;  %v1347_v42 = vcombine.high %v1302_v53, %v1334_v29 }
 0x288   :  { %v9111_v27 = vrot.slane %v2198_v46, %v8496_v9  ;;  %v2031_v25 = vcombine.high %v8936_v33, %v9049_v8  ;;  %v2038_v63 = vrot.slane %v2030_v58, %v8493_v6  ;;  %v10691_v10 = vcombine.high %v8676_v1, %v8679_v24 }
 0x289   :  { %v9121_v15 = vrot.slane %v2199_v34, %v8496_v9  ;;  %v9124_v53 = vrot.slane %v2214_v39, %v8496_v9  ;;  %v1627_v54 = vpack.c.bf16 %v1347_v42, %v1211_v23  ;;  %v10692_v29 = vcombine.high %v8682_v19, %v8685_v32 }
 0x28a   :  { %v1309_v16 = vrot.slane %v10691_v10, %v8496_v9  ;;  %v10693_v33 = vcombine.high %v8632_v20, %v8635_v21  ;;  %v10694_v1 = vcombine.high %v8648_v36, %v8651_v40  ;;  %v2046_v52 = vcombine.low %v8994_v18, %v1719_v12 }
 0x28b   :  { %v1341_v44 = vrot.slane %v10692_v29, %v8496_v9  ;;  %v2047_v43 = vcombine.high %v8994_v18, %v1719_v12  ;;  %7632 = vmatmul.mubr.msk.bf16.vlgmr.msra.gmra.mxu1 %vm4022_vm1, %v1626_v60  ;;  %v4309_v46 = vsel %vm4022_vm1, %v2820_v31, 0  ;;  %v9143_v19 = vrot.slane %v2215_v56, %v8496_v9  ;;  %7638 = vmatmul.mubr.msk.bf16.vlgmr.msra.gmra.mxu0 %vm4022_vm1, %v1627_v54 }
 0x28c   :  { %v1173_v8 = vrot.slane %v10693_v33, %v8496_v9  ;;  %v1205_v24 = vrot.slane %v10694_v1, %v8496_v9  ;;  %v2405_v20 = vcombine.high %v9080_v5, %v2397_v30  ;;  %v2541_v21 = vcombine.high %v2501_v59, %v2533_v17  ;;  %7642 = vmatpush3.bf16.xpose.msra.mxu1 %v4309_v46  ;;  %v527_v5 = vpop.permute.xlu0 %526  ;;  %v9156_v59 = vpop.permute.xlu1 %516 }
 0x28d   :  { %7643 = vmatprep.mubr.msk.bf16.mxu1 %vm8213_vm0, %v10674_v35  ;;  %v1348_v36 = vcombine.low %v1309_v16, %v1341_v44  ;;  %v2054_v40 = vrot.slane %v2046_v52, %v8493_v6  ;;  %v2061_v32 = vrot.slane %v2047_v43, %v8493_v6  ;;  %v2045_v18 = vrot.slane %v2031_v25, %v8493_v6 }
 0x28e   :  { %v2821_v12 = vpack.c.bf16 %v2541_v21, %v2405_v20  ;;  %v838_v58 = vcombine.low %v8777_v61, %v515_v38  ;;  %v839_v26 = vcombine.high %v8777_v61, %v515_v38  ;;  %7649 = vmatprep.mubr.msk.bf16.mxu0 %vm8213_vm0, %v10674_v35  ;;  %v7386_v17 = vcombine.low %v9111_v27, %v9121_v15 }
 0x28f   :  { %v1212_v30 = vcombine.low %v1173_v8, %v1205_v24  ;;  %v2094_v34 = vcombine.low %v2038_v63, %v2054_v40  ;;  %v2166_v39 = vcombine.low %v9023_v50, %v9087_v14  ;;  %7653 = vmatprep.subr.bf16.mxu1 %v10674_v35  ;;  %v7388_v60 = vcombine.high %v9111_v27, %v9121_v15 }
 0x290   :  { %v7390_v61 = vcombine.low %v9124_v53, %v9143_v19  ;;  %v2095_v38 = vcombine.high %v2038_v63, %v2054_v40  ;;  %v4356_v31 = vsel %vm4022_vm1, %v2821_v12, 0  ;;  %v7392_v56 = vcombine.high %v9124_v53, %v9143_v19  ;;  %v9188_v21 = vpop.permute.xlu0 %2834 }
 0x291   :  { %v1628_v23 = vpack.c.bf16 %v1348_v36, %v1212_v30  ;;  %v2110_v42 = vcombine.low %v2045_v18, %v2061_v32  ;;  %v2111_v25 = vcombine.high %v2045_v18, %v2061_v32  ;;  %7648 = vmatpush3.bf16.xpose.msra.mxu0 %v4356_v31  ;;  %v846_v10 = vrot.slane %v838_v58, %v8493_v6  ;;  %v9190_v36 = vpop.permute.xlu1 %528 }
 0x292   :  { %v853_v54 = vrot.slane %v839_v26, %v8493_v6  ;;  %v1349_v29 = vcombine.high %v1309_v16, %v1341_v44  ;;  %v854_v33 = vcombine.low %v8806_v62, %v527_v5  ;;  %7659 = vmatprep.subr.bf16.mxu0 %v10674_v35  ;;  %v9175_v63 = vrot.slane %v2094_v34, %v8496_v9 }
 0x293   :  { %v2167_v1 = vcombine.high %v9023_v50, %v9087_v14  ;;  %v2174_v52 = vrot.slane %v2166_v39, %v8493_v6  ;;  %v1213_v43 = vcombine.high %v1173_v8, %v1205_v24  ;;  %7644 = vmatmul.mubr.msk.bf16.vlgmr.msra.gmra.mxu1 %vm4022_vm1, %v1628_v23  ;;  %v9182_v46 = vrot.slane %v2095_v38, %v8496_v9 }
 0x294   :  { %v855_v16 = vcombine.high %v8806_v62, %v527_v5  ;;  %v862_v44 = vrot.slane %v854_v33, %v8493_v6  ;;  %v2182_v20 = vcombine.low %v9058_v45, %v9108_v7  ;;  %v9193_v50 = vrot.slane %v2110_v42, %v8496_v9  ;;  %7655 = vmatprep.mubr.msk.bf16.mxu1 %vm8213_vm0, %v10674_v35 }
 0x295   :  { %v9196_v14 = vrot.slane %v2111_v25, %v8496_v9  ;;  %v1629_v8 = vpack.c.bf16 %v1349_v29, %v1213_v43  ;;  %v2183_v24 = vcombine.high %v9058_v45, %v9108_v7  ;;  %v2181_v12 = vrot.slane %v2167_v1, %v8493_v6  ;;  %v9219_v29 = vpop.permute.xlu1 %2836 }
 0x296   :  { %v869_v62 = vrot.slane %v855_v16, %v8493_v6  ;;  %v902_v40 = vcombine.low %v846_v10, %v862_v44  ;;  %v903_v32 = vcombine.high %v846_v10, %v862_v44  ;;  %v2190_v18 = vrot.slane %v2182_v20, %v8493_v6  ;;  %v9217_v10 = vpop.permute.xlu0 %2858 }
 0x297   :  { %v2197_v58 = vrot.slane %v2183_v24, %v8493_v6  ;;  %v974_v26 = vcombine.low %v8850_v11, %v9156_v59  ;;  %v975_v5 = vcombine.high %v8850_v11, %v9156_v59  ;;  %v990_v27 = vcombine.low %v8894_v2, %v9190_v36 }
 0x298   :  { %7650 = vmatmul.mubr.msk.bf16.vlgmr.msra.gmra.mxu0 %vm4022_vm1, %v1629_v8  ;;  %v910_v45 = vrot.slane %v902_v40, %v8496_v9  ;;  %v917_v7 = vrot.slane %v903_v32, %v8496_v9  ;;  %v918_v30 = vcombine.low %v853_v54, %v869_v62  ;;  %v919_v34 = vcombine.high %v853_v54, %v869_v62 }
 0x299   :  { %v2230_v39 = vcombine.low %v2174_v52, %v2190_v18  ;;  %v2231_v38 = vcombine.high %v2174_v52, %v2190_v18  ;;  %v2246_v31 = vcombine.low %v2181_v12, %v2197_v58  ;;  %v2247_v23 = vcombine.high %v2181_v12, %v2197_v58  ;;  %7661 = vmatprep.mubr.msk.bf16.mxu0 %vm8213_vm0, %v10674_v35 }
 0x29a   :  { %v926_v42 = vrot.slane %v918_v30, %v8496_v9  ;;  %v933_v25 = vrot.slane %v919_v34, %v8496_v9  ;;  %v7347_v11 = vcombine.low %v910_v45, %v917_v7  ;;  %v7349_v59 = vcombine.high %v910_v45, %v917_v7 }
 0x29b   :  { %v9226_v1 = vrot.slane %v2230_v39, %v8496_v9  ;;  %v9229_v52 = vrot.slane %v2231_v38, %v8496_v9  ;;  %v9236_v44 = vrot.slane %v2246_v31, %v8496_v9  ;;  %v9239_v20 = vrot.slane %v2247_v23, %v8496_v9 }
 0x29c   :  { %v982_v8 = vrot.slane %v974_v26, %v8493_v6  ;;  %v989_v24 = vrot.slane %v975_v5, %v8493_v6  ;;  %v2934_v62 = vcombine.low %v9188_v21, %v9217_v10  ;;  %v2935_v40 = vcombine.high %v9188_v21, %v9217_v10 }
 0x29d   :  { %v9248_v32 = vrot.slane %v7347_v11, %v8493_v6  ;;  %v9251_v18 = vrot.slane %v7349_v59, %v8493_v6  ;;  %v7351_v12 = vcombine.low %v926_v42, %v933_v25  ;;  %v7353_v58 = vcombine.high %v926_v42, %v933_v25  ;;  %v9336_v11 = vpop.permute.xlu0 %2870 }
 0x29e   :  { %v10695_v5 = vcombine.low %v9026_v0, %v9029_v41  ;;  %v9267_v21 = vrot.slane %v7380_v3, %v8493_v6  ;;  %v10696_v39 = vcombine.low %v9042_v51, %v9045_v4  ;;  %v9283_v31 = vrot.slane %v7384_v28, %v8493_v6  ;;  %v9285_v0 = vpop.permute.xlu1 %2846 }
 0x29f   :  { %v9293_v3 = vrot.slane %v7386_v17, %v8493_v6  ;;  %v9299_v23 = vrot.slane %v7388_v60, %v8493_v6  ;;  %v9305_v51 = vrot.slane %v7390_v61, %v8493_v6  ;;  %v9313_v28 = vrot.slane %v7392_v56, %v8493_v6 }
 0x2a0   :  { %v9261_v7 = vrot.slane %v10695_v5, %v8493_v6  ;;  %v9277_v38 = vrot.slane %v10696_v39, %v8493_v6  ;;  %v991_v15 = vcombine.high %v8894_v2, %v9190_v36  ;;  %v9320_v17 = vrot.slane %v7351_v12, %v8493_v6 }
 0x2a1   :  { %v9323_v60 = vrot.slane %v7353_v58, %v8493_v6  ;;  %v2742_v42 = vcombine.low %v9293_v3, %v9299_v23  ;;  %v2774_v19 = vcombine.low %v9305_v51, %v9313_v28  ;;  %v998_v56 = vrot.slane %v990_v27, %v8493_v6 }
 0x2a2   :  { %v2606_v41 = vcombine.low %v9261_v7, %v9267_v21  ;;  %v2638_v4 = vcombine.low %v9277_v38, %v9283_v31  ;;  %v1005_v2 = vrot.slane %v991_v15, %v8493_v6  ;;  %v10697_v59 = vcombine.low %v8949_v47, %v8952_v37 }
 0x2a3   :  { %v2750_v25 = vrot.slane %v2742_v42, %v8496_v9  ;;  %v10698_v12 = vcombine.low %v8968_v48, %v8971_v13  ;;  %v2782_v5 = vrot.slane %v2774_v19, %v8496_v9  ;;  %v1038_v39 = vcombine.low %v982_v8, %v998_v56  ;;  %v9355_v42 = vpop.permute.xlu1 %2848 }
 0x2a4   :  { %v2614_v61 = vrot.slane %v2606_v41, %v8496_v9  ;;  %v2646_v53 = vrot.slane %v2638_v4, %v8496_v9  ;;  %v1558_v10 = vrot.slane %v10697_v59, %v8496_v9  ;;  %v10699_v41 = vcombine.low %v8853_v49, %v8897_v22 }
 0x2a5   :  { %v1590_v58 = vrot.slane %v10698_v12, %v8496_v9  ;;  %v10700_v27 = vcombine.low %v8905_v57, %v8923_v55  ;;  %v1039_v36 = vcombine.high %v982_v8, %v998_v56  ;;  %v1054_v34 = vcombine.low %v989_v24, %v1005_v2 }
 0x2a6   :  { %v1422_v4 = vrot.slane %v10699_v41, %v8496_v9  ;;  %v2670_v59 = vcombine.low %v2614_v61, %v2646_v53  ;;  %v1055_v30 = vcombine.high %v989_v24, %v1005_v2  ;;  %v2806_v12 = vcombine.low %v2750_v25, %v2782_v5 }
 0x2a7   :  { %v1454_v15 = vrot.slane %v10700_v27, %v8496_v9  ;;  %v2671_v26 = vcombine.high %v2614_v61, %v2646_v53  ;;  %v2807_v19 = vcombine.high %v2750_v25, %v2782_v5  ;;  %v1046_v45 = vrot.slane %v1038_v39, %v8496_v9  ;;  %v2895_v25 = vpop.permute.xlu0 %2894 }
 0x2a8   :  { %v1431_v16 = vcombine.high %v9248_v32, %v9251_v18  ;;  %v9361_v41 = vrot.slane %v2934_v62, %v8493_v6  ;;  %v1053_v43 = vrot.slane %v1039_v36, %v8496_v9  ;;  %v1614_v27 = vcombine.low %v1558_v10, %v1590_v58 }
 0x2a9   :  { %v2822_v33 = vpack.c.bf16 %v2806_v12, %v2670_v59  ;;  %v2823_v54 = vpack.c.bf16 %v2807_v19, %v2671_v26  ;;  %v1062_v8 = vrot.slane %v1054_v34, %v8496_v9  ;;  %v1069_v24 = vrot.slane %v1055_v30, %v8496_v9  ;;  %v9373_v26 = vpop.permute.xlu1 %2860 }
 0x2aa   :  { %v1462_v61 = vcombine.low %v9320_v17, %v9323_v60  ;;  %v9369_v53 = vrot.slane %v2935_v40, %v8493_v6  ;;  %v1478_v56 = vcombine.low %v1422_v4, %v1454_v15  ;;  %v1615_v2 = vcombine.high %v1558_v10, %v1590_v58 }
 0x2ab   :  { %v4403_v62 = vsel %vm4022_vm1, %v2822_v33, 0  ;;  %v4450_v36 = vsel %vm4022_vm1, %v2823_v54, 0  ;;  %v7355_v5 = vcombine.low %v1046_v45, %v1053_v43  ;;  %v7357_v39 = vcombine.high %v1046_v45, %v1053_v43 }
 0x2ac   :  { %v1463_v30 = vcombine.high %v9320_v17, %v9323_v60  ;;  %7654 = vmatpush3.bf16.xpose.msra.mxu1 %v4403_v62  ;;  %7660 = vmatpush3.bf16.xpose.msra.mxu0 %v4450_v36  ;;  %v1630_v34 = vpack.c.bf16 %v1614_v27, %v1478_v56  ;;  %v1479_v59 = vcombine.high %v1422_v4, %v1454_v15 }
 0x2ad   :  { %v7359_v40 = vcombine.low %v1062_v8, %v1069_v24  ;;  %v7361_v12 = vcombine.high %v1062_v8, %v1069_v24  ;;  %7665 = vmatprep.subr.bf16.mxu1 %v10674_v35  ;;  %7671 = vmatprep.subr.bf16.mxu0 %v10674_v35  ;;  %v2950_v33 = vcombine.low %v9336_v11, %v2895_v25 }
 0x2ae   :  { %v1631_v54 = vpack.c.bf16 %v1615_v2, %v1479_v59  ;;  %v2951_v43 = vcombine.high %v9336_v11, %v2895_v25  ;;  %v2607_v45 = vcombine.high %v9261_v7, %v9267_v21  ;;  %v2639_v10 = vcombine.high %v9277_v38, %v9283_v31  ;;  %v10701_v7 = vld [vmem:[#allocation15_spill] sm:$0xff]  ;;  %v9401_v31 = vpop.permute.xlu0 %2906 }
 0x2af   :  { %v9386_v58 = vrot.slane %v7355_v5, %v8493_v6  ;;  %v9389_v4 = vrot.slane %v7357_v39, %v8493_v6  ;;  %v2743_v15 = vcombine.high %v9293_v3, %v9299_v23  ;;  %v2775_v19 = vcombine.high %v9305_v51, %v9313_v28  ;;  %v9411_v28 = vpop.permute.xlu1 %2872 }
 0x2b0   :  { %v2621_v11 = vrot.slane %v2607_v45, %v8496_v9  ;;  %v2653_v27 = vrot.slane %v2639_v10, %v8496_v9  ;;  %v2918_v21 = vcombine.low %v10701_v7, %v9285_v0  ;;  %v2919_v38 = vcombine.high %v10701_v7, %v9285_v0 }
 0x2b1   :  { %v9404_v8 = vrot.slane %v7359_v40, %v8493_v6  ;;  %v9407_v3 = vrot.slane %v7361_v12, %v8493_v6  ;;  %v2757_v23 = vrot.slane %v2743_v15, %v8496_v9  ;;  %v2789_v51 = vrot.slane %v2775_v19, %v8496_v9 }
 0x2b2   :  { %v9414_v24 = vrot.slane %v2950_v33, %v8493_v6  ;;  %v2672_v56 = vcombine.low %v2621_v11, %v2653_v27  ;;  %v2926_v0 = vrot.slane %v2918_v21, %v8493_v6  ;;  %v2933_v2 = vrot.slane %v2919_v38, %v8493_v6 }
 0x2b3   :  { %7656 = vmatmul.mubr.msk.bf16.vlgmr.msra.gmra.mxu1 %vm4022_vm1, %v1630_v34  ;;  %7662 = vmatmul.mubr.msk.bf16.vlgmr.msra.gmra.mxu0 %vm4022_vm1, %v1631_v54  ;;  %v2808_v25 = vcombine.low %v2757_v23, %v2789_v51  ;;  %v2673_v62 = vcombine.high %v2621_v11, %v2653_v27  ;;  %v2809_v36 = vcombine.high %v2757_v23, %v2789_v51  ;;  %v10702_v54 = vld [vmem:[#allocation16_spill] sm:$0xff]  ;;  %v9445_v11 = vpop.permute.xlu0 %2838  ;;  %v9457_v51 = vpop.permute.xlu1 %2882 }
 0x2b4   :  { %v1566_v5 = vcombine.low %v9386_v58, %v9389_v4  ;;  %v9423_v39 = vrot.slane %v2951_v43, %v8493_v6  ;;  %v2982_v59 = vcombine.low %v2926_v0, %v9361_v41  ;;  %v2983_v40 = vcombine.high %v2926_v0, %v9361_v41  ;;  %7667 = vmatprep.mubr.msk.bf16.mxu1 %vm8213_vm0, %v10674_v35 }
 0x2b5   :  { %v2824_v12 = vpack.c.bf16 %v2808_v25, %v2672_v56  ;;  %v2825_v34 = vpack.c.bf16 %v2809_v36, %v2673_v62  ;;  %v2998_v33 = vcombine.low %v2933_v2, %v9369_v53  ;;  %7673 = vmatprep.mubr.msk.bf16.mxu0 %vm8213_vm0, %v10674_v35  ;;  %v3054_v45 = vcombine.low %v10702_v54, %v9355_v42 }
 0x2b6   :  { %v9435_v43 = vrot.slane %v2982_v59, %v8496_v9  ;;  %v9438_v10 = vrot.slane %v2983_v40, %v8496_v9  ;;  %v2999_v41 = vcombine.high %v2933_v2, %v9369_v53  ;;  %v10703_v15 = vcombine.high %v8853_v49, %v8897_v22 }
 0x2b7   :  { %v4497_v27 = vsel %vm4022_vm1, %v2824_v12, 0  ;;  %v4544_v7 = vsel %vm4022_vm1, %v2825_v34, 0  ;;  %v10704_v21 = vcombine.high %v8905_v57, %v8923_v55  ;;  %v10705_v53 = vcombine.high %v8949_v47, %v8952_v37 }
 0x2b8   :  { %v1429_v19 = vrot.slane %v10703_v15, %v8496_v9  ;;  %v1567_v49 = vcombine.high %v9386_v58, %v9389_v4  ;;  %v1598_v22 = vcombine.low %v9404_v8, %v9407_v3  ;;  %v1599_v56 = vcombine.high %v9404_v8, %v9407_v3  ;;  %7666 = vmatpush3.bf16.xpose.msra.mxu1 %v4497_v27 }
 0x2b9   :  { %v1461_v38 = vrot.slane %v10704_v21, %v8496_v9  ;;  %v1565_v23 = vrot.slane %v10705_v53, %v8496_v9  ;;  %7672 = vmatpush3.bf16.xpose.msra.mxu0 %v4544_v7  ;;  %v9466_v57 = vrot.slane %v2998_v33, %v8496_v9  ;;  %v3055_v55 = vcombine.high %v10702_v54, %v9355_v42 }
 0x2ba   :  { %v3062_v47 = vrot.slane %v3054_v45, %v8493_v6  ;;  %v10706_v37 = vcombine.high %v8968_v48, %v8971_v13  ;;  %7677 = vmatprep.subr.bf16.mxu1 %v10674_v35  ;;  %v3013_v2 = vrot.slane %v2999_v41, %v8496_v9  ;;  %v7394_v25 = vcombine.low %v9435_v43, %v9438_v10 }
 0x2bb   :  { %v1480_v62 = vcombine.low %v1429_v19, %v1461_v38  ;;  %7683 = vmatprep.subr.bf16.mxu0 %v10674_v35  ;;  %v10707_v42 = vcombine.low %v9175_v63, %v9182_v46  ;;  %v1481_v40 = vcombine.high %v1429_v19, %v1461_v38  ;;  %v10708_v13 = vcombine.high %v9175_v63, %v9182_v46  ;;  %v2863_v19 = vpop.permute.xlu0 %2862  ;;  %v9524_v38 = vpop.permute.xlu1 %2884 }
 0x2bc   :  { %v1597_v0 = vrot.slane %v10706_v37, %v8496_v9  ;;  %v10709_v34 = vcombine.low %v9193_v50, %v9196_v14  ;;  %v10710_v54 = vcombine.high %v9193_v50, %v9196_v14  ;;  %v10711_v41 = vcombine.low %v9226_v1, %v9229_v52 }
 0x2bd   :  { %v9484_v36 = vrot.slane %v10707_v42, %v8493_v6  ;;  %v9490_v12 = vrot.slane %v10708_v13, %v8493_v6  ;;  %v10712_v63 = vcombine.high %v9226_v1, %v9229_v52  ;;  %v10713_v14 = vcombine.low %v9236_v44, %v9239_v20 }
 0x2be   :  { %v1616_v59 = vcombine.low %v1565_v23, %v1597_v0  ;;  %v1617_v48 = vcombine.high %v1565_v23, %v1597_v0  ;;  %v9496_v33 = vrot.slane %v10709_v34, %v8493_v6  ;;  %v9502_v45 = vrot.slane %v10710_v54, %v8493_v6 }
 0x2bf   :  { %v9508_v15 = vrot.slane %v10711_v41, %v8493_v6  ;;  %v9514_v46 = vrot.slane %v10712_v63, %v8493_v6  ;;  %v2622_v50 = vcombine.low %v9484_v36, %v9490_v12  ;;  %v9522_v21 = vrot.slane %v10713_v14, %v8493_v6 }
 0x2c0   :  { %v1632_v27 = vpack.c.bf16 %v1616_v59, %v1480_v62  ;;  %v1633_v7 = vpack.c.bf16 %v1617_v48, %v1481_v40  ;;  %v2654_v53 = vcombine.low %v9496_v33, %v9502_v45  ;;  %v10714_v1 = vcombine.high %v9236_v44, %v9239_v20 }
 0x2c1   :  { %v2758_v23 = vcombine.low %v9508_v15, %v9514_v46  ;;  %v3070_v37 = vcombine.low %v9219_v29, %v9373_v26  ;;  %v2630_v0 = vrot.slane %v2622_v50, %v8496_v9  ;;  %v3071_v62 = vcombine.high %v9219_v29, %v9373_v26 }
 0x2c2   :  { %v9532_v52 = vrot.slane %v10714_v1, %v8493_v6  ;;  %7668 = vmatmul.mubr.msk.bf16.vlgmr.msra.gmra.mxu1 %vm4022_vm1, %v1632_v27  ;;  %7674 = vmatmul.mubr.msk.bf16.vlgmr.msra.gmra.mxu0 %vm4022_vm1, %v1633_v7  ;;  %v3206_v42 = vcombine.low %v9445_v11, %v2863_v19  ;;  %v2662_v44 = vrot.slane %v2654_v53, %v8496_v9 }
 0x2c3   :  { %v2766_v20 = vrot.slane %v2758_v23, %v8496_v9  ;;  %v3078_v40 = vrot.slane %v3070_v37, %v8493_v6  ;;  %7679 = vmatprep.mubr.msk.bf16.mxu1 %vm8213_vm0, %v10674_v35  ;;  %v7396_v48 = vcombine.high %v9435_v43, %v9438_v10  ;;  %v3069_v13 = vrot.slane %v3055_v55, %v8493_v6 }
 0x2c4   :  { %v2790_v59 = vcombine.low %v9522_v21, %v9532_v52  ;;  %v3085_v29 = vrot.slane %v3071_v62, %v8493_v6  ;;  %v3207_v26 = vcombine.high %v9445_v11, %v2863_v19  ;;  %7685 = vmatprep.mubr.msk.bf16.mxu0 %vm8213_vm0, %v10674_v35  ;;  %v7398_v34 = vcombine.low %v9466_v57, %v3013_v2  ;;  %v9568_v19 = vpop.permute.xlu1 %2896 }
 0x2c5   :  { %v7400_v54 = vcombine.high %v9466_v57, %v3013_v2  ;;  %v3118_v63 = vcombine.low %v3062_v47, %v3078_v40  ;;  %v9562_v27 = vrot.slane %v7394_v25, %v8493_v6  ;;  %v2674_v43 = vcombine.low %v2630_v0, %v2662_v44 }
 0x2c6   :  { %v2798_v41 = vrot.slane %v2790_v59, %v8496_v9  ;;  %v3119_v10 = vcombine.high %v3062_v47, %v3078_v40  ;;  %v10715_v55 = vcombine.low %v9248_v32, %v9251_v18  ;;  %v2675_v50 = vcombine.high %v2630_v0, %v2662_v44 }
 0x2c7   :  { %v3134_v53 = vcombine.low %v3069_v13, %v3085_v29  ;;  %v9571_v57 = vrot.slane %v3118_v63, %v8496_v9  ;;  %v3135_v2 = vcombine.high %v3069_v13, %v3085_v29  ;;  %v1470_v47 = vrot.slane %v1462_v61, %v8496_v9 }
 0x2c8   :  { %v1438_v11 = vrot.slane %v10715_v55, %v8496_v9  ;;  %v2810_v7 = vcombine.low %v2766_v20, %v2798_v41  ;;  %v2811_v14 = vcombine.high %v2766_v20, %v2798_v41  ;;  %v1574_v25 = vrot.slane %v1566_v5, %v8496_v9 }
 0x2c9   :  { %v9582_v37 = vrot.slane %v3119_v10, %v8496_v9  ;;  %v1606_v0 = vrot.slane %v1598_v22, %v8496_v9  ;;  %v9589_v62 = vrot.slane %v7396_v48, %v8493_v6  ;;  %v9592_v61 = vrot.slane %v7398_v34, %v8493_v6  ;;  %v9607_v34 = vpop.permute.xlu1 %2908 }
 0x2ca   :  { %v2826_v1 = vpack.c.bf16 %v2810_v7, %v2674_v43  ;;  %v2827_v23 = vpack.c.bf16 %v2811_v14, %v2675_v50  ;;  %v9595_v44 = vrot.slane %v7400_v54, %v8493_v6  ;;  %v9598_v5 = vrot.slane %v3206_v42, %v8493_v6 }
 0x2cb   :  { %v9603_v40 = vrot.slane %v3207_v26, %v8493_v6  ;;  %v1618_v22 = vcombine.low %v1574_v25, %v1606_v0  ;;  %v3142_v48 = vrot.slane %v3134_v53, %v8496_v9  ;;  %v3149_v13 = vrot.slane %v3135_v2, %v8496_v9 }
 0x2cc   :  { %v4591_v20 = vsel %vm4022_vm1, %v2826_v1, 0  ;;  %v4638_v59 = vsel %vm4022_vm1, %v2827_v23, 0  ;;  %v1482_v29 = vcombine.low %v1438_v11, %v1470_v47  ;;  %v7402_v42 = vcombine.low %v9571_v57, %v9582_v37 }
 0x2cd   :  { %7678 = vmatpush3.bf16.xpose.msra.mxu1 %v4591_v20  ;;  %7684 = vmatpush3.bf16.xpose.msra.mxu0 %v4638_v59  ;;  %v1483_v54 = vcombine.high %v1438_v11, %v1470_v47  ;;  %v1619_v41 = vcombine.high %v1574_v25, %v1606_v0  ;;  %v2623_v26 = vcombine.high %v9484_v36, %v9490_v12 }
 0x2ce   :  { %7689 = vmatprep.subr.bf16.mxu1 %v10674_v35  ;;  %7695 = vmatprep.subr.bf16.mxu0 %v10674_v35  ;;  %v2655_v63 = vcombine.high %v9496_v33, %v9502_v45  ;;  %v2759_v43 = vcombine.high %v9508_v15, %v9514_v46  ;;  %v2791_v10 = vcombine.high %v9522_v21, %v9532_v52 }
 0x2cf   :  { %v1634_v55 = vpack.c.bf16 %v1618_v22, %v1482_v29  ;;  %v1635_v7 = vpack.c.bf16 %v1619_v41, %v1483_v54  ;;  %v2966_v11 = vcombine.low %v9457_v51, %v9401_v31  ;;  %v2967_v50 = vcombine.high %v9457_v51, %v9401_v31  ;;  %v9633_v51 = vpop.permute.xlu1 %2840 }
 0x2d0   :  { %v2637_v14 = vrot.slane %v2623_v26, %v8496_v9  ;;  %v2669_v36 = vrot.slane %v2655_v63, %v8496_v9  ;;  %v2773_v12 = vrot.slane %v2759_v43, %v8496_v9  ;;  %v2805_v33 = vrot.slane %v2791_v10, %v8496_v9 }
 0x2d1   :  { %v7404_v45 = vcombine.high %v9571_v57, %v9582_v37  ;;  %v7406_v15 = vcombine.low %v3142_v48, %v3149_v13  ;;  %v2974_v46 = vrot.slane %v2966_v11, %v8493_v6  ;;  %v2981_v21 = vrot.slane %v2967_v50, %v8493_v6 }
 0x2d2   :  { %v2676_v52 = vcombine.low %v2637_v14, %v2669_v36  ;;  %v2812_v53 = vcombine.low %v2773_v12, %v2805_v33  ;;  %v2677_v2 = vcombine.high %v2637_v14, %v2669_v36  ;;  %v2813_v31 = vcombine.high %v2773_v12, %v2805_v33 }
 0x2d3   :  { %v3014_v47 = vcombine.low %v9414_v24, %v2974_v46  ;;  %v3015_v25 = vcombine.high %v9414_v24, %v2974_v46  ;;  %v3030_v57 = vcombine.low %v9423_v39, %v2981_v21  ;;  %v7408_v1 = vcombine.high %v3142_v48, %v3149_v13 }
 0x2d4   :  { %7680 = vmatmul.mubr.msk.bf16.vlgmr.msra.gmra.mxu1 %vm4022_vm1, %v1634_v55  ;;  %7686 = vmatmul.mubr.msk.bf16.vlgmr.msra.gmra.mxu0 %vm4022_vm1, %v1635_v7  ;;  %v2828_v23 = vpack.c.bf16 %v2812_v53, %v2676_v52  ;;  %v2829_v37 = vpack.c.bf16 %v2813_v31, %v2677_v2  ;;  %v3031_v0 = vcombine.high %v9423_v39, %v2981_v21 }
 0x2d5   :  { %7691 = vmatprep.mubr.msk.bf16.mxu1 %vm8213_vm0, %v10674_v35  ;;  %v9644_v20 = vrot.slane %v3014_v47, %v8496_v9  ;;  %v9647_v59 = vrot.slane %v3015_v25, %v8496_v9  ;;  %v9650_v22 = vrot.slane %v3030_v57, %v8496_v9  ;;  %7697 = vmatprep.mubr.msk.bf16.mxu0 %vm8213_vm0, %v10674_v35 }
 0x2d6   :  { %v1445_v24 = vrot.slane %v1431_v16, %v8496_v9  ;;  %v4685_v39 = vsel %vm4022_vm1, %v2828_v23, 0  ;;  %v4732_v48 = vsel %vm4022_vm1, %v2829_v37, 0  ;;  %v9661_v13 = vrot.slane %v3031_v0, %v8496_v9 }
 0x2d7   :  { %v1477_v29 = vrot.slane %v1463_v30, %v8496_v9  ;;  %v9668_v54 = vrot.slane %v7402_v42, %v8493_v6  ;;  %v9671_v41 = vrot.slane %v7404_v45, %v8493_v6  ;;  %7690 = vmatpush3.bf16.xpose.msra.mxu1 %v4685_v39  ;;  %7696 = vmatpush3.bf16.xpose.msra.mxu0 %v4732_v48  ;;  %v2851_v30 = vpop.permute.xlu1 %2850 }
 0x2d8   :  { %v1581_v16 = vrot.slane %v1567_v49, %v8496_v9  ;;  %v9678_v32 = vrot.slane %v7406_v15, %v8493_v6  ;;  %v9681_v18 = vrot.slane %v7408_v1, %v8493_v6  ;;  %v7395_v17 = vcombine.low %v9644_v20, %v9647_v59  ;;  %7701 = vmatprep.subr.bf16.mxu1 %v10674_v35 }
 0x2d9   :  { %v1613_v60 = vrot.slane %v1599_v56, %v8496_v9  ;;  %v7397_v58 = vcombine.high %v9644_v20, %v9647_v59  ;;  %v7399_v4 = vcombine.low %v9650_v22, %v9661_v13  ;;  %v7401_v49 = vcombine.high %v9650_v22, %v9661_v13  ;;  %7707 = vmatprep.subr.bf16.mxu0 %v10674_v35  ;;  %v10716_v20 = vld [vmem:[#allocation17_spill] sm:$0xff] }
 0x2da   :  { %v3086_v42 = vcombine.low %v9411_v28, %v9568_v19  ;;  %v1484_v26 = vcombine.low %v1445_v24, %v1477_v29  ;;  %v1485_v3 = vcombine.high %v1445_v24, %v1477_v29  ;;  %v3087_v63 = vcombine.high %v9411_v28, %v9568_v19 }
 0x2db   :  { %v1620_v8 = vcombine.low %v1581_v16, %v1613_v60  ;;  %v1621_v56 = vcombine.high %v1581_v16, %v1613_v60  ;;  %v3102_v10 = vcombine.low %v9524_v38, %v9607_v34  ;;  %v3103_v55 = vcombine.high %v9524_v38, %v9607_v34  ;;  %v2853_v45 = vpop.permute.xlu1 %2852 }
 0x2dc   :  { %v3094_v43 = vrot.slane %v3086_v42, %v8493_v6  ;;  %v3526_v50 = vcombine.low %v9562_v27, %v9589_v62  ;;  %v3558_v14 = vcombine.low %v9592_v61, %v9595_v44  ;;  %v3101_v36 = vrot.slane %v3087_v63, %v8493_v6 }
 0x2dd   :  { %v1636_v7 = vpack.c.bf16 %v1620_v8, %v1484_v26  ;;  %v1637_v11 = vpack.c.bf16 %v1621_v56, %v1485_v3  ;;  %v3110_v28 = vrot.slane %v3102_v10, %v8493_v6  ;;  %v3117_v19 = vrot.slane %v3103_v55, %v8493_v6  ;;  %v10717_v55 = vld [vmem:[#allocation18_spill] sm:$0xff] }
 0x2de   :  { %v3662_v12 = vcombine.low %v9668_v54, %v9671_v41  ;;  %v3534_v38 = vrot.slane %v3526_v50, %v8496_v9  ;;  %v3566_v34 = vrot.slane %v3558_v14, %v8496_v9  ;;  %v3694_v33 = vcombine.low %v9678_v32, %v9681_v18 }
 0x2df   :  { %7692 = vmatmul.mubr.msk.bf16.vlgmr.msra.gmra.mxu1 %vm4022_vm1, %v1636_v7  ;;  %7698 = vmatmul.mubr.msk.bf16.vlgmr.msra.gmra.mxu0 %vm4022_vm1, %v1637_v11  ;;  %v3150_v15 = vcombine.low %v3094_v43, %v3110_v28  ;;  %v3151_v46 = vcombine.high %v3094_v43, %v3110_v28  ;;  %v3166_v21 = vcombine.low %v3101_v36, %v3117_v19  ;;  %v2865_v26 = vpop.permute.xlu1 %2864 }
 0x2e0   :  { %v3167_v52 = vcombine.high %v3101_v36, %v3117_v19  ;;  %7703 = vmatprep.mubr.msk.bf16.mxu1 %vm8213_vm0, %v10674_v35  ;;  %v3590_v53 = vcombine.low %v3534_v38, %v3566_v34  ;;  %v3670_v2 = vrot.slane %v3662_v12, %v8496_v9  ;;  %v3702_v31 = vrot.slane %v3694_v33, %v8496_v9 }
 0x2e1   :  { %v3591_v47 = vcombine.high %v3534_v38, %v3566_v34  ;;  %7709 = vmatprep.mubr.msk.bf16.mxu0 %vm8213_vm0, %v10674_v35  ;;  %v3158_v25 = vrot.slane %v3150_v15, %v8496_v9  ;;  %v3165_v57 = vrot.slane %v3151_v46, %v8496_v9  ;;  %v3174_v1 = vrot.slane %v3166_v21, %v8496_v9 }
 0x2e2   :  { %v3181_v23 = vrot.slane %v3167_v52, %v8496_v9  ;;  %v3726_v37 = vcombine.low %v3670_v2, %v3702_v31  ;;  %v3727_v0 = vcombine.high %v3670_v2, %v3702_v31  ;;  %v3190_v59 = vcombine.low %v10716_v20, %v2851_v30 }
 0x2e3   :  { %v3191_v22 = vcombine.high %v10716_v20, %v2851_v30  ;;  %v7403_v24 = vcombine.low %v3158_v25, %v3165_v57  ;;  %v7405_v39 = vcombine.high %v3158_v25, %v3165_v57  ;;  %v9736_v8 = vrot.slane %v7395_v17, %v8493_v6 }
 0x2e4   :  { %v7407_v48 = vcombine.low %v3174_v1, %v3181_v23  ;;  %v7409_v13 = vcombine.high %v3174_v1, %v3181_v23  ;;  %v4006_v29 = vpack.c.bf16 %v3726_v37, %v3590_v53  ;;  %v4007_v16 = vpack.c.bf16 %v3727_v0, %v3591_v47 }
 0x2e5   :  { %v3198_v60 = vrot.slane %v3190_v59, %v8493_v6  ;;  %v3205_v42 = vrot.slane %v3191_v22, %v8493_v6  ;;  %v9739_v3 = vrot.slane %v7397_v58, %v8493_v6  ;;  %v9742_v56 = vrot.slane %v7399_v4, %v8493_v6 }
 0x2e6   :  { %v9745_v30 = vrot.slane %v7401_v49, %v8493_v6  ;;  %7702 = vmatpush3.bf16.msra.mxu1 %v4006_v29  ;;  %7708 = vmatpush3.bf16.msra.mxu0 %v4007_v16  ;;  %v3326_v7 = vcombine.low %v10717_v55, %v2853_v45  ;;  %v3327_v58 = vcombine.high %v10717_v55, %v2853_v45 }
 0x2e7   :  { %v3254_v63 = vcombine.low %v3198_v60, %v9598_v5  ;;  %v3255_v43 = vcombine.high %v3198_v60, %v9598_v5  ;;  %v3270_v10 = vcombine.low %v3205_v42, %v9603_v40  ;;  %v3271_v17 = vcombine.high %v3205_v42, %v9603_v40  ;;  %7713 = vmatprep.subr.bf16.mxu1 %v10674_v35 }
 0x2e8   :  { %v3342_v4 = vcombine.low %v9633_v51, %v2865_v26  ;;  %v3343_v5 = vcombine.high %v9633_v51, %v2865_v26  ;;  %7719 = vmatprep.subr.bf16.mxu0 %v10674_v35  ;;  %v9761_v40 = vrot.slane %v7403_v24, %v8493_v6  ;;  %v3334_v36 = vrot.slane %v3326_v7, %v8493_v6 }
 0x2e9   :  { %v3262_v49 = vrot.slane %v3254_v63, %v8496_v9  ;;  %v3269_v11 = vrot.slane %v3255_v43, %v8496_v9  ;;  %v3278_v50 = vrot.slane %v3270_v10, %v8496_v9  ;;  %v3285_v14 = vrot.slane %v3271_v17, %v8496_v9 }
 0x2ea   :  { %v3350_v28 = vrot.slane %v3342_v4, %v8493_v6  ;;  %v3341_v38 = vrot.slane %v3327_v58, %v8493_v6  ;;  %v3357_v34 = vrot.slane %v3343_v5, %v8493_v6  ;;  %v3629_v46 = vrot.slane %v7405_v39, %v8493_v6 }
 0x2eb   :  { %v7410_v19 = vcombine.low %v3262_v49, %v3269_v11  ;;  %v7412_v12 = vcombine.high %v3262_v49, %v3269_v11  ;;  %v7414_v33 = vcombine.low %v3278_v50, %v3285_v14  ;;  %v7416_v45 = vcombine.high %v3278_v50, %v3285_v14 }
 0x2ec   :  { %v3390_v51 = vcombine.low %v3334_v36, %v3350_v28  ;;  %v3391_v15 = vcombine.high %v3334_v36, %v3350_v28  ;;  %v3645_v21 = vrot.slane %v7407_v48, %v8493_v6  ;;  %v3406_v52 = vcombine.low %v3341_v38, %v3357_v34 }
 0x2ed   :  { %v3407_v53 = vcombine.high %v3341_v38, %v3357_v34  ;;  %v3661_v2 = vrot.slane %v7409_v13, %v8493_v6  ;;  %v9772_v31 = vrot.slane %v7410_v19, %v8493_v6  ;;  %v9777_v57 = vrot.slane %v7412_v12, %v8493_v6 }
 0x2ee   :  { %v3398_v47 = vrot.slane %v3390_v51, %v8496_v9  ;;  %v3405_v25 = vrot.slane %v3391_v15, %v8496_v9  ;;  %v9780_v1 = vrot.slane %v7414_v33, %v8493_v6  ;;  %v3414_v23 = vrot.slane %v3406_v52, %v8496_v9 }
 0x2ef   :  { %v3421_v37 = vrot.slane %v3407_v53, %v8496_v9  ;;  %v3527_v22 = vcombine.high %v9562_v27, %v9589_v62  ;;  %v3559_v24 = vcombine.high %v9592_v61, %v9595_v44  ;;  %v9789_v39 = vrot.slane %v7416_v45, %v8493_v6 }
 0x2f0   :  { %v7418_v0 = vcombine.low %v3398_v47, %v3405_v25  ;;  %v7420_v59 = vcombine.high %v3398_v47, %v3405_v25  ;;  %v3663_v29 = vcombine.high %v9668_v54, %v9671_v41  ;;  %v3695_v44 = vcombine.high %v9678_v32, %v9681_v18 }
 0x2f1   :  { %v7422_v48 = vcombine.low %v3414_v23, %v3421_v37  ;;  %v7424_v13 = vcombine.high %v3414_v23, %v3421_v37  ;;  %v3541_v42 = vrot.slane %v3527_v22, %v8496_v9  ;;  %v3573_v26 = vrot.slane %v3559_v24, %v8496_v9 }
 0x2f2   :  { %v3878_v16 = vrot.slane %v7418_v0, %v8493_v6  ;;  %v3894_v60 = vrot.slane %v7420_v59, %v8493_v6  ;;  %v3677_v61 = vrot.slane %v3663_v29, %v8496_v9  ;;  %v3542_v54 = vcombine.low %v9736_v8, %v9739_v3 }
 0x2f3   :  { %v3910_v27 = vrot.slane %v7422_v48, %v8493_v6  ;;  %v3926_v62 = vrot.slane %v7424_v13, %v8493_v6  ;;  %v3592_v63 = vcombine.low %v3541_v42, %v3573_v26  ;;  %v3574_v41 = vcombine.low %v9742_v56, %v9745_v30 }
 0x2f4   :  { %v3678_v43 = vcombine.low %v9761_v40, %v3629_v46  ;;  %v3709_v10 = vrot.slane %v3695_v44, %v8496_v9  ;;  %v3710_v17 = vcombine.low %v3645_v21, %v3661_v2  ;;  %v3593_v7 = vcombine.high %v3541_v42, %v3573_v26 }
 0x2f5   :  { %v3543_v58 = vcombine.high %v9736_v8, %v9739_v3  ;;  %v3550_v4 = vrot.slane %v3542_v54, %v8496_v9  ;;  %v3582_v32 = vrot.slane %v3574_v41, %v8496_v9  ;;  %v3575_v49 = vcombine.high %v9742_v56, %v9745_v30 }
 0x2f6   :  { %v3686_v18 = vrot.slane %v3678_v43, %v8496_v9  ;;  %v3728_v11 = vcombine.low %v3677_v61, %v3709_v10  ;;  %v3718_v50 = vrot.slane %v3710_v17, %v8496_v9  ;;  %v3729_v5 = vcombine.high %v3677_v61, %v3709_v10  ;;  %v9857_v17 = vld [vmem:[#allocation5] ss:$0 sm:$0xff] }
 0x2f7   :  { %v3557_v14 = vrot.slane %v3543_v58, %v8496_v9  ;;  %v3594_v36 = vcombine.low %v3550_v4, %v3582_v32  ;;  %v3589_v28 = vrot.slane %v3575_v49, %v8496_v9  ;;  %v3679_v8 = vcombine.high %v9761_v40, %v3629_v46 }
 0x2f8   :  { %v3711_v3 = vcombine.high %v3645_v21, %v3661_v2  ;;  %v9819_v19 = vpack.c.bf16 %v3728_v11, %v3592_v63  ;;  %v3730_v12 = vcombine.low %v3686_v18, %v3718_v50  ;;  %v9821_v38 = vpack.c.bf16 %v3729_v5, %v3593_v7 }
 0x2f9   :  { %v3595_v34 = vcombine.high %v3550_v4, %v3582_v32  ;;  %v3596_v33 = vcombine.low %v3557_v14, %v3589_v28  ;;  %v3693_v56 = vrot.slane %v3679_v8, %v8496_v9  ;;  %v3731_v45 = vcombine.high %v3686_v18, %v3718_v50 }
 0x2fa   :  { %v3725_v30 = vrot.slane %v3711_v3, %v8496_v9  ;;  %v9825_v51 = vpack.c.bf16 %v3730_v12, %v3594_v36  ;;  %v3798_v15 = vcombine.low %v9772_v31, %v9777_v57  ;;  %v3830_v40 = vcombine.low %v9780_v1, %v9789_v39 }
 0x2fb   :  { %v3934_v46 = vcombine.low %v3878_v16, %v3894_v60  ;;  %v9831_v52 = vpack.c.bf16 %v3731_v45, %v3595_v34  ;;  %v3966_v53 = vcombine.low %v3910_v27, %v3926_v62  ;;  %v3597_v2 = vcombine.high %v3557_v14, %v3589_v28 }
 0x2fc   :  { %v3732_v21 = vcombine.low %v3693_v56, %v3725_v30  ;;  %v3806_v47 = vrot.slane %v3798_v15, %v8496_v9  ;;  %v3838_v25 = vrot.slane %v3830_v40, %v8496_v9  ;;  %v3733_v37 = vcombine.high %v3693_v56, %v3725_v30 }
 0x2fd   :  { %v3942_v23 = vrot.slane %v3934_v46, %v8496_v9  ;;  %v3974_v59 = vrot.slane %v3966_v53, %v8496_v9  ;;  %v3799_v22 = vcombine.high %v9772_v31, %v9777_v57  ;;  %v3831_v24 = vcombine.high %v9780_v1, %v9789_v39 }
 0x2fe   :  { %v9836_v0 = vpack.c.bf16 %v3732_v21, %v3596_v33  ;;  %v3862_v48 = vcombine.low %v3806_v47, %v3838_v25  ;;  %v9843_v13 = vpack.c.bf16 %v3733_v37, %v3597_v2  ;;  %v3935_v29 = vcombine.high %v3878_v16, %v3894_v60 }
 0x2ff   :  { %v3967_v42 = vcombine.high %v3910_v27, %v3926_v62  ;;  %v3998_v26 = vcombine.low %v3942_v23, %v3974_v59  ;;  %v3813_v61 = vrot.slane %v3799_v22, %v8496_v9  ;;  %v3845_v44 = vrot.slane %v3831_v24, %v8496_v9 }
 0x300   :  { %v3863_v63 = vcombine.high %v3806_v47, %v3838_v25  ;;  %v3949_v54 = vrot.slane %v3935_v29, %v8496_v9  ;;  %v3999_v43 = vcombine.high %v3942_v23, %v3974_v59 }
 0x301   :  { %v3981_v41 = vrot.slane %v3967_v42, %v8496_v9  ;;  %v9849_v31 = vpack.c.bf16 %v3998_v26, %v3862_v48  ;;  %v3864_v57 = vcombine.low %v3813_v61, %v3845_v44  ;;  %v3865_v1 = vcombine.high %v3813_v61, %v3845_v44 }
 0x302   :  { %v9851_v10 = vpack.c.bf16 %v3999_v43, %v3863_v63 }
 0x303   :  { %v4000_v39 = vcombine.low %v3949_v54, %v3981_v41  ;;  %v4001_v16 = vcombine.high %v3949_v54, %v3981_v41 }
 0x305   :  { %v9853_v60 = vpack.c.bf16 %v4000_v39, %v3864_v57  ;;  %v9855_v27 = vpack.c.bf16 %v4001_v16, %v3865_v1 }
 0x32e   :  { %v4063_v62 = vpop.f32.mrf.mxu0 }
 0x32f   :  { %v4775_v7 = vmul.f32 0.25, %v4063_v62 }
 0x330   :  { %v7609_v58 = vpop.f32.mrf.mxu0  ;;  %v4157_v32 = vpop.f32.mrf.mxu1 }
 0x331   :  { %v9860_v4 = vadd.f32 %v9857_v17, %v4775_v7  ;;  %v4779_v49 = vmul.f32 0.25, %v4157_v32 }
 0x332   :  { %v4066_v18 = vpop.f32.mrf.mxu0  ;;  %v7621_v5 = vpop.f32.mrf.mxu1 }
 0x333   :  { %v4776_v11 = vmul.f32 0.25, %v4066_v18  ;;  %v4853_v50 = vsel %vm4022_vm1, %v9860_v4, -inf  ;;  %v9868_v28 = vadd.f32 %v9857_v17, %v4779_v49 }
 0x334   :  { %4854 = vmax.xlane.f32.xlu0 %v4853_v50  ;;  %v7610_v14 = vpop.f32.mrf.mxu0  ;;  %v4160_v8 = vpop.f32.mrf.mxu1 }
 0x335   :  { %v9865_v36 = vadd.f32 %v9857_v17, %v4776_v11  ;;  %v4780_v12 = vmul.f32 0.25, %v4160_v8  ;;  %v4865_v33 = vsel %vm4022_vm1, %v9868_v28, -inf }
 0x336   :  { %v4110_v3 = vpop.f32.mrf.mxu0  ;;  %v7622_v30 = vpop.f32.mrf.mxu1 }
 0x337   :  { %v4777_v34 = vmul.f32 0.25, %v4110_v3  ;;  %v4856_v56 = vsel %vm4022_vm1, %v9865_v36, -inf  ;;  %v9875_v15 = vadd.f32 %v9857_v17, %v4780_v12 }
 0x338   :  { %4866 = vmax.xlane.f32.xlu0 %v4865_v33  ;;  %4857 = vmax.xlane.f32.xlu1 %v4856_v56  ;;  %v7615_v45 = vpop.f32.mrf.mxu0 }
 0x339   :  { %v9878_v40 = vadd.f32 %v9857_v17, %v4777_v34  ;;  %v4868_v21 = vsel %vm4022_vm1, %v9875_v15, -inf }
 0x33a   :  { %v4113_v46 = vpop.f32.mrf.mxu0 }
 0x33b   :  { %v4859_v53 = vsel %vm4022_vm1, %v9878_v40, -inf  ;;  %v4778_v24 = vmul.f32 0.25, %v4113_v46 }
 0x33c   :  { %4869 = vmax.xlane.f32.xlu1 %v4868_v21  ;;  %4860 = vmax.xlane.f32.xlu0 %v4859_v53  ;;  %v7616_v2 = vpop.f32.mrf.mxu0 }
 0x33d   :  { %v9890_v57 = vadd.f32 %v9857_v17, %v4778_v24  ;;  %v9929_v24 = vld [vmem:[#allocation5 + $0x1] ss:$0 sm:$0xff] }
 0x33e   :  { %v4204_v47 = vpop.f32.mrf.mxu0 }
 0x33f   :  { %v4781_v61 = vmul.f32 0.25, %v4204_v47  ;;  %v4862_v18 = vsel %vm4022_vm1, %v9890_v57, -inf }
 0x340   :  { %v7627_v25 = vpop.f32.mrf.mxu0 }
 0x341   :  { %v9899_v58 = vadd.f32 %v9857_v17, %v4781_v61 }
 0x342   :  { %v4207_v23 = vpop.f32.mrf.mxu0 }
 0x343   :  { %v4782_v44 = vmul.f32 0.25, %v4207_v23  ;;  %v4871_v5 = vsel %vm4022_vm1, %v9899_v58, -inf }
 0x344   :  { %v7628_v37 = vpop.f32.mrf.mxu0 }
 0x345   :  { %v9896_v62 = vadd.f32 %v9857_v17, %v4782_v44 }
 0x347   :  { %v4874_v14 = vsel %vm4022_vm1, %v9896_v62, -inf }
 0x34b   :  { %v4251_v59 = vpop.f32.mrf.mxu1  ;;  %v4298_v22 = vpop.f32.mrf.mxu0 }
 0x34c   :  { %v4783_v48 = vmul.f32 0.25, %v4251_v59  ;;  %v4785_v3 = vmul.f32 0.25, %v4298_v22 }
 0x34d   :  { %v7633_v29 = vpop.f32.mrf.mxu1  ;;  %v7639_v42 = vpop.f32.mrf.mxu0 }
 0x34e   :  { %v9885_v26 = vadd.f32 %v9857_v17, %v4783_v48  ;;  %v9923_v47 = vadd.f32 %v9857_v17, %v4785_v3 }
 0x34f   :  { %v4254_v63 = vpop.f32.mrf.mxu1  ;;  %v4301_v54 = vpop.f32.mrf.mxu0 }
 0x350   :  { %v4784_v41 = vmul.f32 0.25, %v4254_v63  ;;  %v4877_v43 = vsel %vm4022_vm1, %v9885_v26, -inf  ;;  %v4786_v12 = vmul.f32 0.25, %v4301_v54  ;;  %v4883_v23 = vsel %vm4022_vm1, %v9923_v47, -inf }
 0x351   :  { %4878 = vmax.xlane.f32.xlu0 %v4877_v43  ;;  %v7634_v1 = vpop.f32.mrf.mxu1  ;;  %v7640_v39 = vpop.f32.mrf.mxu0 }
 0x352   :  { %v9893_v16 = vadd.f32 %v9857_v17, %v4784_v41  ;;  %v9916_v21 = vadd.f32 %v9857_v17, %v4786_v12 }
 0x353   :  { %v4345_v7 = vpop.f32.mrf.mxu1 }
 0x354   :  { %v4787_v32 = vmul.f32 0.25, %v4345_v7  ;;  %v4880_v49 = vsel %vm4022_vm1, %v9893_v16, -inf  ;;  %v4886_v37 = vsel %vm4022_vm1, %v9916_v21, -inf }
 0x355   :  { %4863 = vmax.xlane.f32.xlu0 %v4862_v18  ;;  %4881 = vmax.xlane.f32.xlu1 %v4880_v49  ;;  %v7645_v11 = vpop.f32.mrf.mxu1 }
 0x356   :  { %v9910_v33 = vadd.f32 %v9857_v17, %v4787_v32 }
 0x357   :  { %v4348_v50 = vpop.f32.mrf.mxu1 }
 0x358   :  { %v4392_v8 = vpop.f32.mrf.mxu0  ;;  %v4788_v34 = vmul.f32 0.25, %v4348_v50  ;;  %v4889_v53 = vsel %vm4022_vm1, %v9910_v33, -inf }
 0x359   :  { %4872 = vmax.xlane.f32.xlu0 %v4871_v5  ;;  %4875 = vmax.xlane.f32.xlu1 %v4874_v14  ;;  %v7646_v56 = vpop.f32.mrf.mxu1  ;;  %v4789_v48 = vmul.f32 0.25, %v4392_v8 }
 0x35a   :  { %v7651_v30 = vpop.f32.mrf.mxu0  ;;  %v9913_v45 = vadd.f32 %v9857_v17, %v4788_v34 }
 0x35b   :  { %v9935_v41 = vadd.f32 %v9857_v17, %v4789_v48 }
 0x35c   :  { %v4395_v46 = vpop.f32.mrf.mxu0  ;;  %v4892_v2 = vsel %vm4022_vm1, %v9913_v45, -inf }
 0x35d   :  { %4890 = vmax.xlane.f32.xlu0 %v4889_v53  ;;  %4893 = vmax.xlane.f32.xlu1 %v4892_v2  ;;  %v4790_v43 = vmul.f32 0.25, %v4395_v46  ;;  %v4895_v11 = vsel %vm4022_vm1, %v9935_v41, -inf }
 0x35e   :  { %v7652_v25 = vpop.f32.mrf.mxu0 }
 0x35f   :  { %v9943_v49 = vadd.f32 %v9857_v17, %v4790_v43 }
 0x361   :  { %4884 = vmax.xlane.f32.xlu0 %v4883_v23  ;;  %4887 = vmax.xlane.f32.xlu1 %v4886_v37  ;;  %v4898_v12 = vsel %vm4022_vm1, %v9943_v49, -inf }
 0x373   :  { %v4439_v59 = vpop.f32.mrf.mxu1  ;;  %v4486_v22 = vpop.f32.mrf.mxu0 }
 0x374   :  { %v4791_v29 = vmul.f32 0.25, %v4439_v59  ;;  %v4793_v8 = vmul.f32 0.25, %v4486_v22 }
 0x375   :  { %v7657_v42 = vpop.f32.mrf.mxu1  ;;  %v7663_v61 = vpop.f32.mrf.mxu0 }
 0x376   :  { %v9932_v44 = vadd.f32 %v9929_v24, %v4791_v29  ;;  %v9955_v53 = vadd.f32 %v9929_v24, %v4793_v8 }
 0x377   :  { %v4442_v63 = vpop.f32.mrf.mxu1  ;;  %v4489_v54 = vpop.f32.mrf.mxu0 }
 0x378   :  { %v4792_v1 = vmul.f32 0.25, %v4442_v63  ;;  %v4901_v39 = vsel %vm4022_vm1, %v9932_v44, -inf  ;;  %v4794_v2 = vmul.f32 0.25, %v4489_v54  ;;  %v4907_v29 = vsel %vm4022_vm1, %v9955_v53, -inf }
 0x379   :  { %v7664_v7 = vpop.f32.mrf.mxu0  ;;  %4902 = vmax.xlane.f32.xlu0 %v4901_v39  ;;  %v7658_v32 = vpop.f32.mrf.mxu1 }
 0x37a   :  { %v9940_v18 = vadd.f32 %v9929_v24, %v4792_v1  ;;  %v9963_v48 = vadd.f32 %v9929_v24, %v4794_v2 }
 0x37c   :  { %v4904_v50 = vsel %vm4022_vm1, %v9940_v18, -inf  ;;  %v4910_v61 = vsel %vm4022_vm1, %v9963_v48, -inf }
 0x37d   :  { %4896 = vmax.xlane.f32.xlu0 %v4895_v11  ;;  %4905 = vmax.xlane.f32.xlu1 %v4904_v50 }
 0x381   :  { %4899 = vmax.xlane.f32.xlu1 %v4898_v12 }
 0x382   :  { %v4533_v5 = vpop.f32.mrf.mxu1  ;;  %v4580_v14 = vpop.f32.mrf.mxu0 }
 0x383   :  { %v4795_v3 = vmul.f32 0.25, %v4533_v5  ;;  %v4797_v43 = vmul.f32 0.25, %v4580_v14 }
 0x384   :  { %v7675_v34 = vpop.f32.mrf.mxu0  ;;  %v7669_v56 = vpop.f32.mrf.mxu1 }
 0x385   :  { %v9952_v17 = vadd.f32 %v9929_v24, %v4795_v3  ;;  %v9975_v5 = vadd.f32 %v9929_v24, %v4797_v43 }
 0x386   :  { %v4536_v30 = vpop.f32.mrf.mxu1  ;;  %v4583_v46 = vpop.f32.mrf.mxu0 }
 0x387   :  { %v4796_v25 = vmul.f32 0.25, %v4536_v30  ;;  %v4913_v23 = vsel %vm4022_vm1, %v9952_v17, -inf  ;;  %v4798_v8 = vmul.f32 0.25, %v4583_v46  ;;  %v4919_v2 = vsel %vm4022_vm1, %v9975_v5, -inf }
 0x388   :  { %v7676_v37 = vpop.f32.mrf.mxu0  ;;  %4914 = vmax.xlane.f32.xlu0 %v4913_v23  ;;  %v7670_v59 = vpop.f32.mrf.mxu1 }
 0x389   :  { %v9960_v22 = vadd.f32 %v9929_v24, %v4796_v25  ;;  %v9983_v30 = vadd.f32 %v9929_v24, %v4798_v8 }
 0x38b   :  { %v4916_v42 = vsel %vm4022_vm1, %v9960_v22, -inf }
 0x38c   :  { %4908 = vmax.xlane.f32.xlu0 %v4907_v29  ;;  %4917 = vmax.xlane.f32.xlu1 %v4916_v42 }
 0x390   :  { %4911 = vmax.xlane.f32.xlu1 %v4910_v61  ;;  %v4922_v61 = vsel %vm4022_vm1, %v9983_v30, -inf }
 0x394   :  { %v4627_v63 = vpop.f32.mrf.mxu1  ;;  %v4674_v54 = vpop.f32.mrf.mxu0 }
 0x395   :  { %v4799_v1 = vmul.f32 0.25, %v4627_v63  ;;  %v4801_v46 = vmul.f32 0.25, %v4674_v54 }
 0x396   :  { %v7681_v39 = vpop.f32.mrf.mxu1  ;;  %v7687_v7 = vpop.f32.mrf.mxu0 }
 0x397   :  { %v9972_v32 = vadd.f32 %v9929_v24, %v4799_v1  ;;  %v9995_v43 = vadd.f32 %v9929_v24, %v4801_v46 }
 0x398   :  { %v4630_v11 = vpop.f32.mrf.mxu1  ;;  %v4677_v50 = vpop.f32.mrf.mxu0 }
 0x399   :  { %v4800_v3 = vmul.f32 0.25, %v4630_v11  ;;  %v4925_v12 = vsel %vm4022_vm1, %v9972_v32, -inf  ;;  %v4802_v7 = vmul.f32 0.25, %v4677_v50 }
 0x39a   :  { %v7688_v34 = vpop.f32.mrf.mxu0  ;;  %4926 = vmax.xlane.f32.xlu0 %v4925_v12  ;;  %v7682_v56 = vpop.f32.mrf.mxu1 }
 0x39b   :  { %v9980_v14 = vadd.f32 %v9929_v24, %v4800_v3  ;;  %v4931_v56 = vsel %vm4022_vm1, %v9995_v43, -inf }
 0x39d   :  { %v4928_v25 = vsel %vm4022_vm1, %v9980_v14, -inf }
 0x39e   :  { %4920 = vmax.xlane.f32.xlu0 %v4919_v2  ;;  %4929 = vmax.xlane.f32.xlu1 %v4928_v25  ;;  %v10005_v2 = vadd.f32 %v9929_v24, %v4802_v7 }
 0x39f   :  { %v4721_v23 = vpop.f32.mrf.mxu1  ;;  %v4768_v37 = vpop.f32.mrf.mxu0 }
 0x3a0   :  { %v4803_v59 = vmul.f32 0.25, %v4721_v23  ;;  %v4805_v11 = vmul.f32 0.25, %v4768_v37 }
 0x3a1   :  { %v7699_v29 = vpop.f32.mrf.mxu0  ;;  %v7693_v42 = vpop.f32.mrf.mxu1 }
 0x3a2   :  { %v9992_v63 = vadd.f32 %v9929_v24, %v4803_v59  ;;  %4923 = vmax.xlane.f32.xlu1 %v4922_v61  ;;  %v10008_v25 = vadd.f32 %v9929_v24, %v4805_v11  ;;  %v4934_v59 = vsel %vm4022_vm1, %v10005_v2, -inf  ;;  %v10019_v29 = vpop.permute.xlu1 %2876 }
 0x3a3   :  { %v4724_v1 = vpop.f32.mrf.mxu1  ;;  %v4771_v39 = vpop.f32.mrf.mxu0  ;;  %10718 = vst [vmem:[#allocation15_spill] sm:$0xff] %v10019_v29 }
 0x3a4   :  { %v4804_v54 = vmul.f32 0.25, %v4724_v1  ;;  %v4937_v8 = vsel %vm4022_vm1, %v9992_v63, -inf  ;;  %v4806_v50 = vmul.f32 0.25, %v4771_v39  ;;  %v4943_v37 = vsel %vm4022_vm1, %v10008_v25, -inf  ;;  %v10025_v1 = vpop.permute.xlu0 %2874 }
 0x3a5   :  { %v7700_v3 = vpop.f32.mrf.mxu0  ;;  %4938 = vmax.xlane.f32.xlu0 %v4937_v8  ;;  %v7694_v12 = vpop.f32.mrf.mxu1 }
 0x3a6   :  { %v10000_v34 = vadd.f32 %v9929_v24, %v4804_v54  ;;  %v10013_v23 = vadd.f32 %v9929_v24, %v4806_v50  ;;  %v10023_v61 = vpop.permute.xlu1 %2886 }
 0x3a8   :  { %v4940_v46 = vsel %vm4022_vm1, %v10000_v34, -inf  ;;  %v4946_v42 = vsel %vm4022_vm1, %v10013_v23, -inf  ;;  %v10029_v39 = vpop.permute.xlu0 %2898 }
 0x3a9   :  { %4932 = vmax.xlane.f32.xlu0 %v4931_v56  ;;  %4941 = vmax.xlane.f32.xlu1 %v4940_v46 }
 0x3aa   :  { %v10027_v24 = vpop.permute.xlu1 %2888 }
 0x3ab   :  { %10719 = vst [vmem:[#allocation16_spill] sm:$0xff] %v10027_v24 }
 0x3ad   :  { %4944 = vmax.xlane.f32.xlu0 %v4943_v37  ;;  %4935 = vmax.xlane.f32.xlu1 %v4934_v59 }
 0x3ae   :  { %v10031_v7 = vpop.permute.xlu1 %2900 }
 0x3b1   :  { %4947 = vmax.xlane.f32.xlu1 %v4946_v42 }
 0x3bd   :  { %v4855_v11 = vpop.xlane.xlu0 %4854 }
 0x3be   :  { %v4949_v12 = vsub.f32 %v9860_v4, %v4855_v11 }
 0x3c0   :  { %v4981_v37 = vmul.f32 1.442695, %v4949_v12 }
 0x3c1   :  { %v4858_v54 = vpop.xlane.xlu1 %4857  ;;  %v4867_v3 = vpop.xlane.xlu0 %4866 }
 0x3c2   :  { %v4950_v8 = vsub.f32 %v9865_v36, %v4858_v54  ;;  %v4953_v59 = vsub.f32 %v9868_v28, %v4867_v3 }
 0x3c3   :  { %2910 = vrot.lane.b32.xlu0 %v10716_v20, %s8195_s30 }
 0x3c4   :  { %v4983_v56 = vmul.f32 1.442695, %v4950_v8  ;;  %v4989_v29 = vmul.f32 1.442695, %v4953_v59 }
 0x3c5   :  { %v4870_v50 = vpop.xlane.xlu1 %4869  ;;  %v4861_v24 = vpop.xlane.xlu0 %4860 }
 0x3c6   :  { %v4954_v46 = vsub.f32 %v9875_v15, %v4870_v50  ;;  %7958 = vpow2.f32 %v4983_v56  ;;  %v4951_v20 = vsub.f32 %v9878_v40, %v4861_v24 }
 0x3c8   :  { %v4991_v42 = vmul.f32 1.442695, %v4954_v46  ;;  %v4985_v36 = vmul.f32 1.442695, %v4951_v20 }
 0x3ca   :  { %7960 = vpow2.f32 %v4991_v42 }
 0x3cb   :  { %7962 = vpow2.f32 %v4981_v37 }
 0x3cc   :  { %7964 = vpow2.f32 %v4989_v29 }
 0x3cd   :  { %7966 = vpow2.f32 %v4985_v36 }
 0x3d3   :  { %v10040_v54 = vpop.eup %7958 }
 0x3d4   :  { %v5048_v4 = vsel %vm4022_vm1, %v10040_v54, 0.0 }
 0x3d5   :  { %5049 = vadd.xlane.f32.xlu1 %v5048_v4 }
 0x3d7   :  { %v10044_v15 = vpop.eup %7960 }
 0x3d8   :  { %v10046_v11 = vpop.eup %7962  ;;  %v5060_v28 = vsel %vm4022_vm1, %v10044_v15, 0.0 }
 0x3d9   :  { %5061 = vadd.xlane.f32.xlu1 %v5060_v28  ;;  %v5045_v29 = vsel %vm4022_vm1, %v10046_v11, 0.0  ;;  %v10053_v24 = vpop.eup %7964 }
 0x3da   :  { %v4879_v8 = vpop.xlane.xlu0 %4878  ;;  %v5057_v37 = vsel %vm4022_vm1, %v10053_v24, 0.0  ;;  %v10059_v59 = vpop.eup %7966 }
 0x3db   :  { %v4957_v40 = vsub.f32 %v9885_v26, %v4879_v8  ;;  %v5051_v28 = vsel %vm4022_vm1, %v10059_v59, 0.0 }
 0x3dd   :  { %v4997_v3 = vmul.f32 1.442695, %v4957_v40 }
 0x3de   :  { %v4864_v12 = vpop.xlane.xlu0 %4863  ;;  %v4882_v56 = vpop.xlane.xlu1 %4881 }
 0x3df   :  { %7968 = vpow2.f32 %v4997_v3  ;;  %v4952_v50 = vsub.f32 %v9890_v57, %v4864_v12  ;;  %v4958_v46 = vsub.f32 %v9893_v16, %v4882_v56 }
 0x3e1   :  { %v4987_v26 = vmul.f32 1.442695, %v4952_v50  ;;  %v4999_v42 = vmul.f32 1.442695, %v4958_v46 }
 0x3e2   :  { %5046 = vadd.xlane.f32.xlu0 %v5045_v29  ;;  %v4873_v20 = vpop.xlane.xlu0 %4872  ;;  %v4876_v36 = vpop.xlane.xlu1 %4875 }
 0x3e3   :  { %7970 = vpow2.f32 %v4987_v26  ;;  %v4955_v4 = vsub.f32 %v9899_v58, %v4873_v20  ;;  %v4956_v16 = vsub.f32 %v9896_v62, %v4876_v36 }
 0x3e4   :  { %7972 = vpow2.f32 %v4999_v42 }
 0x3e5   :  { %v4993_v57 = vmul.f32 1.442695, %v4955_v4  ;;  %v4995_v12 = vmul.f32 1.442695, %v4956_v16 }
 0x3e6   :  { %5058 = vadd.xlane.f32.xlu0 %v5057_v37  ;;  %v4891_v8 = vpop.xlane.xlu0 %4890  ;;  %v4894_v40 = vpop.xlane.xlu1 %4893 }
 0x3e7   :  { %7974 = vpow2.f32 %v4993_v57  ;;  %v4961_v29 = vsub.f32 %v9910_v33, %v4891_v8  ;;  %v4962_v3 = vsub.f32 %v9913_v45, %v4894_v40 }
 0x3e9   :  { %v5005_v56 = vmul.f32 1.442695, %v4961_v29  ;;  %v5007_v50 = vmul.f32 1.442695, %v4962_v3 }
 0x3ea   :  { %5052 = vadd.xlane.f32.xlu0 %v5051_v28  ;;  %v4885_v46 = vpop.xlane.xlu0 %4884  ;;  %v4888_v58 = vpop.xlane.xlu1 %4887 }
 0x3eb   :  { %7976 = vpow2.f32 %v5005_v56  ;;  %v4959_v37 = vsub.f32 %v9923_v47, %v4885_v46  ;;  %v4960_v26 = vsub.f32 %v9916_v21, %v4888_v58 }
 0x3ec   :  { %v10069_v42 = vpop.eup %7968  ;;  %7978 = vpow2.f32 %v5007_v50 }
 0x3ed   :  { %7980 = vpow2.f32 %v4995_v12  ;;  %v5001_v62 = vmul.f32 1.442695, %v4959_v37  ;;  %v5003_v20 = vmul.f32 1.442695, %v4960_v26  ;;  %v5069_v33 = vsel %vm4022_vm1, %v10069_v42, 0.0 }
 0x3ee   :  { %5070 = vadd.xlane.f32.xlu0 %v5069_v33 }
 0x3ef   :  { %7982 = vpow2.f32 %v5003_v20 }
 0x3f0   :  { %v10073_v45 = vpop.eup %7970  ;;  %7984 = vpow2.f32 %v5001_v62 }
 0x3f1   :  { %v5054_v36 = vsel %vm4022_vm1, %v10073_v45, 0.0  ;;  %v10077_v47 = vpop.eup %7972 }
 0x3f2   :  { %5055 = vadd.xlane.f32.xlu1 %v5054_v36  ;;  %v5072_v28 = vsel %vm4022_vm1, %v10077_v47, 0.0 }
 0x3f4   :  { %v10079_v21 = vpop.eup %7974 }
 0x3f5   :  { %v5063_v4 = vsel %vm4022_vm1, %v10079_v21, 0.0 }
 0x3f6   :  { %5064 = vadd.xlane.f32.xlu0 %v5063_v4  ;;  %5073 = vadd.xlane.f32.xlu1 %v5072_v28 }
 0x3f8   :  { %v10085_v57 = vpop.eup %7976 }
 0x3f9   :  { %v10087_v16 = vpop.eup %7978  ;;  %v5081_v8 = vsel %vm4022_vm1, %v10085_v57, 0.0 }
 0x3fa   :  { %v10091_v40 = vpop.eup %7980  ;;  %5082 = vadd.xlane.f32.xlu0 %v5081_v8  ;;  %v5084_v29 = vsel %vm4022_vm1, %v10087_v16, 0.0 }
 0x3fb   :  { %5085 = vadd.xlane.f32.xlu1 %v5084_v29  ;;  %v5066_v12 = vsel %vm4022_vm1, %v10091_v40, 0.0 }
 0x3fc   :  { %v10095_v3 = vpop.eup %7982 }
 0x3fd   :  { %v10099_v56 = vpop.eup %7984  ;;  %v5078_v50 = vsel %vm4022_vm1, %v10095_v3, 0.0 }
 0x3fe   :  { %5067 = vadd.xlane.f32.xlu0 %v5066_v12  ;;  %v5075_v46 = vsel %vm4022_vm1, %v10099_v56, 0.0 }
 0x3ff   :  { %5079 = vadd.xlane.f32.xlu1 %v5078_v50 }
 0x402   :  { %v4903_v58 = vpop.xlane.xlu0 %4902  ;;  %5076 = vadd.xlane.f32.xlu0 %v5075_v46 }
 0x403   :  { %v4965_v37 = vsub.f32 %v9932_v44, %v4903_v58 }
 0x405   :  { %v5013_v26 = vmul.f32 1.442695, %v4965_v37 }
 0x406   :  { %v4897_v62 = vpop.xlane.xlu0 %4896  ;;  %v4906_v20 = vpop.xlane.xlu1 %4905 }
 0x407   :  { %7986 = vpow2.f32 %v5013_v26  ;;  %v4963_v33 = vsub.f32 %v9935_v41, %v4897_v62  ;;  %v4966_v36 = vsub.f32 %v9940_v18, %v4906_v20 }
 0x409   :  { %v5009_v4 = vmul.f32 1.442695, %v4963_v33  ;;  %v5015_v28 = vmul.f32 1.442695, %v4966_v36 }
 0x40a   :  { %v4900_v8 = vpop.xlane.xlu1 %4899 }
 0x40b   :  { %7988 = vpow2.f32 %v5009_v4  ;;  %v4964_v29 = vsub.f32 %v9943_v49, %v4900_v8 }
 0x40c   :  { %7990 = vpow2.f32 %v5015_v28 }
 0x40d   :  { %v5011_v44 = vmul.f32 1.442695, %v4964_v29 }
 0x411   :  { %v4915_v12 = vpop.xlane.xlu0 %4914 }
 0x412   :  { %v4969_v50 = vsub.f32 %v9952_v17, %v4915_v12 }
 0x414   :  { %v5021_v46 = vmul.f32 1.442695, %v4969_v50  ;;  %v10112_v18 = vpop.eup %7986 }
 0x415   :  { %v4909_v58 = vpop.xlane.xlu0 %4908  ;;  %v4918_v37 = vpop.xlane.xlu1 %4917  ;;  %v5093_v49 = vsel %vm4022_vm1, %v10112_v18, 0.0 }
 0x416   :  { %7992 = vpow2.f32 %v5021_v46  ;;  %v4967_v26 = vsub.f32 %v9955_v53, %v4909_v58  ;;  %v4970_v41 = vsub.f32 %v9960_v22, %v4918_v37  ;;  %5094 = vadd.xlane.f32.xlu0 %v5093_v49 }
 0x417   :  { %7994 = vpow2.f32 %v5011_v44 }
 0x418   :  { %v5017_v62 = vmul.f32 1.442695, %v4967_v26  ;;  %v5023_v20 = vmul.f32 1.442695, %v4970_v41  ;;  %v10117_v36 = vpop.eup %7988 }
 0x419   :  { %v4912_v33 = vpop.xlane.xlu1 %4911  ;;  %v10119_v4 = vpop.eup %7990  ;;  %v5087_v22 = vsel %vm4022_vm1, %v10117_v36, 0.0 }
 0x41a   :  { %v4968_v17 = vsub.f32 %v9963_v48, %v4912_v33  ;;  %7996 = vpow2.f32 %v5023_v20  ;;  %5088 = vadd.xlane.f32.xlu0 %v5087_v22  ;;  %v5096_v28 = vsel %vm4022_vm1, %v10119_v4, 0.0 }
 0x41b   :  { %7998 = vpow2.f32 %v5017_v62  ;;  %5097 = vadd.xlane.f32.xlu1 %v5096_v28 }
 0x41c   :  { %v5019_v53 = vmul.f32 1.442695, %v4968_v17 }
 0x41e   :  { %8000 = vpow2.f32 %v5019_v53 }
 0x423   :  { %v4927_v8 = vpop.xlane.xlu0 %4926  ;;  %v10125_v29 = vpop.eup %7992 }
 0x424   :  { %v4973_v48 = vsub.f32 %v9972_v32, %v4927_v8  ;;  %v5105_v12 = vsel %vm4022_vm1, %v10125_v29, 0.0  ;;  %v10130_v50 = vpop.eup %7994 }
 0x425   :  { %5106 = vadd.xlane.f32.xlu0 %v5105_v12  ;;  %v5090_v62 = vsel %vm4022_vm1, %v10130_v50, 0.0 }
 0x426   :  { %v5029_v46 = vmul.f32 1.442695, %v4973_v48 }
 0x427   :  { %v4921_v44 = vpop.xlane.xlu0 %4920  ;;  %v4930_v58 = vpop.xlane.xlu1 %4929 }
 0x428   :  { %8002 = vpow2.f32 %v5029_v46  ;;  %v4971_v37 = vsub.f32 %v9975_v5, %v4921_v44  ;;  %v4974_v26 = vsub.f32 %v9980_v14, %v4930_v58  ;;  %v10134_v41 = vpop.eup %7996 }
 0x429   :  { %v10138_v32 = vpop.eup %7998  ;;  %5091 = vadd.xlane.f32.xlu0 %v5090_v62  ;;  %v5108_v33 = vsel %vm4022_vm1, %v10134_v41, 0.0 }
 0x42a   :  { %v5025_v20 = vmul.f32 1.442695, %v4971_v37  ;;  %v5031_v49 = vmul.f32 1.442695, %v4974_v26  ;;  %5109 = vadd.xlane.f32.xlu1 %v5108_v33  ;;  %v5099_v14 = vsel %vm4022_vm1, %v10138_v32, 0.0 }
 0x42b   :  { %v4924_v17 = vpop.xlane.xlu1 %4923  ;;  %v10142_v53 = vpop.eup %8000 }
 0x42c   :  { %8004 = vpow2.f32 %v5025_v20  ;;  %v4972_v5 = vsub.f32 %v9983_v30, %v4924_v17  ;;  %v5102_v22 = vsel %vm4022_vm1, %v10142_v53, 0.0  ;;  %v3223_v17 = vcombine.high %v10025_v1, %v10029_v39 }
 0x42d   :  { %8006 = vpow2.f32 %v5031_v49  ;;  %5100 = vadd.xlane.f32.xlu0 %v5099_v14 }
 0x42e   :  { %v4939_v28 = vpop.xlane.xlu0 %4938  ;;  %v5027_v8 = vmul.f32 1.442695, %v4972_v5  ;;  %5103 = vadd.xlane.f32.xlu1 %v5102_v22 }
 0x42f   :  { %v4977_v48 = vsub.f32 %v9992_v63, %v4939_v28 }
 0x430   :  { %8008 = vpow2.f32 %v5027_v8 }
 0x431   :  { %v5037_v37 = vmul.f32 1.442695, %v4977_v48 }
 0x432   :  { %v4933_v12 = vpop.xlane.xlu0 %4932  ;;  %v10150_v46 = vpop.xlane.xlu1 %4941 }
 0x433   :  { %v4975_v44 = vsub.f32 %v9995_v43, %v4933_v12  ;;  %v3222_v43 = vcombine.low %v10025_v1, %v10029_v39 }
 0x435   :  { %v10153_v30 = vpop.eup %8002  ;;  %v5033_v58 = vmul.f32 1.442695, %v4975_v44  ;;  %v3230_v44 = vrot.slane %v3222_v43, %v8493_v6 }
 0x436   :  { %v4945_v26 = vpop.xlane.xlu0 %4944  ;;  %v4936_v62 = vpop.xlane.xlu1 %4935  ;;  %v5117_v20 = vsel %vm4022_vm1, %v10153_v30, 0.0 }
 0x437   :  { %8010 = vpow2.f32 %v5033_v58  ;;  %v4979_v49 = vsub.f32 %v10008_v25, %v4945_v26  ;;  %v4976_v33 = vsub.f32 %v10005_v2, %v4936_v62  ;;  %5118 = vadd.xlane.f32.xlu0 %v5117_v20  ;;  %v3237_v58 = vrot.slane %v3223_v17, %v8493_v6 }
 0x438   :  { %8012 = vpow2.f32 %v5037_v37 }
 0x439   :  { %v10159_v63 = vpop.eup %8004  ;;  %v5035_v5 = vmul.f32 1.442695, %v4976_v33  ;;  %v5041_v22 = vmul.f32 1.442695, %v4979_v49 }
 0x43a   :  { %v10165_v14 = vpop.eup %8006  ;;  %v2911_v28 = vpop.permute.xlu0 %2910  ;;  %v5111_v25 = vsel %vm4022_vm1, %v10159_v63, 0.0 }
 0x43b   :  { %v4948_v8 = vpop.xlane.xlu1 %4947  ;;  %v3238_v2 = vcombine.low %v10023_v61, %v2911_v28  ;;  %v3239_v48 = vcombine.high %v10023_v61, %v2911_v28  ;;  %5112 = vadd.xlane.f32.xlu0 %v5111_v25  ;;  %8014 = vpow2.f32 %v5035_v5  ;;  %v5120_v1 = vsel %vm4022_vm1, %v10165_v14, 0.0 }
 0x43c   :  { %v4980_v12 = vsub.f32 %v10013_v23, %v4948_v8  ;;  %5121 = vadd.xlane.f32.xlu1 %v5120_v1  ;;  %8016 = vpow2.f32 %v5041_v22 }
 0x43d   :  { %v10174_v39 = vpop.eup %8008  ;;  %v3246_v37 = vrot.slane %v3238_v2, %v8493_v6  ;;  %v3253_v26 = vrot.slane %v3239_v48, %v8493_v6 }
 0x43e   :  { %v5043_v61 = vmul.f32 1.442695, %v4980_v12  ;;  %v5114_v23 = vsel %vm4022_vm1, %v10174_v39, 0.0 }
 0x43f   :  { %v3286_v62 = vcombine.low %v3230_v44, %v3246_v37  ;;  %v3287_v20 = vcombine.high %v3230_v44, %v3246_v37  ;;  %v3302_v49 = vcombine.low %v3237_v58, %v3253_v26  ;;  %v3303_v33 = vcombine.high %v3237_v58, %v3253_v26  ;;  %5115 = vadd.xlane.f32.xlu0 %v5114_v23 }
 0x440   :  { %8018 = vpow2.f32 %v5043_v61 }
 0x441   :  { %v3294_v5 = vrot.slane %v3286_v62, %v8496_v9  ;;  %v3301_v43 = vrot.slane %v3287_v20, %v8496_v9  ;;  %v3310_v17 = vrot.slane %v3302_v49, %v8496_v9  ;;  %v3317_v28 = vrot.slane %v3303_v33, %v8496_v9 }
 0x443   :  { %v7411_v8 = vcombine.low %v3294_v5, %v3301_v43  ;;  %v7413_v22 = vcombine.high %v3294_v5, %v3301_v43  ;;  %v7415_v25 = vcombine.low %v3310_v17, %v3317_v28  ;;  %v7417_v2 = vcombine.high %v3310_v17, %v3317_v28 }
 0x444   :  { %v10186_v48 = vpop.eup %8010 }
 0x445   :  { %v3749_v12 = vrot.slane %v7411_v8, %v8493_v6  ;;  %v3765_v1 = vrot.slane %v7413_v22, %v8493_v6  ;;  %v3781_v44 = vrot.slane %v7415_v25, %v8493_v6  ;;  %v3797_v58 = vrot.slane %v7417_v2, %v8493_v6  ;;  %v10194_v26 = vpop.eup %8012 }
 0x446   :  { %v5123_v37 = vsel %vm4022_vm1, %v10186_v48, 0.0  ;;  %v5129_v28 = vsel %vm4022_vm1, %v10194_v26, 0.0 }
 0x447   :  { %5124 = vadd.xlane.f32.xlu0 %v5123_v37  ;;  %v3814_v61 = vcombine.low %v3749_v12, %v3765_v1  ;;  %v3846_v23 = vcombine.low %v3781_v44, %v3797_v58  ;;  %v3815_v62 = vcombine.high %v3749_v12, %v3765_v1  ;;  %v3847_v20 = vcombine.high %v3781_v44, %v3797_v58 }
 0x448   :  { %v10196_v49 = vpop.eup %8014 }
 0x449   :  { %v10199_v33 = vrot.slane %v3814_v61, %v8496_v9  ;;  %v10202_v5 = vrot.slane %v3846_v23, %v8496_v9  ;;  %v10205_v43 = vrot.slane %v3815_v62, %v8496_v9  ;;  %v5126_v17 = vsel %vm4022_vm1, %v10196_v49, 0.0  ;;  %v10214_v22 = vpop.eup %8016 }
 0x44a   :  { %v10212_v8 = vrot.slane %v3847_v20, %v8496_v9  ;;  %5127 = vadd.xlane.f32.xlu1 %v5126_v17  ;;  %v5135_v44 = vsel %vm4022_vm1, %v10214_v22, 0.0  ;;  %v4978_v23 = vsub.f32 %v10000_v34, %v10150_v46 }
 0x44b   :  { %5130 = vadd.xlane.f32.xlu0 %v5129_v28 }
 0x44c   :  { %v5039_v62 = vmul.f32 1.442695, %v4978_v23 }
 0x44d   :  { %v10226_v58 = vpop.eup %8018 }
 0x44e   :  { %v5138_v37 = vsel %vm4022_vm1, %v10226_v58, 0.0 }
 0x44f   :  { %5136 = vadd.xlane.f32.xlu0 %v5135_v44 }
 0x453   :  { %5139 = vadd.xlane.f32.xlu0 %v5138_v37 }
 0x45b   :  { %2912 = vrot.lane.b32.xlu1 %v10717_v55, %s8195_s30 }
 0x45e   :  { %v5050_v61 = vpop.xlane.xlu1 %5049 }
 0x45f   :  { %8020 = vrcp.f32 %v5050_v61 }
 0x462   :  { %v5062_v17 = vpop.xlane.xlu1 %5061 }
 0x46b   :  { %v5047_v20 = vpop.xlane.xlu0 %5046 }
 0x46c   :  { %8022 = vrcp.f32 %v5047_v20  ;;  %v8021_v44 = vpop.eup %8020 }
 0x46d   :  { %8024 = vpow2.f32 %v5039_v62  ;;  %v5174_v1 = vmul.f32 %v8021_v44, %v10040_v54 }
 0x46e   :  { %8026 = vrcp.f32 %v5062_v17 }
 0x46f   :  { %v5059_v28 = vpop.xlane.xlu0 %5058 }
 0x470   :  { %8028 = vrcp.f32 %v5059_v28 }
 0x473   :  { %v5053_v55 = vpop.xlane.xlu0 %5052 }
 0x474   :  { %8030 = vrcp.f32 %v5053_v55 }
 0x477   :  { %v5071_v23 = vpop.xlane.xlu0 %5070 }
 0x479   :  { %v8023_v37 = vpop.eup %8022 }
 0x47a   :  { %v5173_v12 = vmul.f32 %v8023_v37, %v10046_v11  ;;  %v10236_v2 = vpop.eup %8024 }
 0x47b   :  { %v8027_v34 = vpop.eup %8026  ;;  %v5132_v61 = vsel %vm4022_vm1, %v10236_v2, 0.0  ;;  %v5056_v62 = vpop.xlane.xlu1 %5055 }
 0x47c   :  { %v5205_v25 = vpack.c.bf16 %v5174_v1, %v5173_v12  ;;  %8032 = vrcp.f32 %v5056_v62  ;;  %v5178_v54 = vmul.f32 %v8027_v34, %v10044_v15 }
 0x47d   :  { %v8029_v46 = vpop.eup %8028  ;;  %8034 = vrcp.f32 %v5071_v23 }
 0x47e   :  { %7704 = vmatmul.mubr.msk.bf16.vlgmr.msra.gmra.mxu1 %vm4022_vm1, %v5205_v25  ;;  %v5177_v11 = vmul.f32 %v8029_v46, %v10053_v24 }
 0x47f   :  { %7714 = vmatpush3.bf16.msra.mxu1 %v9819_v19  ;;  %7715 = vmatprep.mubr.msk.bf16.mxu1 %vm8213_vm0, %v10674_v35  ;;  %v5065_v25 = vpop.xlane.xlu0 %5064  ;;  %v5074_v12 = vpop.xlane.xlu1 %5073 }
 0x480   :  { %5133 = vadd.xlane.f32.xlu1 %v5132_v61  ;;  %7725 = vmatprep.subr.bf16.mxu1 %v10674_v35  ;;  %v5207_v1 = vpack.c.bf16 %v5178_v54, %v5177_v11  ;;  %8036 = vrcp.f32 %v5074_v12 }
 0x481   :  { %v8031_v15 = vpop.eup %8030 }
 0x482   :  { %v5175_v28 = vmul.f32 %v8031_v15, %v10059_v59 }
 0x483   :  { %v5083_v20 = vpop.xlane.xlu0 %5082 }
 0x484   :  { %8038 = vrcp.f32 %v5083_v20  ;;  %v5086_v19 = vpop.xlane.xlu1 %5085 }
 0x485   :  { %8040 = vrcp.f32 %v5086_v19 }
 0x486   :  { %7716 = vmatmul.mubr.msk.bf16.vlgmr.msra.gmra.mxu1 %vm4022_vm1, %v5207_v1  ;;  %8042 = vrcp.f32 %v5065_v25 }
 0x487   :  { %7726 = vmatpush3.bf16.msra.mxu1 %v9825_v51  ;;  %7727 = vmatprep.mubr.msk.bf16.mxu1 %vm8213_vm0, %v10674_v35  ;;  %v5068_v24 = vpop.xlane.xlu0 %5067 }
 0x488   :  { %7737 = vmatprep.subr.bf16.mxu1 %v10674_v35  ;;  %8044 = vrcp.f32 %v5068_v24  ;;  %v5080_v37 = vpop.xlane.xlu1 %5079 }
 0x489   :  { %v8033_v17 = vpop.eup %8032 }
 0x48a   :  { %v5176_v44 = vmul.f32 %v8033_v17, %v10073_v45  ;;  %v8035_v51 = vpop.eup %8034 }
 0x48b   :  { %v5077_v55 = vpop.xlane.xlu0 %5076  ;;  %v5181_v61 = vmul.f32 %v8035_v51, %v10069_v42 }
 0x48c   :  { %8046 = vrcp.f32 %v5077_v55  ;;  %v5206_v34 = vpack.c.bf16 %v5176_v44, %v5175_v28 }
 0x48d   :  { %v8037_v46 = vpop.eup %8036  ;;  %8048 = vrcp.f32 %v5080_v37 }
 0x48e   :  { %7710 = vmatmul.mubr.msk.bf16.vlgmr.msra.gmra.mxu0 %vm4022_vm1, %v5206_v34  ;;  %v5182_v23 = vmul.f32 %v8037_v46, %v10077_v47 }
 0x48f   :  { %7720 = vmatpush3.bf16.msra.mxu0 %v9821_v38  ;;  %7721 = vmatprep.mubr.msk.bf16.mxu0 %vm8213_vm0, %v10674_v35 }
 0x490   :  { %7731 = vmatprep.subr.bf16.mxu0 %v10674_v35  ;;  %v5209_v45 = vpack.c.bf16 %v5182_v23, %v5181_v61 }
 0x491   :  { %v8039_v59 = vpop.eup %8038 }
 0x492   :  { %v8041_v62 = vpop.eup %8040  ;;  %7728 = vmatmul.mubr.msk.bf16.vlgmr.msra.gmra.mxu1 %vm4022_vm1, %v5209_v45  ;;  %v5185_v42 = vmul.f32 %v8039_v59, %v10085_v57 }
 0x493   :  { %v8043_v54 = vpop.eup %8042  ;;  %7738 = vmatpush3.bf16.msra.mxu1 %v9836_v0  ;;  %7739 = vmatprep.mubr.msk.bf16.mxu1 %vm8213_vm0, %v10674_v35  ;;  %v5186_v47 = vmul.f32 %v8041_v62, %v10087_v16 }
 0x494   :  { %7749 = vmatprep.subr.bf16.mxu1 %v10674_v35  ;;  %v5179_v11 = vmul.f32 %v8043_v54, %v10079_v21 }
 0x495   :  { %v8045_v38 = vpop.eup %8044  ;;  %v5211_v20 = vpack.c.bf16 %v5186_v47, %v5185_v42 }
 0x496   :  { %v5180_v25 = vmul.f32 %v8045_v38, %v10091_v40 }
 0x498   :  { %v5208_v12 = vpack.c.bf16 %v5180_v25, %v5179_v11  ;;  %v10720_v25 = vld [vmem:[#allocation15_spill] sm:$0xff] }
 0x499   :  { %v8047_v1 = vpop.eup %8046 }
 0x49a   :  { %7722 = vmatmul.mubr.msk.bf16.vlgmr.msra.gmra.mxu0 %vm4022_vm1, %v5208_v12  ;;  %v8049_v0 = vpop.eup %8048  ;;  %7740 = vmatmul.mubr.msk.bf16.vlgmr.msra.gmra.mxu1 %vm4022_vm1, %v5211_v20  ;;  %v5183_v57 = vmul.f32 %v8047_v1, %v10099_v56  ;;  %v3358_v12 = vcombine.low %v10720_v25, %v10031_v7  ;;  %v3359_v1 = vcombine.high %v10720_v25, %v10031_v7 }
 0x49b   :  { %7732 = vmatpush3.bf16.msra.mxu0 %v9831_v52  ;;  %7750 = vmatpush3.bf16.msra.mxu1 %v9849_v31  ;;  %v5184_v21 = vmul.f32 %v8049_v0, %v10095_v3 }
 0x49c   :  { %7733 = vmatprep.mubr.msk.bf16.mxu0 %vm8213_vm0, %v10674_v35  ;;  %7743 = vmatprep.subr.bf16.mxu0 %v10674_v35 }
 0x49d   :  { %7751 = vmatprep.mubr.msk.bf16.mxu1 %vm8213_vm0, %v10674_v35  ;;  %7761 = vmatprep.subr.bf16.mxu1 %v10674_v35  ;;  %v5210_v52 = vpack.c.bf16 %v5184_v21, %v5183_v57  ;;  %v10721_v57 = vld [vmem:[#allocation16_spill] sm:$0xff] }
 0x49f   :  { %v5095_v16 = vpop.xlane.xlu0 %5094 }
 0x4a0   :  { %8050 = vrcp.f32 %v5095_v16 }
 0x4a2   :  { %7734 = vmatmul.mubr.msk.bf16.vlgmr.msra.gmra.mxu0 %vm4022_vm1, %v5210_v52 }
 0x4a3   :  { %7744 = vmatpush3.bf16.msra.mxu0 %v9843_v13  ;;  %7745 = vmatprep.mubr.msk.bf16.mxu0 %vm8213_vm0, %v10674_v35  ;;  %v5089_v40 = vpop.xlane.xlu0 %5088 }
 0x4a4   :  { %v5098_v31 = vpop.xlane.xlu1 %5097  ;;  %7755 = vmatprep.subr.bf16.mxu0 %v10674_v35 }
 0x4a5   :  { %8052 = vrcp.f32 %v5098_v31 }
 0x4a6   :  { %8054 = vrcp.f32 %v5089_v40  ;;  %v3366_v40 = vrot.slane %v3358_v12, %v8493_v6 }
 0x4ad   :  { %v8051_v19 = vpop.eup %8050 }
 0x4ae   :  { %v5107_v56 = vpop.xlane.xlu0 %5106  ;;  %v5189_v13 = vmul.f32 %v8051_v19, %v10112_v18 }
 0x4af   :  { %8056 = vrcp.f32 %v5107_v56  ;;  %v3373_v56 = vrot.slane %v3359_v1, %v8493_v6 }
 0x4b2   :  { %v5092_v3 = vpop.xlane.xlu0 %5091  ;;  %v8053_v24 = vpop.eup %8052 }
 0x4b3   :  { %8058 = vrcp.f32 %v5092_v3  ;;  %v5110_v15 = vpop.xlane.xlu1 %5109  ;;  %v5190_v28 = vmul.f32 %v8053_v24, %v10119_v4  ;;  %v8055_v55 = vpop.eup %8054 }
 0x4b4   :  { %8060 = vrcp.f32 %v5110_v15  ;;  %v5187_v4 = vmul.f32 %v8055_v55, %v10117_v36 }
 0x4b5   :  { %v5213_v37 = vpack.c.bf16 %v5190_v28, %v5189_v13 }
 0x4b6   :  { %v5101_v17 = vpop.xlane.xlu0 %5100 }
 0x4b7   :  { %8062 = vrcp.f32 %v5101_v17  ;;  %v5104_v44 = vpop.xlane.xlu1 %5103  ;;  %7752 = vmatmul.mubr.msk.bf16.vlgmr.msra.gmra.mxu1 %vm4022_vm1, %v5213_v37 }
 0x4b8   :  { %8064 = vrcp.f32 %v5104_v44  ;;  %7762 = vmatpush3.bf16.msra.mxu1 %v9853_v60  ;;  %7763 = vmatprep.mubr.msk.bf16.mxu1 %vm8213_vm0, %v10674_v35 }
 0x4b9   :  { %7773 = vmatprep.subr.bf16.mxu1 %v10674_v35 }
 0x4bc   :  { %v8057_v51 = vpop.eup %8056 }
 0x4bd   :  { %v5193_v23 = vmul.f32 %v8057_v51, %v10125_v29 }
 0x4c0   :  { %v5119_v34 = vpop.xlane.xlu0 %5118  ;;  %v8059_v46 = vpop.eup %8058 }
 0x4c1   :  { %v8061_v18 = vpop.eup %8060  ;;  %v5188_v61 = vmul.f32 %v8059_v46, %v10130_v50 }
 0x4c2   :  { %v5194_v59 = vmul.f32 %v8061_v18, %v10134_v41 }
 0x4c3   :  { %v5212_v60 = vpack.c.bf16 %v5188_v61, %v5187_v4 }
 0x4c4   :  { %v5113_v45 = vpop.xlane.xlu0 %5112  ;;  %v8063_v62 = vpop.eup %8062  ;;  %v5215_v54 = vpack.c.bf16 %v5194_v59, %v5193_v23 }
 0x4c5   :  { %v8065_v38 = vpop.eup %8064  ;;  %7746 = vmatmul.mubr.msk.bf16.vlgmr.msra.gmra.mxu0 %vm4022_vm1, %v5212_v60  ;;  %8066 = vrcp.f32 %v5113_v45  ;;  %v5191_v36 = vmul.f32 %v8063_v62, %v10138_v32 }
 0x4c6   :  { %7756 = vmatpush3.bf16.msra.mxu0 %v9851_v10  ;;  %7764 = vmatmul.mubr.msk.bf16.vlgmr.msra.gmra.mxu1 %vm4022_vm1, %v5215_v54  ;;  %v5192_v29 = vmul.f32 %v8065_v38, %v10142_v53  ;;  %v5122_v10 = vpop.xlane.xlu1 %5121 }
 0x4c7   :  { %7757 = vmatprep.mubr.msk.bf16.mxu0 %vm8213_vm0, %v10674_v35  ;;  %7767 = vmatprep.subr.bf16.mxu0 %v10674_v35 }
 0x4c8   :  { %v5116_v42 = vpop.xlane.xlu0 %5115  ;;  %7775 = vmatprep.mubr.msk.bf16.mxu1 %vm8213_vm0, %v10674_v35  ;;  %v5214_v50 = vpack.c.bf16 %v5192_v29, %v5191_v36 }
 0x4c9   :  { %8068 = vrcp.f32 %v5116_v42 }
 0x4ca   :  { %8070 = vrcp.f32 %v5119_v34 }
 0x4cb   :  { %8072 = vrcp.f32 %v5122_v10 }
 0x4cd   :  { %7758 = vmatmul.mubr.msk.bf16.vlgmr.msra.gmra.mxu0 %vm4022_vm1, %v5214_v50 }
 0x4ce   :  { %7768 = vmatpush3.bf16.msra.mxu0 %v9855_v27  ;;  %7769 = vmatprep.mubr.msk.bf16.mxu0 %vm8213_vm0, %v10674_v35 }
 0x4cf   :  { %7779 = vmatprep.subr.bf16.mxu0 %v10674_v35 }
 0x4d0   :  { %v5125_v41 = vpop.xlane.xlu0 %5124 }
 0x4d1   :  { %8074 = vrcp.f32 %v5125_v41 }
 0x4d2   :  { %v8067_v47 = vpop.eup %8066 }
 0x4d3   :  { %v5128_v32 = vpop.xlane.xlu1 %5127  ;;  %v5195_v27 = vmul.f32 %v8067_v47, %v10159_v63 }
 0x4d4   :  { %v10313_v11 = vpop.xlane.xlu0 %5130  ;;  %8076 = vrcp.f32 %v5128_v32 }
 0x4d6   :  { %v8069_v53 = vpop.eup %8068 }
 0x4d7   :  { %v5196_v20 = vmul.f32 %v8069_v53, %v10174_v39  ;;  %v2913_v0 = vpop.permute.xlu1 %2912  ;;  %v8071_v23 = vpop.eup %8070 }
 0x4d8   :  { %v3374_v21 = vcombine.low %v10721_v57, %v2913_v0  ;;  %v3375_v16 = vcombine.high %v10721_v57, %v2913_v0  ;;  %v5137_v52 = vpop.xlane.xlu0 %5136  ;;  %v8073_v59 = vpop.eup %8072  ;;  %v5197_v25 = vmul.f32 %v8071_v23, %v10153_v30  ;;  %v10723_v57 = vcombine.high %v10199_v33, %v10202_v5 }
 0x4d9   :  { %v5216_v31 = vpack.c.bf16 %v5196_v20, %v5195_v27  ;;  %v5198_v12 = vmul.f32 %v8073_v59, %v10165_v14  ;;  %v10722_v20 = vcombine.low %v10199_v33, %v10202_v5  ;;  %v10725_v30 = vcombine.high %v10205_v43, %v10212_v8 }
 0x4da   :  { %v3382_v7 = vrot.slane %v3374_v21, %v8493_v6  ;;  %v3389_v63 = vrot.slane %v3375_v16, %v8493_v6  ;;  %v10724_v16 = vcombine.low %v10205_v43, %v10212_v8 }
 0x4db   :  { %7770 = vmatmul.mubr.msk.bf16.vlgmr.msra.gmra.mxu0 %vm4022_vm1, %v5216_v31 }
 0x4dc   :  { %7781 = vmatprep.mubr.msk.bf16.mxu0 %vm8213_vm0, %v10674_v35  ;;  %v3422_v39 = vcombine.low %v3366_v40, %v3382_v7  ;;  %v3423_v3 = vcombine.high %v3366_v40, %v3382_v7  ;;  %v3438_v19 = vcombine.low %v3373_v56, %v3389_v63  ;;  %v3439_v15 = vcombine.high %v3373_v56, %v3389_v63  ;;  %v5140_v44 = vpop.xlane.xlu0 %5139 }
 0x4dd   :  { %8078 = vrcp.f32 %v5140_v44 }
 0x4de   :  { %v3430_v24 = vrot.slane %v3422_v39, %v8496_v9  ;;  %v3437_v17 = vrot.slane %v3423_v3, %v8496_v9  ;;  %v3446_v13 = vrot.slane %v3438_v19, %v8496_v9  ;;  %v3453_v28 = vrot.slane %v3439_v15, %v8496_v9  ;;  %v8075_v38 = vpop.eup %8074 }
 0x4df   :  { %8080 = vrcp.f32 %v5137_v52  ;;  %v5199_v1 = vmul.f32 %v8075_v38, %v10186_v48  ;;  %v5217_v48 = vpack.c.bf16 %v5198_v12, %v5197_v25 }
 0x4e0   :  { %v7419_v37 = vcombine.low %v3430_v24, %v3437_v17  ;;  %v7421_v55 = vcombine.high %v3430_v24, %v3437_v17  ;;  %v7423_v51 = vcombine.low %v3446_v13, %v3453_v28  ;;  %v7425_v34 = vcombine.high %v3446_v13, %v3453_v28 }
 0x4e1   :  { %v8077_v42 = vpop.eup %8076  ;;  %8082 = vrcp.f32 %v10313_v11 }
 0x4e2   :  { %v3885_v46 = vrot.slane %v7419_v37, %v8493_v6  ;;  %v3901_v18 = vrot.slane %v7421_v55, %v8493_v6  ;;  %v3917_v4 = vrot.slane %v7423_v51, %v8493_v6  ;;  %v3933_v61 = vrot.slane %v7425_v34, %v8493_v6 }
 0x4e3   :  { %v5200_v27 = vmul.f32 %v8077_v42, %v10196_v49 }
 0x4e4   :  { %v3950_v45 = vcombine.low %v3885_v46, %v3901_v18  ;;  %v3982_v60 = vcombine.low %v3917_v4, %v3933_v61  ;;  %v3951_v62 = vcombine.high %v3885_v46, %v3901_v18  ;;  %v3983_v54 = vcombine.high %v3917_v4, %v3933_v61 }
 0x4e5   :  { %v5218_v49 = vpack.c.bf16 %v5200_v27, %v5199_v1 }
 0x4e6   :  { %v3958_v36 = vrot.slane %v3950_v45, %v8496_v9  ;;  %v3990_v29 = vrot.slane %v3982_v60, %v8496_v9  ;;  %v3965_v50 = vrot.slane %v3951_v62, %v8496_v9  ;;  %v3997_v10 = vrot.slane %v3983_v54, %v8496_v9 }
 0x4e8   :  { %v4002_v41 = vcombine.low %v3958_v36, %v3990_v29  ;;  %v4003_v47 = vcombine.high %v3958_v36, %v3990_v29  ;;  %v4004_v32 = vcombine.low %v3965_v50, %v3997_v10  ;;  %v4005_v53 = vcombine.high %v3965_v50, %v3997_v10 }
 0x4ea   :  { %v4018_v0 = vpack.c.bf16 %v4002_v41, %v10722_v20  ;;  %v4019_v21 = vpack.c.bf16 %v4003_v47, %v10723_v57  ;;  %v4020_v52 = vpack.c.bf16 %v4004_v32, %v10724_v16  ;;  %v4021_v14 = vpack.c.bf16 %v4005_v53, %v10725_v30  ;;  %v8079_v31 = vpop.eup %8078 }
 0x4eb   :  { %v5204_v5 = vmul.f32 %v8079_v31, %v10226_v58 }
 0x4ec   :  { %7774 = vmatpush3.bf16.msra.mxu1 %v4018_v0  ;;  %7780 = vmatpush3.bf16.msra.mxu0 %v4019_v21  ;;  %v8081_v33 = vpop.eup %8080 }
 0x4ed   :  { %7785 = vmatprep.subr.bf16.mxu1 %v10674_v35  ;;  %7791 = vmatprep.subr.bf16.mxu0 %v10674_v35  ;;  %v5203_v43 = vmul.f32 %v8081_v33, %v10214_v22 }
 0x4ee   :  { %v8083_v56 = vpop.eup %8082 }
 0x4ef   :  { %7776 = vmatmul.mubr.msk.bf16.vlgmr.msra.gmra.mxu1 %vm4022_vm1, %v5217_v48  ;;  %7782 = vmatmul.mubr.msk.bf16.vlgmr.msra.gmra.mxu0 %vm4022_vm1, %v5218_v49  ;;  %v5220_v8 = vpack.c.bf16 %v5204_v5, %v5203_v43  ;;  %v5201_v63 = vmul.f32 %v8083_v56, %v10194_v26 }
 0x4f0   :  { %7786 = vmatpush3.bf16.msra.mxu1 %v4020_v52  ;;  %7792 = vmatpush3.bf16.msra.mxu0 %v4021_v14 }
 0x4f1   :  { %7793 = vmatprep.mubr.msk.bf16.mxu0 %vm8213_vm0, %v10674_v35  ;;  %7787 = vmatprep.mubr.msk.bf16.mxu1 %vm8213_vm0, %v10674_v35 }
 0x4f7   :  { %7794 = vmatmul.mubr.msk.bf16.vlgmr.msra.gmra.mxu0 %vm4022_vm1, %v5220_v8 }
 0x509   :  { %v5134_v40 = vpop.xlane.xlu1 %5133 }
 0x50a   :  { %8084 = vrcp.f32 %v5134_v40 }
 0x517   :  { %v8085_v7 = vpop.eup %8084 }
 0x518   :  { %v5202_v39 = vmul.f32 %v8085_v7, %v10236_v2 }
 0x51a   :  { %v5219_v3 = vpack.c.bf16 %v5202_v39, %v5201_v63 }
 0x51c   :  { %7788 = vmatmul.mubr.msk.bf16.vlgmr.msra.gmra.mxu1 %vm4022_vm1, %v5219_v3 }
 0x53e   :  { %v5258_v58 = vpop.f32.mrf.mxu1 }
 0x540   :  { %v7705_v35 = vpop.f32.mrf.mxu1 }
 0x542   :  { %v5261_v19 = vpop.f32.mrf.mxu1 }
 0x544   :  { %v7706_v22 = vpop.f32.mrf.mxu1 }
 0x546   :  { %v5346_v15 = vpop.f32.mrf.mxu1 }
 0x547   :  { %v5925_v2 = vcombine.low %v5258_v58, %v5346_v15  ;;  %v5926_v34 = vcombine.high %v5258_v58, %v5346_v15 }
 0x548   :  { %v7717_v24 = vpop.f32.mrf.mxu1 }
 0x549   :  { %v5933_v45 = vrot.slane %v5925_v2, %v8493_v6  ;;  %v5940_v60 = vrot.slane %v5926_v34, %v8493_v6 }
 0x54a   :  { %v5349_v17 = vpop.f32.mrf.mxu1 }
 0x54b   :  { %v6061_v42 = vcombine.low %v5261_v19, %v5349_v17  ;;  %v6062_v36 = vcombine.high %v5261_v19, %v5349_v17 }
 0x54c   :  { %v7718_v13 = vpop.f32.mrf.mxu1 }
 0x54d   :  { %v6069_v21 = vrot.slane %v6061_v42, %v8493_v6  ;;  %v6076_v16 = vrot.slane %v6062_v36, %v8493_v6 }
 0x54e   :  { %v5302_v11 = vpop.f32.mrf.mxu0 }
 0x550   :  { %v7711_v28 = vpop.f32.mrf.mxu0 }
 0x552   :  { %v5305_v44 = vpop.f32.mrf.mxu0  ;;  %v10373_v37 = vpop.f32.mrf.mxu1 }
 0x554   :  { %v7712_v55 = vpop.f32.mrf.mxu0  ;;  %v7729_v26 = vpop.f32.mrf.mxu1 }
 0x556   :  { %v10375_v51 = vpop.f32.mrf.mxu1 }
 0x558   :  { %v7730_v46 = vpop.f32.mrf.mxu1 }
 0x55a   :  { %v5390_v18 = vpop.f32.mrf.mxu0  ;;  %v10377_v23 = vpop.f32.mrf.mxu1 }
 0x55b   :  { %v5941_v4 = vcombine.low %v5302_v11, %v5390_v18  ;;  %v5942_v61 = vcombine.high %v5302_v11, %v5390_v18 }
 0x55c   :  { %v7723_v59 = vpop.f32.mrf.mxu0  ;;  %v7741_v38 = vpop.f32.mrf.mxu1 }
 0x55d   :  { %v5949_v62 = vrot.slane %v5941_v4, %v8493_v6  ;;  %v5956_v54 = vrot.slane %v5942_v61, %v8493_v6 }
 0x55e   :  { %v5393_v29 = vpop.f32.mrf.mxu0  ;;  %v10383_v32 = vpop.f32.mrf.mxu1 }
 0x55f   :  { %v5989_v50 = vcombine.low %v5933_v45, %v5949_v62  ;;  %v5990_v10 = vcombine.high %v5933_v45, %v5949_v62  ;;  %v6005_v41 = vcombine.low %v5940_v60, %v5956_v54  ;;  %v6006_v47 = vcombine.high %v5940_v60, %v5956_v54 }
 0x560   :  { %v6077_v53 = vcombine.low %v5305_v44, %v5393_v29  ;;  %v6078_v25 = vcombine.high %v5305_v44, %v5393_v29  ;;  %v7724_v12 = vpop.f32.mrf.mxu0  ;;  %v7742_v57 = vpop.f32.mrf.mxu1 }
 0x561   :  { %v5997_v1 = vrot.slane %v5989_v50, %v8496_v9  ;;  %v6004_v27 = vrot.slane %v5990_v10, %v8496_v9  ;;  %v6013_v20 = vrot.slane %v6005_v41, %v8496_v9  ;;  %v6020_v0 = vrot.slane %v6006_v47, %v8496_v9 }
 0x562   :  { %v6085_v52 = vrot.slane %v6077_v53, %v8493_v6  ;;  %v6092_v30 = vrot.slane %v6078_v25, %v8493_v6  ;;  %v10393_v14 = vpop.f32.mrf.mxu0 }
 0x563   :  { %v7460_v48 = vcombine.low %v5997_v1, %v6004_v27  ;;  %v7462_v49 = vcombine.high %v5997_v1, %v6004_v27  ;;  %v7464_v31 = vcombine.low %v6013_v20, %v6020_v0  ;;  %v7466_v33 = vcombine.high %v6013_v20, %v6020_v0 }
 0x564   :  { %v6125_v5 = vcombine.low %v6069_v21, %v6085_v52  ;;  %v6126_v43 = vcombine.high %v6069_v21, %v6085_v52  ;;  %v6141_v8 = vcombine.low %v6076_v16, %v6092_v30  ;;  %v6142_v40 = vcombine.high %v6076_v16, %v6092_v30  ;;  %v7735_v56 = vpop.f32.mrf.mxu0 }
 0x565   :  { %v6477_v7 = vrot.slane %v7460_v48, %v8493_v6  ;;  %v6493_v63 = vrot.slane %v7462_v49, %v8493_v6  ;;  %v6509_v39 = vrot.slane %v7464_v31, %v8493_v6  ;;  %v6525_v3 = vrot.slane %v7466_v33, %v8493_v6 }
 0x566   :  { %v6133_v58 = vrot.slane %v6125_v5, %v8496_v9  ;;  %v6140_v35 = vrot.slane %v6126_v43, %v8496_v9  ;;  %v6149_v19 = vrot.slane %v6141_v8, %v8496_v9  ;;  %v6156_v22 = vrot.slane %v6142_v40, %v8496_v9  ;;  %v10403_v15 = vpop.f32.mrf.mxu0 }
 0x567   :  { %v6534_v24 = vcombine.high %v6477_v7, %v6493_v63  ;;  %v6566_v17 = vcombine.high %v6509_v39, %v6525_v3  ;;  %v6533_v13 = vcombine.low %v6477_v7, %v6493_v63  ;;  %v6565_v11 = vcombine.low %v6509_v39, %v6525_v3 }
 0x568   :  { %v7468_v28 = vcombine.low %v6133_v58, %v6140_v35  ;;  %v7470_v44 = vcombine.high %v6133_v58, %v6140_v35  ;;  %v7472_v55 = vcombine.low %v6149_v19, %v6156_v22  ;;  %v7474_v26 = vcombine.high %v6149_v19, %v6156_v22  ;;  %v7736_v2 = vpop.f32.mrf.mxu0 }
 0x569   :  { %v10406_v34 = vrot.slane %v6533_v13, %v8496_v9  ;;  %v10409_v46 = vrot.slane %v6565_v11, %v8496_v9  ;;  %v6548_v45 = vrot.slane %v6534_v24, %v8496_v9  ;;  %v6580_v60 = vrot.slane %v6566_v17, %v8496_v9 }
 0x56a   :  { %v6613_v18 = vrot.slane %v7468_v28, %v8493_v6  ;;  %v6629_v4 = vrot.slane %v7470_v44, %v8493_v6  ;;  %v6645_v61 = vrot.slane %v7472_v55, %v8493_v6  ;;  %v6661_v59 = vrot.slane %v7474_v26, %v8493_v6 }
 0x56b   :  { %v6597_v62 = vcombine.low %v10406_v34, %v10409_v46  ;;  %v6599_v47 = vcombine.low %v6548_v45, %v6580_v60  ;;  %v6598_v25 = vcombine.high %v10406_v34, %v10409_v46  ;;  %v6600_v57 = vcombine.high %v6548_v45, %v6580_v60 }
 0x56c   :  { %v6670_v54 = vcombine.high %v6613_v18, %v6629_v4  ;;  %v6702_v38 = vcombine.high %v6645_v61, %v6661_v59  ;;  %v6669_v42 = vcombine.low %v6613_v18, %v6629_v4  ;;  %v6701_v36 = vcombine.low %v6645_v61, %v6661_v59 }
 0x56d   :  { %v5957_v49 = vcombine.low %v10373_v37, %v10377_v23  ;;  %v5958_v31 = vcombine.high %v10373_v37, %v10377_v23  ;;  %v6093_v37 = vcombine.low %v10375_v51, %v10383_v32  ;;  %v6094_v23 = vcombine.high %v10375_v51, %v10383_v32 }
 0x56e   :  { %v6684_v29 = vrot.slane %v6670_v54, %v8496_v9  ;;  %v6716_v50 = vrot.slane %v6702_v38, %v8496_v9  ;;  %v10422_v10 = vrot.slane %v6669_v42, %v8496_v9  ;;  %v10425_v41 = vrot.slane %v6701_v36, %v8496_v9 }
 0x56f   :  { %v5965_v56 = vrot.slane %v5957_v49, %v8493_v6  ;;  %v5972_v7 = vrot.slane %v5958_v31, %v8493_v6  ;;  %v6101_v26 = vrot.slane %v6093_v37, %v8493_v6  ;;  %v6108_v2 = vrot.slane %v6094_v23, %v8493_v6 }
 0x570   :  { %v6735_v53 = vcombine.low %v6684_v29, %v6716_v50  ;;  %v6734_v12 = vcombine.high %v10422_v10, %v10425_v41  ;;  %v6733_v1 = vcombine.low %v10422_v10, %v10425_v41  ;;  %v6736_v0 = vcombine.high %v6684_v29, %v6716_v50 }
 0x572   :  { %v7845_v27 = vpack.i.bf16 %v6735_v53, %v6599_v47  ;;  %v7840_v20 = vpack.i.bf16 %v6734_v12, %v6598_v25  ;;  %v7850_v21 = vpack.i.bf16 %v6736_v0, %v6600_v57 }
 0x574   :  { %7846 = vrot.lane.b32.xlu1 %v7845_v27, %s8211_s17  ;;  %7841 = vrot.lane.b32.xlu0 %v7840_v20, %s8195_s30 }
 0x577   :  { %v10435_v16 = vpop.f32.mrf.mxu1 }
 0x578   :  { %7851 = vrot.lane.b32.xlu0 %v7850_v21, %s8210_s14 }
 0x579   :  { %v7753_v52 = vpop.f32.mrf.mxu1 }
 0x57b   :  { %v10438_v30 = vpop.f32.mrf.mxu1 }
 0x57d   :  { %v7754_v48 = vpop.f32.mrf.mxu1 }
 0x585   :  { %v5566_v33 = vpop.f32.mrf.mxu0 }
 0x586   :  { %v5973_v5 = vcombine.low %v10393_v14, %v5566_v33  ;;  %v5974_v43 = vcombine.high %v10393_v14, %v5566_v33  ;;  %v10446_v8 = vpop.f32.mrf.mxu1 }
 0x587   :  { %v7747_v40 = vpop.f32.mrf.mxu0 }
 0x588   :  { %v5981_v63 = vrot.slane %v5973_v5, %v8493_v6  ;;  %v5988_v39 = vrot.slane %v5974_v43, %v8493_v6  ;;  %v7765_v3 = vpop.f32.mrf.mxu1 }
 0x589   :  { %v5569_v58 = vpop.f32.mrf.mxu0 }
 0x58a   :  { %v6021_v14 = vcombine.low %v5965_v56, %v5981_v63  ;;  %v6022_v35 = vcombine.high %v5965_v56, %v5981_v63  ;;  %v6037_v19 = vcombine.low %v5972_v7, %v5988_v39  ;;  %v6038_v22 = vcombine.high %v5972_v7, %v5988_v39  ;;  %v10456_v24 = vpop.f32.mrf.mxu1 }
 0x58b   :  { %v6109_v17 = vcombine.low %v10403_v15, %v5569_v58  ;;  %v6110_v13 = vcombine.high %v10403_v15, %v5569_v58  ;;  %v7748_v11 = vpop.f32.mrf.mxu0 }
 0x58c   :  { %v6029_v28 = vrot.slane %v6021_v14, %v8496_v9  ;;  %v6036_v44 = vrot.slane %v6022_v35, %v8496_v9  ;;  %v6045_v55 = vrot.slane %v6037_v19, %v8496_v9  ;;  %v6052_v51 = vrot.slane %v6038_v22, %v8496_v9  ;;  %v7766_v32 = vpop.f32.mrf.mxu1 }
 0x58d   :  { %v6117_v18 = vrot.slane %v6109_v17, %v8493_v6  ;;  %v6124_v4 = vrot.slane %v6110_v13, %v8493_v6  ;;  %v5654_v61 = vpop.f32.mrf.mxu0  ;;  %v6197_v14 = vcombine.low %v10435_v16, %v10446_v8  ;;  %v6198_v22 = vcombine.high %v10435_v16, %v10446_v8 }
 0x58e   :  { %v7461_v15 = vcombine.low %v6029_v28, %v6036_v44  ;;  %v7463_v59 = vcombine.high %v6029_v28, %v6036_v44  ;;  %v7465_v45 = vcombine.low %v6045_v55, %v6052_v51  ;;  %v7467_v60 = vcombine.high %v6045_v55, %v6052_v51 }
 0x58f   :  { %v6157_v54 = vcombine.low %v6101_v26, %v6117_v18  ;;  %v6158_v38 = vcombine.high %v6101_v26, %v6117_v18  ;;  %v6173_v42 = vcombine.low %v6108_v2, %v6124_v4  ;;  %v6174_v36 = vcombine.high %v6108_v2, %v6124_v4  ;;  %v7759_v29 = vpop.f32.mrf.mxu0 }
 0x590   :  { %v6484_v50 = vrot.slane %v7461_v15, %v8493_v6  ;;  %v6500_v47 = vrot.slane %v7463_v59, %v8493_v6  ;;  %v6516_v53 = vrot.slane %v7465_v45, %v8493_v6  ;;  %v6532_v25 = vrot.slane %v7467_v60, %v8493_v6 }
 0x591   :  { %v6165_v12 = vrot.slane %v6157_v54, %v8496_v9  ;;  %v6172_v27 = vrot.slane %v6158_v38, %v8496_v9  ;;  %v6181_v20 = vrot.slane %v6173_v42, %v8496_v9  ;;  %v6188_v0 = vrot.slane %v6174_v36, %v8496_v9  ;;  %v10476_v57 = vpop.f32.mrf.mxu0 }
 0x592   :  { %v6549_v21 = vcombine.low %v6484_v50, %v6500_v47  ;;  %v6581_v52 = vcombine.low %v6516_v53, %v6532_v25  ;;  %v6550_v35 = vcombine.high %v6484_v50, %v6500_v47  ;;  %v6582_v19 = vcombine.high %v6516_v53, %v6532_v25 }
 0x593   :  { %v7469_v48 = vcombine.low %v6165_v12, %v6172_v27  ;;  %v7471_v49 = vcombine.high %v6165_v12, %v6172_v27  ;;  %v7473_v31 = vcombine.low %v6181_v20, %v6188_v0  ;;  %v7475_v33 = vcombine.high %v6181_v20, %v6188_v0  ;;  %v7760_v5 = vpop.f32.mrf.mxu0 }
 0x594   :  { %v6557_v63 = vrot.slane %v6549_v21, %v8496_v9  ;;  %v6589_v39 = vrot.slane %v6581_v52, %v8496_v9  ;;  %v6333_v11 = vcombine.low %v10438_v30, %v10456_v24  ;;  %v6334_v28 = vcombine.high %v10438_v30, %v10456_v24 }
 0x595   :  { %v6620_v43 = vrot.slane %v7469_v48, %v8493_v6  ;;  %v6636_v40 = vrot.slane %v7471_v49, %v8493_v6  ;;  %v6652_v56 = vrot.slane %v7473_v31, %v8493_v6  ;;  %v6668_v7 = vrot.slane %v7475_v33, %v8493_v6 }
 0x596   :  { %v6601_v16 = vcombine.low %v6557_v63, %v6589_v39  ;;  %v6205_v2 = vrot.slane %v6197_v14, %v8493_v6  ;;  %v6564_v15 = vrot.slane %v6550_v35, %v8496_v9  ;;  %v6596_v59 = vrot.slane %v6582_v19, %v8496_v9 }
 0x597   :  { %v6685_v3 = vcombine.low %v6620_v43, %v6636_v40  ;;  %v6717_v37 = vcombine.low %v6652_v56, %v6668_v7  ;;  %v6686_v23 = vcombine.high %v6620_v43, %v6636_v40  ;;  %v6718_v58 = vcombine.high %v6652_v56, %v6668_v7 }
 0x598   :  { %v6212_v30 = vrot.slane %v6198_v22, %v8493_v6  ;;  %v6341_v54 = vrot.slane %v6333_v11, %v8493_v6  ;;  %v6602_v42 = vcombine.high %v6557_v63, %v6589_v39  ;;  %v6603_v0 = vcombine.low %v6564_v15, %v6596_v59 }
 0x599   :  { %v6693_v17 = vrot.slane %v6685_v3, %v8496_v9  ;;  %v6725_v13 = vrot.slane %v6717_v37, %v8496_v9  ;;  %v10495_v55 = vrot.slane %v6686_v23, %v8496_v9  ;;  %v10498_v51 = vrot.slane %v6718_v58, %v8496_v9 }
 0x59a   :  { %v6604_v11 = vcombine.high %v6564_v15, %v6596_v59 }
 0x59b   :  { %v5742_v44 = vpop.f32.mrf.mxu0  ;;  %v6737_v8 = vcombine.low %v6693_v17, %v6725_v13  ;;  %v6738_v4 = vcombine.high %v6693_v17, %v6725_v13  ;;  %v6739_v36 = vcombine.low %v10495_v55, %v10498_v51  ;;  %v6740_v43 = vcombine.high %v10495_v55, %v10498_v51 }
 0x59c   :  { %v6213_v32 = vcombine.low %v5654_v61, %v5742_v44  ;;  %v6214_v26 = vcombine.high %v5654_v61, %v5742_v44  ;;  %v6348_v61 = vrot.slane %v6334_v28, %v8493_v6 }
 0x59d   :  { %v7771_v18 = vpop.f32.mrf.mxu0  ;;  %v7855_v60 = vpack.i.bf16 %v6737_v8, %v6601_v16  ;;  %v7860_v20 = vpack.i.bf16 %v6738_v4, %v6602_v42  ;;  %v7865_v5 = vpack.i.bf16 %v6739_v36, %v6603_v0  ;;  %v7900_v16 = vpack.i.bf16 %v6740_v43, %v6604_v11 }
 0x59e   :  { %v6221_v24 = vrot.slane %v6213_v32, %v8493_v6  ;;  %v6228_v45 = vrot.slane %v6214_v26, %v8493_v6 }
 0x59f   :  { %v5745_v38 = vpop.f32.mrf.mxu0  ;;  %7856 = vrot.lane.b32.xlu0 %v7855_v60, %s8204_s27 }
 0x5a0   :  { %v6261_v29 = vcombine.low %v6205_v2, %v6221_v24  ;;  %v6262_v50 = vcombine.high %v6205_v2, %v6221_v24  ;;  %v6277_v47 = vcombine.low %v6212_v30, %v6228_v45  ;;  %v6278_v53 = vcombine.high %v6212_v30, %v6228_v45 }
 0x5a1   :  { %v6349_v25 = vcombine.low %v10476_v57, %v5745_v38  ;;  %v6350_v12 = vcombine.high %v10476_v57, %v5745_v38  ;;  %v7772_v27 = vpop.f32.mrf.mxu0 }
 0x5a2   :  { %v6269_v21 = vrot.slane %v6261_v29, %v8496_v9  ;;  %v6276_v52 = vrot.slane %v6262_v50, %v8496_v9  ;;  %v6285_v48 = vrot.slane %v6277_v47, %v8496_v9  ;;  %v6292_v49 = vrot.slane %v6278_v53, %v8496_v9 }
 0x5a3   :  { %v6357_v31 = vrot.slane %v6349_v25, %v8493_v6  ;;  %v6364_v33 = vrot.slane %v6350_v12, %v8493_v6  ;;  %7861 = vrot.lane.b32.xlu0 %v7860_v20, %s8209_s13 }
 0x5a4   :  { %v7476_v57 = vcombine.low %v6269_v21, %v6276_v52  ;;  %v7478_v40 = vcombine.high %v6269_v21, %v6276_v52  ;;  %v7480_v56 = vcombine.low %v6285_v48, %v6292_v49  ;;  %v7482_v7 = vcombine.high %v6285_v48, %v6292_v49  ;;  %v7942_v48 = vld [vmem:[#allocation8 + $0x38] sm:$0xff]   ;;  %v7943_v49 = vld [vmem:[#allocation8 + $0x30] sm:$0xff]  }
 0x5a5   :  { %v6397_v63 = vcombine.low %v6341_v54, %v6357_v31  ;;  %v6398_v39 = vcombine.high %v6341_v54, %v6357_v31  ;;  %v6413_v3 = vcombine.low %v6348_v61, %v6364_v33  ;;  %v6414_v37 = vcombine.high %v6348_v61, %v6364_v33  ;;  %7797 = vmatprep.subr.bf16.mxu1 %v7942_v48 }
 0x5a6   :  { %v6749_v23 = vrot.slane %v7476_v57, %v8493_v6  ;;  %v6765_v58 = vrot.slane %v7478_v40, %v8493_v6  ;;  %v6781_v14 = vrot.slane %v7480_v56, %v8493_v6  ;;  %v6797_v35 = vrot.slane %v7482_v7, %v8493_v6  ;;  %7798 = vmatpush3.bf16.msra.mxu1 %v7942_v48  ;;  %v7944_v7 = vld [vmem:[#allocation8 + $0x28] sm:$0xff]  }
 0x5a7   :  { %v6405_v19 = vrot.slane %v6397_v63, %v8496_v9  ;;  %v6412_v22 = vrot.slane %v6398_v39, %v8496_v9  ;;  %v6421_v17 = vrot.slane %v6413_v3, %v8496_v9  ;;  %v6428_v13 = vrot.slane %v6414_v37, %v8496_v9  ;;  %7866 = vrot.lane.b32.xlu0 %v7865_v5, %s8208_s5 }
 0x5a8   :  { %v6805_v28 = vcombine.low %v6749_v23, %v6765_v58  ;;  %v6837_v44 = vcombine.low %v6781_v14, %v6797_v35  ;;  %v6806_v24 = vcombine.high %v6749_v23, %v6765_v58  ;;  %v6838_v45 = vcombine.high %v6781_v14, %v6797_v35  ;;  %7799 = vmatprep.subr.bf16.mxu1 %v7943_v49  ;;  %v7945_v58 = vld [vmem:[#allocation8 + $0x20] sm:$0xff]  }
 0x5a9   :  { %v7484_v55 = vcombine.low %v6405_v19, %v6412_v22  ;;  %v7486_v51 = vcombine.high %v6405_v19, %v6412_v22  ;;  %v7488_v32 = vcombine.low %v6421_v17, %v6428_v13  ;;  %v7490_v26 = vcombine.high %v6421_v17, %v6428_v13 }
 0x5aa   :  { %v10532_v8 = vrot.slane %v6805_v28, %v8496_v9  ;;  %v10535_v2 = vrot.slane %v6837_v44, %v8496_v9  ;;  %v6820_v25 = vrot.slane %v6806_v24, %v8496_v9  ;;  %v6852_v0 = vrot.slane %v6838_v45, %v8496_v9  ;;  %7800 = vmatpush3.bf16.msra.mxu1 %v7943_v49 }
 0x5ab   :  { %v6885_v18 = vrot.slane %v7484_v55, %v8493_v6  ;;  %v6901_v4 = vrot.slane %v7486_v51, %v8493_v6  ;;  %v6917_v30 = vrot.slane %v7488_v32, %v8493_v6  ;;  %v6933_v15 = vrot.slane %v7490_v26, %v8493_v6  ;;  %7901 = vrot.lane.b32.xlu0 %v7900_v16, %s8207_s12 }
 0x5ac   :  { %v6869_v59 = vcombine.low %v10532_v8, %v10535_v2  ;;  %v6870_v12 = vcombine.high %v10532_v8, %v10535_v2  ;;  %v6871_v57 = vcombine.low %v6820_v25, %v6852_v0  ;;  %v6872_v37 = vcombine.high %v6820_v25, %v6852_v0  ;;  %7801 = vmatprep.subr.bf16.mxu1 %v7944_v7 }
 0x5ad   :  { %v6941_v60 = vcombine.low %v6885_v18, %v6901_v4  ;;  %v6973_v54 = vcombine.low %v6917_v30, %v6933_v15  ;;  %v6942_v61 = vcombine.high %v6885_v18, %v6901_v4  ;;  %v6974_v38 = vcombine.high %v6917_v30, %v6933_v15 }
 0x5ae   :  { %7802 = vmatpush3.bf16.msra.mxu1 %v7944_v7 }
 0x5af   :  { %v10545_v42 = vrot.slane %v6941_v60, %v8496_v9  ;;  %v10548_v36 = vrot.slane %v6973_v54, %v8496_v9  ;;  %v6956_v29 = vrot.slane %v6942_v61, %v8496_v9  ;;  %v6988_v50 = vrot.slane %v6974_v38, %v8496_v9  ;;  %v5786_v47 = vpop.f32.mrf.mxu1  ;;  %v5830_v53 = vpop.f32.mrf.mxu0  ;;  %7803 = vmatprep.subr.bf16.mxu1 %v7945_v58 }
 0x5b1   :  { %v7006_v27 = vcombine.high %v10545_v42, %v10548_v36  ;;  %v7005_v20 = vcombine.low %v10545_v42, %v10548_v36  ;;  %v7777_v21 = vpop.f32.mrf.mxu1  ;;  %v7783_v52 = vpop.f32.mrf.mxu0  ;;  %v7007_v33 = vcombine.low %v6956_v29, %v6988_v50  ;;  %v7008_v39 = vcombine.high %v6956_v29, %v6988_v50 }
 0x5b2   :  { %7804 = vmatpush3.bf16.msra.mxu1 %v7945_v58 }
 0x5b3   :  { %v7870_v31 = vpack.i.bf16 %v7006_v27, %v6870_v12  ;;  %v5789_v5 = vpop.f32.mrf.mxu1  ;;  %v5833_v43 = vpop.f32.mrf.mxu0  ;;  %v7875_v63 = vpack.i.bf16 %v7007_v33, %v6871_v57  ;;  %v7880_v14 = vpack.i.bf16 %v7008_v39, %v6872_v37 }
 0x5b5   :  { %7871 = vrot.lane.b32.xlu1 %v7870_v31, %s8195_s30  ;;  %v7778_v40 = vpop.f32.mrf.mxu1  ;;  %v7784_v56 = vpop.f32.mrf.mxu0 }
 0x5b7   :  { %v5918_v3 = vpop.f32.mrf.mxu0 }
 0x5b8   :  { %v6245_v22 = vcombine.low %v5830_v53, %v5918_v3  ;;  %v6246_v17 = vcombine.high %v5830_v53, %v5918_v3 }
 0x5b9   :  { %7876 = vrot.lane.b32.xlu1 %v7875_v63, %s8211_s17  ;;  %v7795_v23 = vpop.f32.mrf.mxu0 }
 0x5ba   :  { %v6253_v55 = vrot.slane %v6245_v22, %v8493_v6  ;;  %v6260_v51 = vrot.slane %v6246_v17, %v8493_v6  ;;  %v7946_v22 = vld [vmem:[#allocation8 + $0x18] sm:$0xff]  }
 0x5bb   :  { %v5921_v35 = vpop.f32.mrf.mxu0  ;;  %7805 = vmatprep.subr.bf16.mxu1 %v7946_v22 }
 0x5bc   :  { %v6381_v16 = vcombine.low %v5833_v43, %v5921_v35  ;;  %v6382_v18 = vcombine.high %v5833_v43, %v5921_v35  ;;  %7806 = vmatpush3.bf16.msra.mxu1 %v7946_v22 }
 0x5bd   :  { %7881 = vrot.lane.b32.xlu1 %v7880_v14, %s8210_s14  ;;  %v7796_v19 = vpop.f32.mrf.mxu0 }
 0x5be   :  { %v6389_v53 = vrot.slane %v6381_v16, %v8493_v6  ;;  %v6396_v25 = vrot.slane %v6382_v18, %v8493_v6 }
 0x5dc   :  { %v5874_v13 = vpop.f32.mrf.mxu1 }
 0x5dd   :  { %v6229_v11 = vcombine.low %v5786_v47, %v5874_v13  ;;  %v6230_v28 = vcombine.high %v5786_v47, %v5874_v13 }
 0x5de   :  { %v7789_v44 = vpop.f32.mrf.mxu1 }
 0x5df   :  { %v6237_v32 = vrot.slane %v6229_v11, %v8493_v6  ;;  %v6244_v26 = vrot.slane %v6230_v28, %v8493_v6 }
 0x5e0   :  { %v5877_v4 = vpop.f32.mrf.mxu1 }
 0x5e1   :  { %v6293_v30 = vcombine.low %v6237_v32, %v6253_v55  ;;  %v6294_v15 = vcombine.high %v6237_v32, %v6253_v55  ;;  %v6309_v24 = vcombine.low %v6244_v26, %v6260_v51  ;;  %v6310_v45 = vcombine.high %v6244_v26, %v6260_v51  ;;  %v7947_v26 = vld [vmem:[#allocation8 + $0x10] sm:$0xff]  }
 0x5e2   :  { %v6365_v60 = vcombine.low %v5789_v5, %v5877_v4  ;;  %v6366_v54 = vcombine.high %v5789_v5, %v5877_v4  ;;  %v7790_v61 = vpop.f32.mrf.mxu1  ;;  %7807 = vmatprep.subr.bf16.mxu1 %v7947_v26 }
 0x5e3   :  { %v6301_v38 = vrot.slane %v6293_v30, %v8496_v9  ;;  %v6308_v29 = vrot.slane %v6294_v15, %v8496_v9  ;;  %v6317_v50 = vrot.slane %v6309_v24, %v8496_v9  ;;  %v6324_v47 = vrot.slane %v6310_v45, %v8496_v9  ;;  %7808 = vmatpush3.bf16.msra.mxu1 %v7947_v26 }
 0x5e4   :  { %v6373_v12 = vrot.slane %v6365_v60, %v8493_v6  ;;  %v6380_v27 = vrot.slane %v6366_v54, %v8493_v6  ;;  %v7948_v60 = vld [vmem:[#allocation8 + $0x8] sm:$0xff]  }
 0x5e5   :  { %v7477_v0 = vcombine.low %v6301_v38, %v6308_v29  ;;  %v7479_v21 = vcombine.high %v6301_v38, %v6308_v29  ;;  %v7481_v52 = vcombine.low %v6317_v50, %v6324_v47  ;;  %v7483_v48 = vcombine.high %v6317_v50, %v6324_v47  ;;  %7809 = vmatprep.subr.bf16.mxu1 %v7948_v60 }
 0x5e6   :  { %v6429_v49 = vcombine.low %v6373_v12, %v6389_v53  ;;  %v6430_v31 = vcombine.high %v6373_v12, %v6389_v53  ;;  %v6445_v33 = vcombine.low %v6380_v27, %v6396_v25  ;;  %v6446_v5 = vcombine.high %v6380_v27, %v6396_v25  ;;  %v7949_v27 = vld [vmem:[#allocation8] sm:$0xff]  }
 0x5e7   :  { %v6756_v43 = vrot.slane %v7477_v0, %v8493_v6  ;;  %v6772_v57 = vrot.slane %v7479_v21, %v8493_v6  ;;  %v6788_v40 = vrot.slane %v7481_v52, %v8493_v6  ;;  %v6804_v56 = vrot.slane %v7483_v48, %v8493_v6  ;;  %7810 = vmatpush3.bf16.msra.mxu1 %v7948_v60 }
 0x5e8   :  { %v6437_v7 = vrot.slane %v6429_v49, %v8496_v9  ;;  %v6444_v63 = vrot.slane %v6430_v31, %v8496_v9  ;;  %v6453_v39 = vrot.slane %v6445_v33, %v8496_v9  ;;  %v6460_v3 = vrot.slane %v6446_v5, %v8496_v9  ;;  %7811 = vmatprep.subr.bf16.mxu1 %v7949_v27  ;;  %v7842_v31 = vpop.permute.xlu0 %7841 }
 0x5e9   :  { %v6821_v37 = vcombine.low %v6756_v43, %v6772_v57  ;;  %v6853_v23 = vcombine.low %v6788_v40, %v6804_v56  ;;  %v6822_v45 = vcombine.high %v6756_v43, %v6772_v57  ;;  %v7844_v5 = vunpack.i.h.bf16 %v7842_v31  ;;  %v7847_v57 = vpop.permute.xlu1 %7846 }
 0x5ea   :  { %v7485_v58 = vcombine.low %v6437_v7, %v6444_v63  ;;  %v7487_v14 = vcombine.high %v6437_v7, %v6444_v63  ;;  %v7489_v35 = vcombine.low %v6453_v39, %v6460_v3  ;;  %v7491_v19 = vcombine.high %v6453_v39, %v6460_v3 }
 0x5eb   :  { %v6829_v44 = vrot.slane %v6821_v37, %v8496_v9  ;;  %v6861_v55 = vrot.slane %v6853_v23, %v8496_v9  ;;  %v6836_v47 = vrot.slane %v6822_v45, %v8496_v9  ;;  %7812 = vmatpush3.bf16.msra.mxu1 %v7949_v27  ;;  %v7843_v43 = vunpack.i.l.bf16 %v7842_v31 }
 0x5ec   :  { %v6892_v17 = vrot.slane %v7485_v58, %v8493_v6  ;;  %v6908_v13 = vrot.slane %v7487_v14, %v8493_v6  ;;  %v6924_v11 = vrot.slane %v7489_v35, %v8493_v6  ;;  %v6940_v28 = vrot.slane %v7491_v19, %v8493_v6  ;;  %v7852_v33 = vpop.permute.xlu0 %7851 }
 0x5ed   :  { %v6873_v15 = vcombine.low %v6829_v44, %v6861_v55  ;;  %v6854_v6 = vcombine.high %v6788_v40, %v6804_v56  ;;  %v6874_v50 = vcombine.high %v6829_v44, %v6861_v55  ;;  %v7849_v56 = vunpack.i.h.bf16 %v7847_v57 }
 0x5ee   :  { %v6957_v51 = vcombine.low %v6892_v17, %v6908_v13  ;;  %v6989_v32 = vcombine.low %v6924_v11, %v6940_v28  ;;  %v6958_v4 = vcombine.high %v6892_v17, %v6908_v13  ;;  %v6990_v30 = vcombine.high %v6924_v11, %v6940_v28 }
 0x5ef   :  { %v6868_v53 = vrot.slane %v6854_v6, %v8496_v9  ;;  %v7848_v7 = vunpack.i.l.bf16 %v7847_v57  ;;  %v7125_v63 = vsel %vm4022_vm1, %v6597_v62, %v7843_v43  ;;  %v7126_v39 = vsel %vm4022_vm1, %v6733_v1, %v7844_v5 }
 0x5f0   :  { %v6965_v16 = vrot.slane %v6957_v51, %v8496_v9  ;;  %v6997_v18 = vrot.slane %v6989_v32, %v8496_v9  ;;  %v6972_v38 = vrot.slane %v6958_v4, %v8496_v9  ;;  %v7004_v29 = vrot.slane %v6990_v30, %v8496_v9 }
 0x5f1   :  { %v6875_v0 = vcombine.low %v6836_v47, %v6868_v53  ;;  %v6876_v48 = vcombine.high %v6836_v47, %v6868_v53  ;;  %v7854_v3 = vunpack.i.h.bf16 %v7852_v33  ;;  %v7853_v37 = vunpack.i.l.bf16 %v7852_v33 }
 0x5f2   :  { %v7009_v24 = vcombine.low %v6965_v16, %v6997_v18  ;;  %v7010_v61 = vcombine.high %v6965_v16, %v6997_v18  ;;  %v7011_v12 = vcombine.low %v6972_v38, %v7004_v29  ;;  %v7012_v52 = vcombine.high %v6972_v38, %v7004_v29 }
 0x5f3   :  { %v7131_v22 = vsel %vm7129_vm2, %v7126_v39, %v7849_v56  ;;  %v7130_v34 = vsel %vm7129_vm2, %v7125_v63, %v7848_v7  ;;  %v7492_v7 = vld [vmem:[%s10655_s7] ss:$0 sm:$0xff] }
 0x5f4   :  { %v7885_v54 = vpack.i.bf16 %v7009_v24, %v6873_v15  ;;  %v7890_v25 = vpack.i.bf16 %v7010_v61, %v6874_v50  ;;  %v7895_v21 = vpack.i.bf16 %v7011_v12, %v6875_v0  ;;  %v7905_v49 = vpack.i.bf16 %v7012_v52, %v6876_v48 }
 0x5f5   :  { %v7135_v10 = vsel %vm7134_vm3, %v7130_v34, %v7853_v37  ;;  %v7136_v41 = vsel %vm7134_vm3, %v7131_v22, %v7854_v3 }
 0x5f6   :  { %7886 = vrot.lane.b32.xlu1 %v7885_v54, %s8204_s27 }
 0x5fa   :  { %7891 = vrot.lane.b32.xlu1 %v7890_v25, %s8209_s13 }
 0x5fe   :  { %7896 = vrot.lane.b32.xlu1 %v7895_v21, %s8208_s5 }
 0x602   :  { %7906 = vrot.lane.b32.xlu1 %v7905_v49, %s8207_s12 }
 0x611   :  { %v7857_v9 = vpop.permute.xlu0 %7856 }
 0x612   :  { %v7859_v23 = vunpack.i.h.bf16 %v7857_v9  ;;  %v7858_v58 = vunpack.i.l.bf16 %v7857_v9 }
 0x614   :  { %v7140_v1 = vsel %vm7139_vm4, %v7135_v10, %v7858_v58  ;;  %v7141_v17 = vsel %vm7139_vm4, %v7136_v41, %v7859_v23 }
 0x615   :  { %v7862_v40 = vpop.permute.xlu0 %7861 }
 0x616   :  { %v7864_v35 = vunpack.i.h.bf16 %v7862_v40  ;;  %v7863_v19 = vunpack.i.l.bf16 %v7862_v40 }
 0x618   :  { %v7145_v11 = vsel %vm7144_vm5, %v7140_v1, %v7863_v19  ;;  %v7146_v28 = vsel %vm7144_vm5, %v7141_v17, %v7864_v35 }
 0x619   :  { %v7867_v14 = vpop.permute.xlu0 %7866 }
 0x61a   :  { %v7869_v46 = vunpack.i.h.bf16 %v7867_v14  ;;  %v7868_v62 = vunpack.i.l.bf16 %v7867_v14 }
 0x61c   :  { %v7150_v51 = vsel %vm7149_vm6, %v7145_v11, %v7868_v62  ;;  %v7151_v32 = vsel %vm7149_vm6, %v7146_v28, %v7869_v46 }
 0x61d   :  { %v7902_v13 = vpop.permute.xlu0 %7901 }
 0x61e   :  { %v7904_v44 = vunpack.i.h.bf16 %v7902_v13  ;;  %v7903_v55 = vunpack.i.l.bf16 %v7902_v13 }
 0x620   :  { %v7155_v26 = vsel %vm7154_vm7, %v7150_v51, %v7903_v55  ;;  %v7156_v16 = vsel %vm7154_vm7, %v7151_v32, %v7904_v44 }
 0x621   :  { %v7159_v18 = vpack.c.bf16 %v7156_v16, %v7155_v26 }
 0x623   :  { %7813 = vmatprep.mubr.bf16.mxu1 %v7159_v18 }
 0x627   :  { %v7872_v4 = vpop.permute.xlu1 %7871 }
 0x628   :  { %v7874_v30 = vunpack.i.h.bf16 %v7872_v4  ;;  %v7873_v15 = vunpack.i.l.bf16 %v7872_v4 }
 0x62a   :  { %v7128_v60 = vsel %vm4022_vm1, %v7005_v20, %v7874_v30  ;;  %v7127_v54 = vsel %vm4022_vm1, %v6869_v59, %v7873_v15 }
 0x62b   :  { %v7877_v24 = vpop.permute.xlu1 %7876 }
 0x62c   :  { %v7879_v45 = vunpack.i.h.bf16 %v7877_v24  ;;  %v7878_v6 = vunpack.i.l.bf16 %v7877_v24 }
 0x62e   :  { %v7132_v61 = vsel %vm7129_vm2, %v7127_v54, %v7878_v6  ;;  %v7133_v38 = vsel %vm7129_vm2, %v7128_v60, %v7879_v45 }
 0x62f   :  { %v7882_v29 = vpop.permute.xlu1 %7881 }
 0x630   :  { %v7884_v50 = vunpack.i.h.bf16 %v7882_v29  ;;  %v7883_v47 = vunpack.i.l.bf16 %v7882_v29 }
 0x632   :  { %v7137_v53 = vsel %vm7134_vm3, %v7132_v61, %v7883_v47  ;;  %v7138_v25 = vsel %vm7134_vm3, %v7133_v38, %v7884_v50 }
 0x668   :  { %v7887_v12 = vpop.permute.xlu1 %7886 }
 0x669   :  { %v7889_v36 = vunpack.i.h.bf16 %v7887_v12  ;;  %v7888_v20 = vunpack.i.l.bf16 %v7887_v12 }
 0x66b   :  { %v7142_v21 = vsel %vm7139_vm4, %v7137_v53, %v7888_v20  ;;  %v7143_v52 = vsel %vm7139_vm4, %v7138_v25, %v7889_v36 }
 0x66c   :  { %v7892_v42 = vpop.permute.xlu1 %7891 }
 0x66d   :  { %v7894_v0 = vunpack.i.h.bf16 %v7892_v42  ;;  %v7893_v8 = vunpack.i.l.bf16 %v7892_v42 }
 0x66f   :  { %v7147_v49 = vsel %vm7144_vm5, %v7142_v21, %v7893_v8  ;;  %v7148_v31 = vsel %vm7144_vm5, %v7143_v52, %v7894_v0 }
 0x670   :  { %v7897_v27 = vpop.permute.xlu1 %7896 }
 0x671   :  { %v7899_v2 = vunpack.i.h.bf16 %v7897_v27  ;;  %v7898_v59 = vunpack.i.l.bf16 %v7897_v27 }
 0x673   :  { %v7152_v5 = vsel %vm7149_vm6, %v7147_v49, %v7898_v59  ;;  %v7153_v43 = vsel %vm7149_vm6, %v7148_v31, %v7899_v2 }
 0x674   :  { %v7907_v48 = vpop.permute.xlu1 %7906 }
 0x675   :  { %v7909_v33 = vunpack.i.h.bf16 %v7907_v48  ;;  %v7908_v9 = vunpack.i.l.bf16 %v7907_v48 }
 0x677   :  { %v7157_v57 = vsel %vm7154_vm7, %v7152_v5, %v7908_v9  ;;  %v7158_v40 = vsel %vm7154_vm7, %v7153_v43, %v7909_v33 }
 0x678   :  { %v7160_v56 = vpack.c.bf16 %v7158_v40, %v7157_v57 }
 0x67a   :  { %7814 = vmatmul.mubr.bf16.vlgmr.msra.gmra.mxu1 %v7160_v56 }
 0x73a   :  { %v7815_v63 = vpop.f32.mrf.mxu1 }
 0x73b   :  { %v7275_v39 = vadd.f32 %v7815_v63, %v7492_v7 }
 0x73c   :  { %v7266_v3 = vpop.f32.mrf.mxu1 }
 0x73d   :  { %7283 = vst [vmem:[#allocation10 + $0x10] sm:$0xff] %v7275_v39  ;;  %v7267_v37 = vadd.f32 %v7492_v7, %v7266_v3 }
 0x73e   :  { %v7816_v23 = vpop.f32.mrf.mxu1 }
 0x73f   :  { %7281 = vst [vmem:[#allocation10] sm:$0xff] %v7267_v37  ;;  %v7278_v58 = vadd.f32 %v7816_v23, %v7492_v7 }
 0x740   :  { %v7269_v14 = vpop.f32.mrf.mxu1 }
 0x741   :  { %7284 = vst [vmem:[#allocation10 + $0x18] sm:$0xff] %v7278_v58  ;;  %v7270_v35 = vadd.f32 %v7492_v7, %v7269_v14 }
 0x743   :  { %7282 = vst [vmem:[#allocation10 + $0x8] sm:$0xff] %v7270_v35 }
 0x744   :  { %8177 = shalt.err (!%p8174_p10)
}
 0x745   :  { %7296 = dma.vmem_to_hbm [thread:$0]  %s7291_s19, 512, %s10656_s8, [#allocation4], %s8198_s15, %s8198_s15, %s8199_s16  }
 0x746   :  { %8192 = dma.done.wait [#allocation4], 512  }
 0x747   :  { %8193 = vsyncadd [#allocation4], 4294966784 }
 0x748   :  { %7300 = vsyncpa [#allocation3], 1 }
 0x749   :  { %7301 = vsyncpa [#allocation6], 1 }
 0x74a   :  { %7302 = vsyncpa [#allocation9], 1 }
 0x74b   :  { %7303 = vsyncpa [#allocation4], 1 }

</bundles_post_ra>
